<compile_context>
chip_gen: v5e
topology: v5e:2x2
jax: 0.10.0
libtpu: 0.0.40
codegen_flags: <defaults>
</compile_context>

<pallas_src>
import jax
import jax.numpy as jnp
from jax.experimental import pallas as pl
from jax.experimental.pallas import tpu as pltpu


def _resblock_kernel(x_ref, w1_ref, b1_ref, w2_ref, b2_ref, o_ref,
                     xpad_ref, patch_ref):
    # x_ref    : (1, H, W, C)      unpadded input tile (one batch element)
    # w*_ref   : (9C, C)           conv weights, im2col order (dy, dx, ci)
    # b*_ref   : (1, C)            conv biases
    # o_ref    : (1, H, W, C)      output tile
    # xpad_ref : (H+2, W+2, C)     VMEM scratch: zero-padded conv input
    # patch_ref: (H*W, 9C)         VMEM scratch: im2col patch matrix
    _, H, W, C = x_ref.shape
    HW = H * W

    # Zero only the 1-pixel border strips (interior is fully rewritten below).
    zrow = jnp.zeros((1, W + 2, C), jnp.float32)
    zcol = jnp.zeros((H + 2, 1, C), jnp.float32)
    xpad_ref[0:1, :, :] = zrow
    xpad_ref[H + 1:H + 2, :, :] = zrow
    xpad_ref[:, 0:1, :] = zcol
    xpad_ref[:, W + 1:W + 2, :] = zcol

    x = x_ref[0]                                   # (H, W, C)

    def conv3x3(w_ref, b_ref):
        # im2col: gather the 9 shifted views into one (HW, 9C) matrix, then a
        # single MXU matmul against the dense (9C, C) weight slab.
        for dy in range(3):
            for dx in range(3):
                k = dy * 3 + dx
                patch_ref[:, k * C:(k + 1) * C] = (
                    xpad_ref[dy:dy + H, dx:dx + W, :].reshape(HW, C))
        acc = jnp.dot(patch_ref[...], w_ref[...],
                      preferred_element_type=jnp.float32)      # (HW, C)
        return acc + b_ref[...]

    # ---- conv1 (3x3, pad 1) + bias + LeakyReLU(0.2) ----
    xpad_ref[1:H + 1, 1:W + 1, :] = x
    h = conv3x3(w1_ref, b1_ref)
    h = jnp.where(h >= 0, h, 0.2 * h)

    # ---- conv2 (3x3, pad 1) + bias, no activation (reuse padded scratch) ----
    xpad_ref[1:H + 1, 1:W + 1, :] = h.reshape(H, W, C)
    h = conv3x3(w2_ref, b2_ref)

    # ---- residual: out = 0.1 * conv_out + x ----
    out = 0.1 * h + x.reshape(HW, C)
    o_ref[0] = out.reshape(H, W, C).astype(o_ref.dtype)


def resblock_pallas(x_nchw, w1, b1, w2, b2):
    """x_nchw: (N, C, H, W) float32; w*: (3,3,C,C) HWIO; b*: (C,)."""
    N, C, H, W = x_nchw.shape
    x = jnp.transpose(x_nchw, (0, 2, 3, 1))        # NHWC (no padding in HBM)

    # Dense im2col weight slabs: (3,3,Cin,Cout) -> (9*Cin, Cout),
    # row index = (dy*3 + dx)*Cin + ci  (matches patch column order).
    w1m = w1.reshape(9 * C, C)
    w2m = w2.reshape(9 * C, C)
    b1m = b1.reshape(1, C)
    b2m = b2.reshape(1, C)

    flops = 2 * 2 * N * H * W * (9 * C) * C                      # two convs
    bytes_accessed = (2 * N * H * W * C + 2 * 9 * C * C + 2 * C) * 4
    cost = pl.CostEstimate(flops=flops, transcendentals=0,
                           bytes_accessed=bytes_accessed)

    out_nhwc = pl.pallas_call(
        _resblock_kernel,
        out_shape=jax.ShapeDtypeStruct((N, H, W, C), x.dtype),
        grid_spec=pltpu.PrefetchScalarGridSpec(
            num_scalar_prefetch=0,
            grid=(N,),
            in_specs=[
                pl.BlockSpec((1, H, W, C), lambda n: (n, 0, 0, 0)),
                pl.BlockSpec((9 * C, C), lambda n: (0, 0)),
                pl.BlockSpec((1, C), lambda n: (0, 0)),
                pl.BlockSpec((9 * C, C), lambda n: (0, 0)),
                pl.BlockSpec((1, C), lambda n: (0, 0)),
            ],
            out_specs=pl.BlockSpec((1, H, W, C), lambda n: (n, 0, 0, 0)),
            scratch_shapes=[
                pltpu.VMEM((H + 2, W + 2, C), jnp.float32),   # padded image
                pltpu.VMEM((H * W, 9 * C), jnp.float32),      # im2col patches
            ],
        ),
        compiler_params=pltpu.CompilerParams(
            dimension_semantics=("parallel",)),
        cost_estimate=cost,
    )(x, w1m, b1m, w2m, b2m)

    return jnp.transpose(out_nhwc, (0, 3, 1, 2))   # back to NCHW


def resblock_reference(x_nchw, w1, b1, w2, b2):
    """Pure-JAX reference (for correctness checking)."""
    x = jnp.transpose(x_nchw, (0, 2, 3, 1))
    dn = ('NHWC', 'HWIO', 'NHWC')
    c1 = jax.lax.conv_general_dilated(x, w1, (1, 1), 'SAME',
                                      dimension_numbers=dn) + b1
    a1 = jnp.where(c1 >= 0, c1, 0.2 * c1)
    c2 = jax.lax.conv_general_dilated(a1, w2, (1, 1), 'SAME',
                                      dimension_numbers=dn) + b2
    y = 0.1 * c2 + x
    return jnp.transpose(y, (0, 3, 1, 2))


if __name__ == "__main__":
    # Small shapes consistent with ResBlock(dim=4, kernel_size=3, padding=1)
    N, C, H, W = 2, 4, 16, 16

    key = jax.random.PRNGKey(0)
    kx, k1, k2, kb1, kb2 = jax.random.split(key, 5)

    x = jax.random.normal(kx, (N, C, H, W), dtype=jnp.float32)
    # Deterministic synthetic conv parameters (HWIO layout).
    w1 = jax.random.normal(k1, (3, 3, C, C), dtype=jnp.float32) * 0.1
    b1 = jax.random.normal(kb1, (C,), dtype=jnp.float32) * 0.05
    w2 = jax.random.normal(k2, (3, 3, C, C), dtype=jnp.float32) * 0.1
    b2 = jax.random.normal(kb2, (C,), dtype=jnp.float32) * 0.05

    out = jax.block_until_ready(resblock_pallas(x, w1, b1, w2, b2))
    ref = jax.block_until_ready(resblock_reference(x, w1, b1, w2, b2))

    assert out.shape == (N, C, H, W)
    max_err = float(jnp.max(jnp.abs(out - ref)))
    assert jnp.allclose(out, ref, rtol=1e-5, atol=1e-4), max_err

    print("KERNEL_OK")
</pallas_src>

<mosaic_0001>
module attributes {stable_mosaic.version = 11 : i64} {
  func.func @_resblock_kernel(%arg0: i32, %arg1: memref<1x16x16x4xf32, #tpu.memory_space<vmem>>, %arg2: memref<36x4xf32, #tpu.memory_space<vmem>>, %arg3: memref<1x4xf32, #tpu.memory_space<vmem>>, %arg4: memref<36x4xf32, #tpu.memory_space<vmem>>, %arg5: memref<1x4xf32, #tpu.memory_space<vmem>>, %arg6: memref<1x16x16x4xf32, #tpu.memory_space<vmem>>, %arg7: memref<18x18x4xf32, #tpu.memory_space<vmem>>, %arg8: memref<256x36xf32, #tpu.memory_space<vmem>>) attributes {dimension_semantics = [#tpu.dimension_semantics<parallel>], iteration_bounds = array<i64: 2>, scalar_prefetch = 0 : i64, scratch_operands = 2 : i64, tpu.core_type = #tpu.core_type<tc>, window_params = [{transform_indices = @transform_0, window_bounds = array<i64: 1, 16, 16, 4>}, {pipeline_mode = #tpu.pipeline_mode<synchronous>, transform_indices = @transform_1, window_bounds = array<i64: 36, 4>}, {pipeline_mode = #tpu.pipeline_mode<synchronous>, transform_indices = @transform_2, window_bounds = array<i64: 1, 4>}, {pipeline_mode = #tpu.pipeline_mode<synchronous>, transform_indices = @transform_3, window_bounds = array<i64: 36, 4>}, {pipeline_mode = #tpu.pipeline_mode<synchronous>, transform_indices = @transform_4, window_bounds = array<i64: 1, 4>}, {transform_indices = @transform_5, window_bounds = array<i64: 1, 16, 16, 4>}]} {
    %cst = arith.constant 0.000000e+00 : f32
    %0 = vector.broadcast %cst : f32 to vector<1x18x4xf32>
    %cst_0 = arith.constant 0.000000e+00 : f32
    %1 = vector.broadcast %cst_0 : f32 to vector<18x1x4xf32>
    %c0 = arith.constant 0 : index
    %c0_1 = arith.constant 0 : index
    %c0_2 = arith.constant 0 : index
    %2 = vector.load %arg7[%c0, %c0_1, %c0_2] : memref<18x18x4xf32, #tpu.memory_space<vmem>>, vector<1x18x4xf32>
    tpu.vector_store %arg7[%c0, %c0_1, %c0_2], %0 {strides = array<i32>} : memref<18x18x4xf32, #tpu.memory_space<vmem>>, vector<1x18x4xf32>,
    %c17 = arith.constant 17 : index
    %c0_3 = arith.constant 0 : index
    %c0_4 = arith.constant 0 : index
    %3 = vector.load %arg7[%c17, %c0_3, %c0_4] : memref<18x18x4xf32, #tpu.memory_space<vmem>>, vector<1x18x4xf32>
    tpu.vector_store %arg7[%c17, %c0_3, %c0_4], %0 {strides = array<i32>} : memref<18x18x4xf32, #tpu.memory_space<vmem>>, vector<1x18x4xf32>,
    %c0_5 = arith.constant 0 : index
    %c0_6 = arith.constant 0 : index
    %c0_7 = arith.constant 0 : index
    %4 = vector.load %arg7[%c0_5, %c0_6, %c0_7] : memref<18x18x4xf32, #tpu.memory_space<vmem>>, vector<18x1x4xf32>
    tpu.vector_store %arg7[%c0_5, %c0_6, %c0_7], %1 {strides = array<i32>} : memref<18x18x4xf32, #tpu.memory_space<vmem>>, vector<18x1x4xf32>,
    %c0_8 = arith.constant 0 : index
    %c17_9 = arith.constant 17 : index
    %c0_10 = arith.constant 0 : index
    %5 = vector.load %arg7[%c0_8, %c17_9, %c0_10] : memref<18x18x4xf32, #tpu.memory_space<vmem>>, vector<18x1x4xf32>
    tpu.vector_store %arg7[%c0_8, %c17_9, %c0_10], %1 {strides = array<i32>} : memref<18x18x4xf32, #tpu.memory_space<vmem>>, vector<18x1x4xf32>,
    %c0_11 = arith.constant 0 : index
    %c0_12 = arith.constant 0 : index
    %c0_13 = arith.constant 0 : index
    %c0_14 = arith.constant 0 : index
    %6 = vector.load %arg1[%c0_11, %c0_12, %c0_13, %c0_14] : memref<1x16x16x4xf32, #tpu.memory_space<vmem>>, vector<1x16x16x4xf32>
    %7 = vector.shape_cast %6 : vector<1x16x16x4xf32> to vector<16x16x4xf32>
    %c1 = arith.constant 1 : index
    %c1_15 = arith.constant 1 : index
    %c0_16 = arith.constant 0 : index
    %8 = vector.load %arg7[%c1, %c1_15, %c0_16] : memref<18x18x4xf32, #tpu.memory_space<vmem>>, vector<16x16x4xf32>
    tpu.vector_store %arg7[%c1, %c1_15, %c0_16], %7 {strides = array<i32>} : memref<18x18x4xf32, #tpu.memory_space<vmem>>, vector<16x16x4xf32>,
    %c0_17 = arith.constant 0 : index
    %c0_18 = arith.constant 0 : index
    %c0_19 = arith.constant 0 : index
    %9 = vector.load %arg7[%c0_17, %c0_18, %c0_19] : memref<18x18x4xf32, #tpu.memory_space<vmem>>, vector<16x16x4xf32>
    %10 = vector.shape_cast %9 : vector<16x16x4xf32> to vector<256x4xf32>
    %c0_20 = arith.constant 0 : index
    %c0_21 = arith.constant 0 : index
    %11 = vector.load %arg8[%c0_20, %c0_21] : memref<256x36xf32, #tpu.memory_space<vmem>>, vector<256x4xf32>
    tpu.vector_store %arg8[%c0_20, %c0_21], %10 {strides = array<i32>} : memref<256x36xf32, #tpu.memory_space<vmem>>, vector<256x4xf32>,
    %c0_22 = arith.constant 0 : index
    %c1_23 = arith.constant 1 : index
    %c0_24 = arith.constant 0 : index
    %12 = vector.load %arg7[%c0_22, %c1_23, %c0_24] : memref<18x18x4xf32, #tpu.memory_space<vmem>>, vector<16x16x4xf32>
    %13 = vector.shape_cast %12 : vector<16x16x4xf32> to vector<256x4xf32>
    %c0_25 = arith.constant 0 : index
    %c4 = arith.constant 4 : index
    %14 = vector.load %arg8[%c0_25, %c4] : memref<256x36xf32, #tpu.memory_space<vmem>>, vector<256x4xf32>
    tpu.vector_store %arg8[%c0_25, %c4], %13 {strides = array<i32>} : memref<256x36xf32, #tpu.memory_space<vmem>>, vector<256x4xf32>,
    %c0_26 = arith.constant 0 : index
    %c2 = arith.constant 2 : index
    %c0_27 = arith.constant 0 : index
    %15 = vector.load %arg7[%c0_26, %c2, %c0_27] : memref<18x18x4xf32, #tpu.memory_space<vmem>>, vector<16x16x4xf32>
    %16 = vector.shape_cast %15 : vector<16x16x4xf32> to vector<256x4xf32>
    %c0_28 = arith.constant 0 : index
    %c8 = arith.constant 8 : index
    %17 = vector.load %arg8[%c0_28, %c8] : memref<256x36xf32, #tpu.memory_space<vmem>>, vector<256x4xf32>
    tpu.vector_store %arg8[%c0_28, %c8], %16 {strides = array<i32>} : memref<256x36xf32, #tpu.memory_space<vmem>>, vector<256x4xf32>,
    %c1_29 = arith.constant 1 : index
    %c0_30 = arith.constant 0 : index
    %c0_31 = arith.constant 0 : index
    %18 = vector.load %arg7[%c1_29, %c0_30, %c0_31] : memref<18x18x4xf32, #tpu.memory_space<vmem>>, vector<16x16x4xf32>
    %19 = vector.shape_cast %18 : vector<16x16x4xf32> to vector<256x4xf32>
    %c0_32 = arith.constant 0 : index
    %c12 = arith.constant 12 : index
    %20 = vector.load %arg8[%c0_32, %c12] : memref<256x36xf32, #tpu.memory_space<vmem>>, vector<256x4xf32>
    tpu.vector_store %arg8[%c0_32, %c12], %19 {strides = array<i32>} : memref<256x36xf32, #tpu.memory_space<vmem>>, vector<256x4xf32>,
    %c1_33 = arith.constant 1 : index
    %c1_34 = arith.constant 1 : index
    %c0_35 = arith.constant 0 : index
    %21 = vector.load %arg7[%c1_33, %c1_34, %c0_35] : memref<18x18x4xf32, #tpu.memory_space<vmem>>, vector<16x16x4xf32>
    %22 = vector.shape_cast %21 : vector<16x16x4xf32> to vector<256x4xf32>
    %c0_36 = arith.constant 0 : index
    %c16 = arith.constant 16 : index
    %23 = vector.load %arg8[%c0_36, %c16] : memref<256x36xf32, #tpu.memory_space<vmem>>, vector<256x4xf32>
    tpu.vector_store %arg8[%c0_36, %c16], %22 {strides = array<i32>} : memref<256x36xf32, #tpu.memory_space<vmem>>, vector<256x4xf32>,
    %c1_37 = arith.constant 1 : index
    %c2_38 = arith.constant 2 : index
    %c0_39 = arith.constant 0 : index
    %24 = vector.load %arg7[%c1_37, %c2_38, %c0_39] : memref<18x18x4xf32, #tpu.memory_space<vmem>>, vector<16x16x4xf32>
    %25 = vector.shape_cast %24 : vector<16x16x4xf32> to vector<256x4xf32>
    %c0_40 = arith.constant 0 : index
    %c20 = arith.constant 20 : index
    %26 = vector.load %arg8[%c0_40, %c20] : memref<256x36xf32, #tpu.memory_space<vmem>>, vector<256x4xf32>
    tpu.vector_store %arg8[%c0_40, %c20], %25 {strides = array<i32>} : memref<256x36xf32, #tpu.memory_space<vmem>>, vector<256x4xf32>,
    %c2_41 = arith.constant 2 : index
    %c0_42 = arith.constant 0 : index
    %c0_43 = arith.constant 0 : index
    %27 = vector.load %arg7[%c2_41, %c0_42, %c0_43] : memref<18x18x4xf32, #tpu.memory_space<vmem>>, vector<16x16x4xf32>
    %28 = vector.shape_cast %27 : vector<16x16x4xf32> to vector<256x4xf32>
    %c0_44 = arith.constant 0 : index
    %c24 = arith.constant 24 : index
    %29 = vector.load %arg8[%c0_44, %c24] : memref<256x36xf32, #tpu.memory_space<vmem>>, vector<256x4xf32>
    tpu.vector_store %arg8[%c0_44, %c24], %28 {strides = array<i32>} : memref<256x36xf32, #tpu.memory_space<vmem>>, vector<256x4xf32>,
    %c2_45 = arith.constant 2 : index
    %c1_46 = arith.constant 1 : index
    %c0_47 = arith.constant 0 : index
    %30 = vector.load %arg7[%c2_45, %c1_46, %c0_47] : memref<18x18x4xf32, #tpu.memory_space<vmem>>, vector<16x16x4xf32>
    %31 = vector.shape_cast %30 : vector<16x16x4xf32> to vector<256x4xf32>
    %c0_48 = arith.constant 0 : index
    %c28 = arith.constant 28 : index
    %32 = vector.load %arg8[%c0_48, %c28] : memref<256x36xf32, #tpu.memory_space<vmem>>, vector<256x4xf32>
    tpu.vector_store %arg8[%c0_48, %c28], %31 {strides = array<i32>} : memref<256x36xf32, #tpu.memory_space<vmem>>, vector<256x4xf32>,
    %c2_49 = arith.constant 2 : index
    %c2_50 = arith.constant 2 : index
    %c0_51 = arith.constant 0 : index
    %33 = vector.load %arg7[%c2_49, %c2_50, %c0_51] : memref<18x18x4xf32, #tpu.memory_space<vmem>>, vector<16x16x4xf32>
    %34 = vector.shape_cast %33 : vector<16x16x4xf32> to vector<256x4xf32>
    %c0_52 = arith.constant 0 : index
    %c32 = arith.constant 32 : index
    %35 = vector.load %arg8[%c0_52, %c32] : memref<256x36xf32, #tpu.memory_space<vmem>>, vector<256x4xf32>
    tpu.vector_store %arg8[%c0_52, %c32], %34 {strides = array<i32>} : memref<256x36xf32, #tpu.memory_space<vmem>>, vector<256x4xf32>,
    %c0_53 = arith.constant 0 : index
    %c0_54 = arith.constant 0 : index
    %36 = vector.load %arg8[%c0_53, %c0_54] : memref<256x36xf32, #tpu.memory_space<vmem>>, vector<256x36xf32>
    %c0_55 = arith.constant 0 : index
    %c0_56 = arith.constant 0 : index
    %37 = vector.load %arg2[%c0_55, %c0_56] : memref<36x4xf32, #tpu.memory_space<vmem>>, vector<36x4xf32>
    %cst_57 = arith.constant dense<0.000000e+00> : vector<256x4xf32>
    %38 = tpu.matmul %36, %37, %cst_57 {dimension_numbers = #tpu.dot_dimension_numbers<[1], [0], [0], [1], [0, 0, 1, 1], [], []>} : vector<256x36xf32>, vector<36x4xf32>, vector<256x4xf32> -> vector<256x4xf32>
    %c0_58 = arith.constant 0 : index
    %c0_59 = arith.constant 0 : index
    %39 = vector.load %arg3[%c0_58, %c0_59] : memref<1x4xf32, #tpu.memory_space<vmem>>, vector<1x4xf32>
    %40 = vector.broadcast %39 : vector<1x4xf32> to vector<256x4xf32>
    %41 = arith.addf %38, %40 : vector<256x4xf32>
    %cst_60 = arith.constant 0.000000e+00 : f32
    %42 = vector.broadcast %cst_60 : f32 to vector<256x4xf32>
    %43 = arith.cmpf oge, %41, %42 : vector<256x4xf32>
    %cst_61 = arith.constant 2.000000e-01 : f32
    %44 = vector.broadcast %cst_61 : f32 to vector<256x4xf32>
    %45 = arith.mulf %44, %41 : vector<256x4xf32>
    %46 = arith.select %43, %41, %45 : vector<256x4xi1>, vector<256x4xf32>
    %47 = vector.shape_cast %46 : vector<256x4xf32> to vector<16x16x4xf32>
    %c1_62 = arith.constant 1 : index
    %c1_63 = arith.constant 1 : index
    %c0_64 = arith.constant 0 : index
    %48 = vector.load %arg7[%c1_62, %c1_63, %c0_64] : memref<18x18x4xf32, #tpu.memory_space<vmem>>, vector<16x16x4xf32>
    tpu.vector_store %arg7[%c1_62, %c1_63, %c0_64], %47 {strides = array<i32>} : memref<18x18x4xf32, #tpu.memory_space<vmem>>, vector<16x16x4xf32>,
    %c0_65 = arith.constant 0 : index
    %c0_66 = arith.constant 0 : index
    %c0_67 = arith.constant 0 : index
    %49 = vector.load %arg7[%c0_65, %c0_66, %c0_67] : memref<18x18x4xf32, #tpu.memory_space<vmem>>, vector<16x16x4xf32>
    %50 = vector.shape_cast %49 : vector<16x16x4xf32> to vector<256x4xf32>
    %c0_68 = arith.constant 0 : index
    %c0_69 = arith.constant 0 : index
    %51 = vector.load %arg8[%c0_68, %c0_69] : memref<256x36xf32, #tpu.memory_space<vmem>>, vector<256x4xf32>
    tpu.vector_store %arg8[%c0_68, %c0_69], %50 {strides = array<i32>} : memref<256x36xf32, #tpu.memory_space<vmem>>, vector<256x4xf32>,
    %c0_70 = arith.constant 0 : index
    %c1_71 = arith.constant 1 : index
    %c0_72 = arith.constant 0 : index
    %52 = vector.load %arg7[%c0_70, %c1_71, %c0_72] : memref<18x18x4xf32, #tpu.memory_space<vmem>>, vector<16x16x4xf32>
    %53 = vector.shape_cast %52 : vector<16x16x4xf32> to vector<256x4xf32>
    %c0_73 = arith.constant 0 : index
    %c4_74 = arith.constant 4 : index
    %54 = vector.load %arg8[%c0_73, %c4_74] : memref<256x36xf32, #tpu.memory_space<vmem>>, vector<256x4xf32>
    tpu.vector_store %arg8[%c0_73, %c4_74], %53 {strides = array<i32>} : memref<256x36xf32, #tpu.memory_space<vmem>>, vector<256x4xf32>,
    %c0_75 = arith.constant 0 : index
    %c2_76 = arith.constant 2 : index
    %c0_77 = arith.constant 0 : index
    %55 = vector.load %arg7[%c0_75, %c2_76, %c0_77] : memref<18x18x4xf32, #tpu.memory_space<vmem>>, vector<16x16x4xf32>
    %56 = vector.shape_cast %55 : vector<16x16x4xf32> to vector<256x4xf32>
    %c0_78 = arith.constant 0 : index
    %c8_79 = arith.constant 8 : index
    %57 = vector.load %arg8[%c0_78, %c8_79] : memref<256x36xf32, #tpu.memory_space<vmem>>, vector<256x4xf32>
    tpu.vector_store %arg8[%c0_78, %c8_79], %56 {strides = array<i32>} : memref<256x36xf32, #tpu.memory_space<vmem>>, vector<256x4xf32>,
    %c1_80 = arith.constant 1 : index
    %c0_81 = arith.constant 0 : index
    %c0_82 = arith.constant 0 : index
    %58 = vector.load %arg7[%c1_80, %c0_81, %c0_82] : memref<18x18x4xf32, #tpu.memory_space<vmem>>, vector<16x16x4xf32>
    %59 = vector.shape_cast %58 : vector<16x16x4xf32> to vector<256x4xf32>
    %c0_83 = arith.constant 0 : index
    %c12_84 = arith.constant 12 : index
    %60 = vector.load %arg8[%c0_83, %c12_84] : memref<256x36xf32, #tpu.memory_space<vmem>>, vector<256x4xf32>
    tpu.vector_store %arg8[%c0_83, %c12_84], %59 {strides = array<i32>} : memref<256x36xf32, #tpu.memory_space<vmem>>, vector<256x4xf32>,
    %c1_85 = arith.constant 1 : index
    %c1_86 = arith.constant 1 : index
    %c0_87 = arith.constant 0 : index
    %61 = vector.load %arg7[%c1_85, %c1_86, %c0_87] : memref<18x18x4xf32, #tpu.memory_space<vmem>>, vector<16x16x4xf32>
    %62 = vector.shape_cast %61 : vector<16x16x4xf32> to vector<256x4xf32>
    %c0_88 = arith.constant 0 : index
    %c16_89 = arith.constant 16 : index
    %63 = vector.load %arg8[%c0_88, %c16_89] : memref<256x36xf32, #tpu.memory_space<vmem>>, vector<256x4xf32>
    tpu.vector_store %arg8[%c0_88, %c16_89], %62 {strides = array<i32>} : memref<256x36xf32, #tpu.memory_space<vmem>>, vector<256x4xf32>,
    %c1_90 = arith.constant 1 : index
    %c2_91 = arith.constant 2 : index
    %c0_92 = arith.constant 0 : index
    %64 = vector.load %arg7[%c1_90, %c2_91, %c0_92] : memref<18x18x4xf32, #tpu.memory_space<vmem>>, vector<16x16x4xf32>
    %65 = vector.shape_cast %64 : vector<16x16x4xf32> to vector<256x4xf32>
    %c0_93 = arith.constant 0 : index
    %c20_94 = arith.constant 20 : index
    %66 = vector.load %arg8[%c0_93, %c20_94] : memref<256x36xf32, #tpu.memory_space<vmem>>, vector<256x4xf32>
    tpu.vector_store %arg8[%c0_93, %c20_94], %65 {strides = array<i32>} : memref<256x36xf32, #tpu.memory_space<vmem>>, vector<256x4xf32>,
    %c2_95 = arith.constant 2 : index
    %c0_96 = arith.constant 0 : index
    %c0_97 = arith.constant 0 : index
    %67 = vector.load %arg7[%c2_95, %c0_96, %c0_97] : memref<18x18x4xf32, #tpu.memory_space<vmem>>, vector<16x16x4xf32>
    %68 = vector.shape_cast %67 : vector<16x16x4xf32> to vector<256x4xf32>
    %c0_98 = arith.constant 0 : index
    %c24_99 = arith.constant 24 : index
    %69 = vector.load %arg8[%c0_98, %c24_99] : memref<256x36xf32, #tpu.memory_space<vmem>>, vector<256x4xf32>
    tpu.vector_store %arg8[%c0_98, %c24_99], %68 {strides = array<i32>} : memref<256x36xf32, #tpu.memory_space<vmem>>, vector<256x4xf32>,
    %c2_100 = arith.constant 2 : index
    %c1_101 = arith.constant 1 : index
    %c0_102 = arith.constant 0 : index
    %70 = vector.load %arg7[%c2_100, %c1_101, %c0_102] : memref<18x18x4xf32, #tpu.memory_space<vmem>>, vector<16x16x4xf32>
    %71 = vector.shape_cast %70 : vector<16x16x4xf32> to vector<256x4xf32>
    %c0_103 = arith.constant 0 : index
    %c28_104 = arith.constant 28 : index
    %72 = vector.load %arg8[%c0_103, %c28_104] : memref<256x36xf32, #tpu.memory_space<vmem>>, vector<256x4xf32>
    tpu.vector_store %arg8[%c0_103, %c28_104], %71 {strides = array<i32>} : memref<256x36xf32, #tpu.memory_space<vmem>>, vector<256x4xf32>,
    %c2_105 = arith.constant 2 : index
    %c2_106 = arith.constant 2 : index
    %c0_107 = arith.constant 0 : index
    %73 = vector.load %arg7[%c2_105, %c2_106, %c0_107] : memref<18x18x4xf32, #tpu.memory_space<vmem>>, vector<16x16x4xf32>
    %74 = vector.shape_cast %73 : vector<16x16x4xf32> to vector<256x4xf32>
    %c0_108 = arith.constant 0 : index
    %c32_109 = arith.constant 32 : index
    %75 = vector.load %arg8[%c0_108, %c32_109] : memref<256x36xf32, #tpu.memory_space<vmem>>, vector<256x4xf32>
    tpu.vector_store %arg8[%c0_108, %c32_109], %74 {strides = array<i32>} : memref<256x36xf32, #tpu.memory_space<vmem>>, vector<256x4xf32>,
    %c0_110 = arith.constant 0 : index
    %c0_111 = arith.constant 0 : index
    %76 = vector.load %arg8[%c0_110, %c0_111] : memref<256x36xf32, #tpu.memory_space<vmem>>, vector<256x36xf32>
    %c0_112 = arith.constant 0 : index
    %c0_113 = arith.constant 0 : index
    %77 = vector.load %arg4[%c0_112, %c0_113] : memref<36x4xf32, #tpu.memory_space<vmem>>, vector<36x4xf32>
    %cst_114 = arith.constant dense<0.000000e+00> : vector<256x4xf32>
    %78 = tpu.matmul %76, %77, %cst_114 {dimension_numbers = #tpu.dot_dimension_numbers<[1], [0], [0], [1], [0, 0, 1, 1], [], []>} : vector<256x36xf32>, vector<36x4xf32>, vector<256x4xf32> -> vector<256x4xf32>
    %c0_115 = arith.constant 0 : index
    %c0_116 = arith.constant 0 : index
    %79 = vector.load %arg5[%c0_115, %c0_116] : memref<1x4xf32, #tpu.memory_space<vmem>>, vector<1x4xf32>
    %80 = vector.broadcast %79 : vector<1x4xf32> to vector<256x4xf32>
    %81 = arith.addf %78, %80 : vector<256x4xf32>
    %cst_117 = arith.constant 1.000000e-01 : f32
    %82 = vector.broadcast %cst_117 : f32 to vector<256x4xf32>
    %83 = arith.mulf %82, %81 : vector<256x4xf32>
    %84 = vector.shape_cast %7 : vector<16x16x4xf32> to vector<256x4xf32>
    %85 = arith.addf %83, %84 : vector<256x4xf32>
    %86 = vector.shape_cast %85 : vector<256x4xf32> to vector<16x16x4xf32>
    %c0_118 = arith.constant 0 : index
    %c0_119 = arith.constant 0 : index
    %c0_120 = arith.constant 0 : index
    %c0_121 = arith.constant 0 : index
    %87 = vector.load %arg6[%c0_118, %c0_119, %c0_120, %c0_121] : memref<1x16x16x4xf32, #tpu.memory_space<vmem>>, vector<1x16x16x4xf32>
    %88 = vector.shape_cast %87 : vector<1x16x16x4xf32> to vector<16x16x4xf32>
    %89 = vector.shape_cast %86 : vector<16x16x4xf32> to vector<1x16x16x4xf32>
    tpu.vector_store %arg6[%c0_118, %c0_119, %c0_120, %c0_121], %89 {strides = array<i32>} : memref<1x16x16x4xf32, #tpu.memory_space<vmem>>, vector<1x16x16x4xf32>,
    return
  }
  func.func @transform_0(%arg0: i32) -> (i32, i32, i32, i32) {
    %c0_i32 = arith.constant 0 : i32
    %c0_i32_0 = arith.constant 0 : i32
    %c0_i32_1 = arith.constant 0 : i32
    %c0_i32_2 = arith.constant 0 : i32
    return %arg0, %c0_i32, %c0_i32_0, %c0_i32_1 : i32, i32, i32, i32
  }
  func.func @transform_1(%arg0: i32) -> (i32, i32) {
    %c0_i32 = arith.constant 0 : i32
    %c0_i32_0 = arith.constant 0 : i32
    %c0_i32_1 = arith.constant 0 : i32
    return %c0_i32, %c0_i32_0 : i32, i32
  }
  func.func @transform_2(%arg0: i32) -> (i32, i32) {
    %c0_i32 = arith.constant 0 : i32
    %c0_i32_0 = arith.constant 0 : i32
    %c0_i32_1 = arith.constant 0 : i32
    return %c0_i32, %c0_i32_0 : i32, i32
  }
  func.func @transform_3(%arg0: i32) -> (i32, i32) {
    %c0_i32 = arith.constant 0 : i32
    %c0_i32_0 = arith.constant 0 : i32
    %c0_i32_1 = arith.constant 0 : i32
    return %c0_i32, %c0_i32_0 : i32, i32
  }
  func.func @transform_4(%arg0: i32) -> (i32, i32) {
    %c0_i32 = arith.constant 0 : i32
    %c0_i32_0 = arith.constant 0 : i32
    %c0_i32_1 = arith.constant 0 : i32
    return %c0_i32, %c0_i32_0 : i32, i32
  }
  func.func @transform_5(%arg0: i32) -> (i32, i32, i32, i32) {
    %c0_i32 = arith.constant 0 : i32
    %c0_i32_0 = arith.constant 0 : i32
    %c0_i32_1 = arith.constant 0 : i32
    %c0_i32_2 = arith.constant 0 : i32
    return %arg0, %c0_i32, %c0_i32_0, %c0_i32_1 : i32, i32, i32, i32
  }
}

</mosaic_0001>

<bundles_post_ra>
// kernel: tpu_custom_call.1
= control target key start
LH: loop header
LB: loop body
LE: loop exit
PB: predicated region body
PF: predicated region fallthrough
CT: control target
= control target key end

     0   :  { %s4487_s18 = smov 0   ;;  %s6902_s0 = inlined_call_operand.vmem [shape: f32[2,16,16,4], index: 0, kind: input, shape index: {}]   ;;  %s6903_s1 = inlined_call_operand.vmem [shape: f32[36,4], index: 1, kind: input, shape index: {}]   ;;  %s6904_s2 = inlined_call_operand.vmem [shape: f32[1,4], index: 2, kind: input, shape index: {}]   ;;  %s6905_s3 = inlined_call_operand.vmem [shape: f32[36,4], index: 3, kind: input, shape index: {}]   ;;  %s6906_s4 = inlined_call_operand.vmem [shape: f32[1,4], index: 4, kind: input, shape index: {}]   ;;  %s6907_s5 = inlined_call_operand.vmem [shape: f32[2,16,16,4], index: 5, kind: output, shape index: {}]  }
   0x1 LB: > { %s4332_s19 = sadd.s32 4294967295, %s4446_s18   ;;  %p4336_p0 = scmp.ge.s32.totalorder %s4446_s18, 1  ;;  %s4446_s18 = sphi %s4487_s18, %s15_s18  }
   0x2   : > { %p187_p1 = scmp.lt.s32.totalorder %s4446_s18, 3 }
   0x4   : > { %p188_p2 = pnand %p4336_p0, %p187_p1 }
   0x6   : > { %191 = sbr.rel (%p188_p2) target bundleno = 1895 (0x767), region = 40 }
   0xb   : > { %vm225_vm0 = vcmask 31744   ;;  %p215_p3 = scmp.lt.s32.totalorder %s4332_s19, 1  ;;  %v4448_v0 = vmov 0.0   ;;  %vm228_vm1 = vcmask 25600   ;;  %s4449_s24 = smov 4   ;;  %vm234_vm2 = vcmask 24576  }
   0xc   : > { %226 = vst.msk [vmem:[#allocation2] sm:$0xff] %vm225_vm0, %v4448_v0  ;;  %s4450_s25 = smov 8   ;;  %vm560_vm3 = vcmask 64544   ;;  %s4451_s26 = smov 12   ;;  %vm753_vm4 = vcmask 97344   ;;  %vm946_vm5 = vcmask 130144  }
   0xd   : > { %227 = vst.msk [vmem:[#allocation2 + $0x8] sm:$0xff] %vm225_vm0, %v4448_v0  ;;  %s7174_s19 = smov (!%p215_p3, %s4332_s19), 1  ;;  %s4452_s27 = smov 16   ;;  %vm1139_vm6 = vcmask 162944   ;;  %vm1332_vm7 = vcmask 195744   ;;  %vm1526_vm8 = vcmask 228544  }
   0xe   : > { %231 = vst.msk [vmem:[#allocation2 + $0x198] sm:$0xff] %vm225_vm0, %v4448_v0  ;;  %s4409_s20 = sshll.u32 %s7174_s19, 8  ;;  %s4453_s28 = smov 20   ;;  %vm1719_vm9 = vcmask 261344   ;;  %vm2083_vm10 = vcmask 1043456   ;;  %vm1912_vm11 = vcmask 294144  }
   0xf   : > { %232 = vst.msk [vmem:[#allocation2 + $0x1a0] sm:$0xff] %vm225_vm0, %v4448_v0  ;;  %s4512_s23 = scalar_lea.vmem %s6902_s0, %s4409_s20  ;;  %s4454_s29 = smov 24   ;;  %vm1986_vm12 = vcmask 293888  }
  0x10   : > { %229 = vst.msk [vmem:[#allocation2 + $0x10] sm:$0x3] %vm228_vm1, %v4448_v0  ;;  %v4516_v1 = vld [vmem:[%s4512_s23] sm:$0xff]  ;;  %v4522_v3 = vld [vmem:[%s4512_s23 + $0x8] sm:$0xff]  ;;  %v4527_v4 = vld [vmem:[%s4512_s23 + $0x10] sm:$0xff]  ;;  %s4455_s30 = smov 28   ;;  %s6707_s14 = scalar_lea.vmem %s6907_s5, %s4409_s20 }
  0x11   : > { %233 = vst.msk [vmem:[#allocation2 + $0x1a8] sm:$0x3] %vm228_vm1, %v4448_v0  ;;  %v4519_v2 = vld [vmem:[%s4512_s23 + $0x20] sm:$0xff]  ;;  %v4532_v5 = vld [vmem:[%s4512_s23 + $0x38] sm:$0xff]  ;;  %v4537_v7 = vld [vmem:[%s4512_s23 + $0x28] sm:$0xff]  ;;  %s4456_s6 = smov 32  }
  0x12   : > { %6999 = vst [vmem:[#allocation4_spill] sm:$0xff] %v4516_v1  ;;  %v4543_v8 = vld [vmem:[%s4512_s23 + $0x18] sm:$0xff]  ;;  %v4548_v9 = vld [vmem:[%s4512_s23 + $0x50] sm:$0xff]  ;;  %v4553_v10 = vld [vmem:[%s4512_s23 + $0x40] sm:$0xff] }
  0x13   : > { %7000 = vst [vmem:[#allocation5_spill] sm:$0xff] %v4519_v2  ;;  %v4558_v11 = vld [vmem:[%s4512_s23 + $0x30] sm:$0xff]  ;;  %v4565_v13 = vld [vmem:[%s4512_s23 + $0x68] sm:$0xff]  ;;  %v4572_v15 = vld [vmem:[%s4512_s23 + $0x58] sm:$0xff] }
  0x14   : > { %7001 = vst [vmem:[#allocation6_spill] sm:$0xff] %v4522_v3  ;;  %v400_v6 = vld [vmem:[#allocation2 + $0x1] sm:$0xff]  ;;  %v4592_v19 = vld [vmem:[%s4512_s23 + $0x70] sm:$0xff]  ;;  %v4614_v24 = vld [vmem:[%s4512_s23 + $0x98] sm:$0xff] }
  0x15   : > { %304 = vst.msk [vmem:[#allocation2 + $0x19] sm:$0xff] %vm225_vm0, %v4516_v1  ;;  %464 = vrot.lane.b32.xlu0 %v400_v6, %s4449_s24  ;;  %v4577_v16 = vld [vmem:[%s4512_s23 + $0x48] sm:$0xff]  ;;  %v4584_v18 = vld [vmem:[%s4512_s23 + $0x80] sm:$0xff]  ;;  %v4636_v29 = vld [vmem:[%s4512_s23 + $0x78] sm:$0xff] }
  0x16   : > { %7002 = vst [vmem:[#allocation7_spill] sm:$0xff] %v4527_v4  ;;  %v4609_v23 = vld [vmem:[%s4512_s23 + $0x60] sm:$0xff]  ;;  %v4617_v25 = vld [vmem:[%s4512_s23 + $0x88] sm:$0xff]  ;;  %v4641_v30 = vld [vmem:[%s4512_s23 + $0xb0] sm:$0xff] }
  0x17   : > { %308 = vst.msk [vmem:[#allocation2 + $0x49] sm:$0xff] %vm225_vm0, %v4519_v2  ;;  %v401_v14 = vld [vmem:[#allocation2 + $0x9] sm:$0xff]  ;;  %v4644_v31 = vld [vmem:[%s4512_s23 + $0xa0] sm:$0xff]  ;;  %v4671_v37 = vld [vmem:[%s4512_s23 + $0xb8] sm:$0xff] }
  0x18   : > { %7003 = vst [vmem:[#allocation8_spill] sm:$0xff] %v4532_v5  ;;  %v4663_v35 = vld [vmem:[%s4512_s23 + $0x90] sm:$0xff]  ;;  %v4668_v36 = vld [vmem:[%s4512_s23 + $0xc8] sm:$0xff]  ;;  %v4695_v42 = vld [vmem:[%s4512_s23 + $0xe0] sm:$0xff] }
  0x19   : > { %305 = vst.msk [vmem:[#allocation2 + $0x21] sm:$0xff] %vm225_vm0, %v4522_v3  ;;  %v4690_v41 = vld [vmem:[%s4512_s23 + $0xa8] sm:$0xff]  ;;  %v4698_v43 = vld [vmem:[%s4512_s23 + $0xd0] sm:$0xff]  ;;  %v4717_v47 = vld [vmem:[%s4512_s23 + $0xc0] sm:$0xff] }
  0x1a   : > { %7004 = vst [vmem:[#allocation9_spill] sm:$0xff] %v4537_v7  ;;  %v4838_v59 = vld [vmem:[%s4512_s23 + $0xe8] sm:$0xff]  ;;  %v4843_v60 = vld [vmem:[%s4512_s23 + $0xd8] sm:$0xff] }
  0x1b   : > { %306 = vst.msk [vmem:[#allocation2 + $0x31] sm:$0xff] %vm225_vm0, %v4527_v4 }
  0x1c   : > { %7005 = vst [vmem:[#allocation10_spill] sm:$0xff] %v4543_v8  ;;  %v4560_v12 = vld [vmem:[#allocation2 + $0x19] sm:$0xff] }
  0x1d   : > { %311 = vst.msk [vmem:[#allocation2 + $0x69] sm:$0xff] %vm225_vm0, %v4532_v5  ;;  %468 = vrot.lane.b32.xlu1 %v4560_v12, %s4449_s24  ;;  %466 = vrot.lane.b32.xlu0 %v401_v14, %s4449_s24 }
  0x1e   : > { %7006 = vst [vmem:[#allocation11_spill] sm:$0xff] %v4548_v9  ;;  %v4602_v21 = vld [vmem:[#allocation2 + $0x49] sm:$0xff] }
  0x1f   : > { %309 = vst.msk [vmem:[#allocation2 + $0x51] sm:$0xff] %vm225_vm0, %v4537_v7 }
  0x20   : > { %7007 = vst [vmem:[#allocation12_spill] sm:$0xff] %v4553_v10  ;;  %v4596_v20 = vld [vmem:[#allocation2 + $0x21] sm:$0xff] }
  0x21   : > { %307 = vst.msk [vmem:[#allocation2 + $0x39] sm:$0xff] %vm225_vm0, %v4543_v8 }
  0x22   : > { %7008 = vst [vmem:[#allocation13_spill] sm:$0xff] %v4558_v11  ;;  %v4579_v17 = vld [vmem:[#allocation2 + $0x31] sm:$0xff] }
  0x23   : > { %314 = vst.msk [vmem:[#allocation2 + $0x91] sm:$0xff] %vm225_vm0, %v4548_v9  ;;  %472 = vrot.lane.b32.xlu2 %v4579_v17, %s4449_s24 }
  0x24   : > { %7009 = vst [vmem:[#allocation14_spill] sm:$0xff] %v4565_v13  ;;  %v4629_v27 = vld [vmem:[#allocation2 + $0x69] sm:$0xff] }
  0x25   : > { %312 = vst.msk [vmem:[#allocation2 + $0x79] sm:$0xff] %vm225_vm0, %v4553_v10  ;;  %470 = vrot.lane.b32.xlu1 %v4596_v20, %s4449_s24  ;;  %476 = vrot.lane.b32.xlu0 %v4602_v21, %s4449_s24 }
  0x26   : > { %7010 = vst [vmem:[#allocation15_spill] sm:$0xff] %v4572_v15  ;;  %v4627_v26 = vld [vmem:[#allocation2 + $0x51] sm:$0xff] }
  0x27   : > { %310 = vst.msk [vmem:[#allocation2 + $0x61] sm:$0xff] %vm225_vm0, %v4558_v11  ;;  %v4931_v5 = vld [vmem:[#allocation2 + $0x4a] sm:$0xff] }
  0x28   : > { %7011 = vst [vmem:[#allocation16_spill] sm:$0xff] %v4577_v16  ;;  %v4606_v22 = vld [vmem:[#allocation2 + $0x39] sm:$0xff] }
  0x29   : > { %317 = vst.msk [vmem:[#allocation2 + $0xb1] sm:$0xff] %vm225_vm0, %v4565_v13  ;;  %v4857_v6 = vld [vmem:[#allocation2 + $0x38] sm:$0xff] }
  0x2a   : > { %7012 = vst [vmem:[#allocation17_spill] sm:$0xff] %v4584_v18  ;;  %v4656_v33 = vld [vmem:[#allocation2 + $0x91] sm:$0xff]  ;;  %v4880_v13 = vld [vmem:[#allocation2 + $0x1a] sm:$0xff] }
  0x2b   : > { %315 = vst.msk [vmem:[#allocation2 + $0x99] sm:$0xff] %vm225_vm0, %v4572_v15  ;;  %474 = vrot.lane.b32.xlu2 %v4606_v22, %s4449_s24 }
  0x2c   : > { %7013 = vst [vmem:[#allocation18_spill] sm:$0xff] %v4592_v19  ;;  %v4654_v32 = vld [vmem:[#allocation2 + $0x79] sm:$0xff] }
  0x2d   : > { %313 = vst.msk [vmem:[#allocation2 + $0x81] sm:$0xff] %vm225_vm0, %v4577_v16  ;;  %478 = vrot.lane.b32.xlu1 %v4627_v26, %s4449_s24  ;;  %482 = vrot.lane.b32.xlu0 %v4629_v27, %s4449_s24  ;;  %v4913_v16 = vld [vmem:[#allocation2 + $0x50] sm:$0xff] }
  0x2e   : > { %320 = vst.msk [vmem:[#allocation2 + $0xd9] sm:$0xff] %vm225_vm0, %v4584_v18  ;;  %v4633_v28 = vld [vmem:[#allocation2 + $0x61] sm:$0xff] }
  0x2f   : > { %318 = vst.msk [vmem:[#allocation2 + $0xc1] sm:$0xff] %vm225_vm0, %v4592_v19  ;;  %v4927_v10 = vld [vmem:[#allocation2 + $0x62] sm:$0xff] }
  0x30   : > { %7014 = vst [vmem:[#allocation19_spill] sm:$0xff] %v4609_v23  ;;  %v4683_v39 = vld [vmem:[#allocation2 + $0xb1] sm:$0xff] }
  0x31   : > { %316 = vst.msk [vmem:[#allocation2 + $0xa9] sm:$0xff] %vm225_vm0, %v4609_v23 }
  0x32   : > { %7015 = vst [vmem:[#allocation20_spill] sm:$0xff] %v4614_v24  ;;  %v4681_v38 = vld [vmem:[#allocation2 + $0x99] sm:$0xff] }
  0x33   : > { %7016 = vst [vmem:[#allocation21_spill] sm:$0xff] %v4617_v25  ;;  %480 = vrot.lane.b32.xlu2 %v4633_v28, %s4449_s24 }
  0x34   : > { %323 = vst.msk [vmem:[#allocation2 + $0xf9] sm:$0xff] %vm225_vm0, %v4614_v24  ;;  %v4660_v34 = vld [vmem:[#allocation2 + $0x81] sm:$0xff] }
  0x35   : > { %321 = vst.msk [vmem:[#allocation2 + $0xe1] sm:$0xff] %vm225_vm0, %v4617_v25  ;;  %484 = vrot.lane.b32.xlu1 %v4654_v32, %s4449_s24  ;;  %488 = vrot.lane.b32.xlu0 %v4656_v33, %s4449_s24  ;;  %v4710_v45 = vld [vmem:[#allocation2 + $0xd9] sm:$0xff] }
  0x36   : > { %7017 = vst [vmem:[#allocation22_spill] sm:$0xff] %v4636_v29  ;;  %v4708_v44 = vld [vmem:[#allocation2 + $0xc1] sm:$0xff]  ;;  %v4985_v25 = vld [vmem:[#allocation2 + $0x92] sm:$0xff] }
  0x37   : > { %319 = vst.msk [vmem:[#allocation2 + $0xc9] sm:$0xff] %vm225_vm0, %v4636_v29  ;;  %v337_v29 = vld [vmem:[#allocation2 + $0x8] sm:$0xff] }
  0x38   : > { %7018 = vst [vmem:[#allocation23_spill] sm:$0xff] %v4641_v30  ;;  %v4687_v40 = vld [vmem:[#allocation2 + $0xa9] sm:$0xff] }
  0x39   : > { %7019 = vst [vmem:[#allocation24_spill] sm:$0xff] %v4644_v31  ;;  %v4964_v24 = vld [vmem:[#allocation2 + $0xb0] sm:$0xff] }
  0x3a   : > { %326 = vst.msk [vmem:[#allocation2 + $0x121] sm:$0xff] %vm225_vm0, %v4641_v30 }
  0x3b   : > { %324 = vst.msk [vmem:[#allocation2 + $0x109] sm:$0xff] %vm225_vm0, %v4644_v31  ;;  %486 = vrot.lane.b32.xlu2 %v4660_v34, %s4449_s24  ;;  %v4737_v49 = vld [vmem:[#allocation2 + $0xf9] sm:$0xff] }
  0x3c   : > { %7020 = vst [vmem:[#allocation25_spill] sm:$0xff] %v4663_v35  ;;  %v4729_v48 = vld [vmem:[#allocation2 + $0xe1] sm:$0xff] }
  0x3d   : > { %322 = vst.msk [vmem:[#allocation2 + $0xf1] sm:$0xff] %vm225_vm0, %v4663_v35  ;;  %490 = vrot.lane.b32.xlu1 %v4681_v38, %s4449_s24  ;;  %494 = vrot.lane.b32.xlu0 %v4683_v39, %s4449_s24  ;;  %v4981_v35 = vld [vmem:[#allocation2 + $0xaa] sm:$0xff] }
  0x3e   : > { %7021 = vst [vmem:[#allocation26_spill] sm:$0xff] %v4668_v36  ;;  %v4714_v46 = vld [vmem:[#allocation2 + $0xc9] sm:$0xff] }
  0x3f   : > { %7022 = vst [vmem:[#allocation27_spill] sm:$0xff] %v4671_v37  ;;  %v4970_v4 = vld [vmem:[#allocation2 + $0xc2] sm:$0xff] }
  0x40   : > { %329 = vst.msk [vmem:[#allocation2 + $0x141] sm:$0xff] %vm225_vm0, %v4668_v36  ;;  %v4917_v36 = vld [vmem:[#allocation2 + $0x7a] sm:$0xff] }
  0x41   : > { %327 = vst.msk [vmem:[#allocation2 + $0x129] sm:$0xff] %vm225_vm0, %v4671_v37  ;;  %v4765_v52 = vld [vmem:[#allocation2 + $0x121] sm:$0xff] }
  0x42   : > { %7023 = vst [vmem:[#allocation28_spill] sm:$0xff] %v4690_v41  ;;  %v4757_v51 = vld [vmem:[#allocation2 + $0x109] sm:$0xff] }
  0x43   : > { %325 = vst.msk [vmem:[#allocation2 + $0x111] sm:$0xff] %vm225_vm0, %v4690_v41  ;;  %492 = vrot.lane.b32.xlu2 %v4687_v40, %s4449_s24 }
  0x44   : > { %7024 = vst [vmem:[#allocation29_spill] sm:$0xff] %v4695_v42  ;;  %v4741_v50 = vld [vmem:[#allocation2 + $0xf1] sm:$0xff] }
  0x45   : > { %7025 = vst [vmem:[#allocation30_spill] sm:$0xff] %v4698_v43  ;;  %496 = vrot.lane.b32.xlu1 %v4708_v44, %s4449_s24  ;;  %500 = vrot.lane.b32.xlu0 %v4710_v45, %s4449_s24 }
  0x46   : > { %332 = vst.msk [vmem:[#allocation2 + $0x169] sm:$0xff] %vm225_vm0, %v4695_v42  ;;  %v4889_v42 = vld [vmem:[#allocation2 + $0x20] sm:$0xff] }
  0x47   : > { %330 = vst.msk [vmem:[#allocation2 + $0x151] sm:$0xff] %vm225_vm0, %v4698_v43  ;;  %v4793_v55 = vld [vmem:[#allocation2 + $0x141] sm:$0xff] }
  0x48   : > { %7026 = vst [vmem:[#allocation31_spill] sm:$0xff] %v4717_v47  ;;  %v4785_v54 = vld [vmem:[#allocation2 + $0x129] sm:$0xff] }
  0x49   : > { %328 = vst.msk [vmem:[#allocation2 + $0x139] sm:$0xff] %vm225_vm0, %v4717_v47  ;;  %v4911_v43 = vld [vmem:[#allocation2 + $0x68] sm:$0xff] }
  0x4a   : > { %253 = vst.msk [vmem:[#allocation2 + $0x11] sm:$0x1] %vm234_vm2, %v4448_v0  ;;  %v4769_v53 = vld [vmem:[#allocation2 + $0x111] sm:$0xff] }
  0x4b   : > { %498 = vrot.lane.b32.xlu2 %v4714_v46, %s4449_s24  ;;  %235 = vst.msk [vmem:[#allocation2] sm:$0x1] %vm234_vm2, %v4448_v0 }
  0x4c   : > { %236 = vst.msk [vmem:[#allocation2 + $0x18] sm:$0x1] %vm234_vm2, %v4448_v0 }
  0x4d   : > { %237 = vst.msk [vmem:[#allocation2 + $0x30] sm:$0x1] %vm234_vm2, %v4448_v0  ;;  %502 = vrot.lane.b32.xlu1 %v4729_v48, %s4449_s24  ;;  %506 = vrot.lane.b32.xlu0 %v4737_v49, %s4449_s24  ;;  %v4821_v58 = vld [vmem:[#allocation2 + $0x169] sm:$0xff] }
  0x4e   : > { %238 = vst.msk [vmem:[#allocation2 + $0x48] sm:$0x1] %vm234_vm2, %v4448_v0  ;;  %v4813_v57 = vld [vmem:[#allocation2 + $0x151] sm:$0xff] }
  0x4f   : > { %239 = vst.msk [vmem:[#allocation2 + $0x60] sm:$0x1] %vm234_vm2, %v4448_v0 }
  0x50   : > { %240 = vst.msk [vmem:[#allocation2 + $0x78] sm:$0x1] %vm234_vm2, %v4448_v0  ;;  %v4797_v56 = vld [vmem:[#allocation2 + $0x139] sm:$0xff] }
  0x51   : > { %241 = vst.msk [vmem:[#allocation2 + $0x90] sm:$0x1] %vm234_vm2, %v4448_v0  ;;  %v594_v63 = vld [vmem:[#allocation2 + $0xa] sm:$0xff] }
  0x52   : > { %242 = vst.msk [vmem:[#allocation2 + $0xa8] sm:$0x1] %vm234_vm2, %v4448_v0  ;;  %v336_v62 = vld [vmem:[#allocation2] sm:$0xff] }
  0x53   : > { %504 = vrot.lane.b32.xlu2 %v4741_v50, %s4449_s24  ;;  %243 = vst.msk [vmem:[#allocation2 + $0xc0] sm:$0x1] %vm234_vm2, %v4448_v0  ;;  %v4867_v19 = vld [vmem:[#allocation2 + $0x18] sm:$0xff] }
  0x54   : > { %244 = vst.msk [vmem:[#allocation2 + $0xd8] sm:$0x1] %vm234_vm2, %v4448_v0  ;;  %v4847_v61 = vld [vmem:[#allocation2 + $0x30] sm:$0xff] }
  0x55   : > { %245 = vst.msk [vmem:[#allocation2 + $0xf0] sm:$0x1] %vm234_vm2, %v4448_v0  ;;  %508 = vrot.lane.b32.xlu1 %v4757_v51, %s4449_s24  ;;  %512 = vrot.lane.b32.xlu0 %v4765_v52, %s4449_s24 }
  0x56   : > { %246 = vst.msk [vmem:[#allocation2 + $0x108] sm:$0x1] %vm234_vm2, %v4448_v0 }
  0x57   : > { %247 = vst.msk [vmem:[#allocation2 + $0x120] sm:$0x1] %vm234_vm2, %v4448_v0  ;;  %v4939_v30 = vld [vmem:[#allocation2 + $0x78] sm:$0xff] }
  0x58   : > { %248 = vst.msk [vmem:[#allocation2 + $0x138] sm:$0x1] %vm234_vm2, %v4448_v0  ;;  %v4937_v11 = vld [vmem:[#allocation2 + $0x90] sm:$0xff] }
  0x59   : > { %249 = vst.msk [vmem:[#allocation2 + $0x150] sm:$0x1] %vm234_vm2, %v4448_v0 }
  0x5a   : > { %250 = vst.msk [vmem:[#allocation2 + $0x168] sm:$0x1] %vm234_vm2, %v4448_v0 }
  0x5b   : > { %510 = vrot.lane.b32.xlu2 %v4769_v53, %s4449_s24  ;;  %251 = vst.msk [vmem:[#allocation2 + $0x180] sm:$0x1] %vm234_vm2, %v4448_v0  ;;  %v4991_v18 = vld [vmem:[#allocation2 + $0xd8] sm:$0xff] }
  0x5c   : > { %252 = vst.msk [vmem:[#allocation2 + $0x198] sm:$0x1] %vm234_vm2, %v4448_v0 }
  0x5d   : > { %254 = vst.msk [vmem:[#allocation2 + $0x29] sm:$0x1] %vm234_vm2, %v4448_v0  ;;  %514 = vrot.lane.b32.xlu1 %v4785_v54, %s4449_s24  ;;  %518 = vrot.lane.b32.xlu0 %v4793_v55, %s4449_s24 }
  0x5e   : > { %255 = vst.msk [vmem:[#allocation2 + $0x41] sm:$0x1] %vm234_vm2, %v4448_v0 }
  0x5f   : > { %256 = vst.msk [vmem:[#allocation2 + $0x59] sm:$0x1] %vm234_vm2, %v4448_v0 }
  0x60   : > { %257 = vst.msk [vmem:[#allocation2 + $0x71] sm:$0x1] %vm234_vm2, %v4448_v0 }
  0x61   : > { %258 = vst.msk [vmem:[#allocation2 + $0x89] sm:$0x1] %vm234_vm2, %v4448_v0 }
  0x62   : > { %259 = vst.msk [vmem:[#allocation2 + $0xa1] sm:$0x1] %vm234_vm2, %v4448_v0 }
  0x63   : > { %516 = vrot.lane.b32.xlu2 %v4797_v56, %s4449_s24  ;;  %260 = vst.msk [vmem:[#allocation2 + $0xb9] sm:$0x1] %vm234_vm2, %v4448_v0 }
  0x64   : > { %261 = vst.msk [vmem:[#allocation2 + $0xd1] sm:$0x1] %vm234_vm2, %v4448_v0  ;;  %v4906_v9 = vld [vmem:[#allocation2 + $0x22] sm:$0xff] }
  0x65   : > { %262 = vst.msk [vmem:[#allocation2 + $0xe9] sm:$0x1] %vm234_vm2, %v4448_v0  ;;  %520 = vrot.lane.b32.xlu1 %v4813_v57, %s4449_s24  ;;  %524 = vrot.lane.b32.xlu0 %v4821_v58, %s4449_s24 }
  0x66   : > { %263 = vst.msk [vmem:[#allocation2 + $0x101] sm:$0x1] %vm234_vm2, %v4448_v0  ;;  %v4892_v15 = vld [vmem:[#allocation2 + $0x52] sm:$0xff] }
  0x67   : > { %264 = vst.msk [vmem:[#allocation2 + $0x119] sm:$0x1] %vm234_vm2, %v4448_v0  ;;  %v4958_v31 = vld [vmem:[#allocation2 + $0x6a] sm:$0xff] }
  0x68   : > { %265 = vst.msk [vmem:[#allocation2 + $0x131] sm:$0x1] %vm234_vm2, %v4448_v0  ;;  %v4954_v41 = vld [vmem:[#allocation2 + $0x82] sm:$0xff] }
  0x69   : > { %266 = vst.msk [vmem:[#allocation2 + $0x149] sm:$0x1] %vm234_vm2, %v4448_v0  ;;  %v4943_v7 = vld [vmem:[#allocation2 + $0x9a] sm:$0xff] }
  0x6a   : > { %267 = vst.msk [vmem:[#allocation2 + $0x161] sm:$0x1] %vm234_vm2, %v4448_v0 }
  0x6b   : > { %268 = vst.msk [vmem:[#allocation2 + $0x179] sm:$0x1] %vm234_vm2, %v4448_v0 }
  0x6c   : > { %7027 = vst [vmem:[#allocation32_spill] sm:$0xff] %v4838_v59 }
  0x6d   : > { %269 = vst.msk [vmem:[#allocation2 + $0x191] sm:$0x1] %vm234_vm2, %v4448_v0  ;;  %659 = vrot.lane.b32.xlu0 %v594_v63, %s4450_s25  ;;  %v4878_v63 = vld [vmem:[#allocation2 + $0x60] sm:$0xff] }
  0x6e   : > { %7028 = vst [vmem:[#allocation33_spill] sm:$0xff] %v4843_v60 }
  0x6f   : > { %270 = vst.msk [vmem:[#allocation2 + $0x1a9] sm:$0x1] %vm234_vm2, %v4448_v0 }
  0x70   : > { %333 = vst.msk [vmem:[#allocation2 + $0x171] sm:$0xff] %vm225_vm0, %v4838_v59  ;;  %v593_v59 = vld [vmem:[#allocation2 + $0x2] sm:$0xff] }
  0x71   : > { %331 = vst.msk [vmem:[#allocation2 + $0x159] sm:$0xff] %vm225_vm0, %v4843_v60  ;;  %v4902_v60 = vld [vmem:[#allocation2 + $0x3a] sm:$0xff] }
  0x72   : > { %372 = vst.msk [vmem:[#allocation3 + $0x20] sm:$0xff] %vm225_vm0, %v4847_v61 }
  0x73   : > { %368 = vst.msk [vmem:[#allocation3] sm:$0xff] %vm225_vm0, %v336_v62  ;;  %v4871_v62 = vld [vmem:[#allocation2 + $0x32] sm:$0xff] }
  0x74   : > { %373 = vst.msk [vmem:[#allocation3 + $0x28] sm:$0xff] %vm225_vm0, %v4857_v6 }
  0x75   : > { %7030 = vst [vmem:[#allocation35_spill] sm:$0xff] %v4871_v62  ;;  %665 = vrot.lane.b32.xlu0 %v4871_v62, %s4450_s25 }
  0x76   : > { %369 = vst.msk [vmem:[#allocation3 + $0x8] sm:$0xff] %vm225_vm0, %v337_v29  ;;  %v4887_v29 = vld [vmem:[#allocation2 + $0x48] sm:$0xff] }
  0x77   : > { %v4861_v0 = vld [vmem:[#allocation2 + $0x171] sm:$0xff]  ;;  %370 = vst.msk [vmem:[#allocation3 + $0x10] sm:$0xff] %vm225_vm0, %v4867_v19 }
  0x78   : > { %7029 = vst [vmem:[#allocation34_spill] sm:$0xff] %v4861_v0  ;;  %526 = vrot.lane.b32.xlu1 %v4861_v0, %s4449_s24  ;;  %v4865_v14 = vld [vmem:[#allocation2 + $0x159] sm:$0xff]  ;;  %v5095_v0 = vld [vmem:[#allocation2 + $0x168] sm:$0xff] }
  0x79   : > { %522 = vrot.lane.b32.xlu2 %v4865_v14, %s4449_s24  ;;  %7031 = vst [vmem:[#allocation36_spill] sm:$0xff] %v4880_v13  ;;  %v5078_v62 = vld [vmem:[#allocation2 + $0x152] sm:$0xff] }
  0x7a   : > { %376 = vst.msk [vmem:[#allocation3 + $0x40] sm:$0xff] %vm225_vm0, %v4878_v63 }
  0x7b   : > { %7032 = vst [vmem:[#allocation37_spill] sm:$0xff] %v4892_v15 }
  0x7c   : > { %374 = vst.msk [vmem:[#allocation3 + $0x30] sm:$0xff] %vm225_vm0, %v4887_v29 }
  0x7d   : > { %v473_v23 = vpop.permute.xlu2 %472  ;;  %371 = vst.msk [vmem:[#allocation3 + $0x18] sm:$0xff] %vm225_vm0, %v4889_v42  ;;  %671 = vrot.lane.b32.xlu0 %v4892_v15, %s4450_s25  ;;  %v5051_v15 = vld [vmem:[#allocation2 + $0x12a] sm:$0xff] }
  0x7e   : > { %565 = vst.msk [vmem:[#allocation3 + $0x20] sm:$0xff] %vm560_vm3, %v473_v23  ;;  %v4900_v23 = vld [vmem:[#allocation2 + $0x80] sm:$0xff] }
  0x7f   : > { %7033 = vst [vmem:[#allocation38_spill] sm:$0xff] %v4902_v60 }
  0x80   : > { %661 = vrot.lane.b32.xlu1 %v4880_v13, %s4450_s25  ;;  %379 = vst.msk [vmem:[#allocation3 + $0x58] sm:$0xff] %vm225_vm0, %v4900_v23 }
  0x81   : > { %657 = vrot.lane.b32.xlu2 %v593_v59, %s4450_s25  ;;  %7034 = vst [vmem:[#allocation39_spill] sm:$0xff] %v4906_v9 }
  0x82   : > { %7035 = vst [vmem:[#allocation40_spill] sm:$0xff] %v4917_v36 }
  0x83   : > { %377 = vst.msk [vmem:[#allocation3 + $0x48] sm:$0xff] %vm225_vm0, %v4911_v43 }
  0x84   : > { %375 = vst.msk [vmem:[#allocation3 + $0x38] sm:$0xff] %vm225_vm0, %v4913_v16 }
  0x85   : > { %v475_v59 = vpop.permute.xlu2 %474  ;;  %677 = vrot.lane.b32.xlu0 %v4917_v36, %s4450_s25  ;;  %7036 = vst [vmem:[#allocation41_spill] sm:$0xff] %v4927_v10  ;;  %v5024_v36 = vld [vmem:[#allocation2 + $0x10a] sm:$0xff] }
  0x86   : > { %566 = vst.msk [vmem:[#allocation3 + $0x28] sm:$0xff] %vm560_vm3, %v475_v59  ;;  %v4925_v59 = vld [vmem:[#allocation2 + $0xa8] sm:$0xff] }
  0x87   : > { %382 = vst.msk [vmem:[#allocation3 + $0x70] sm:$0xff] %vm225_vm0, %v4925_v59  ;;  %v465_v47 = vpop.permute.xlu0 %464 }
  0x88   : > { %667 = vrot.lane.b32.xlu1 %v4902_v60, %s4450_s25  ;;  %7037 = vst [vmem:[#allocation42_spill] sm:$0xff] %v4931_v5 }
  0x89   : > { %663 = vrot.lane.b32.xlu2 %v4906_v9, %s4450_s25  ;;  %561 = vst.msk [vmem:[#allocation3] sm:$0xff] %vm560_vm3, %v465_v47  ;;  %v5097_v9 = vld [vmem:[#allocation2 + $0x150] sm:$0xff] }
  0x8a   : > { %7038 = vst [vmem:[#allocation43_spill] sm:$0xff] %v4943_v7 }
  0x8b   : > { %380 = vst.msk [vmem:[#allocation3 + $0x60] sm:$0xff] %vm225_vm0, %v4937_v11 }
  0x8c   : > { %378 = vst.msk [vmem:[#allocation3 + $0x50] sm:$0xff] %vm225_vm0, %v4939_v30 }
  0x8d   : > { %v481_v37 = vpop.permute.xlu2 %480  ;;  %683 = vrot.lane.b32.xlu0 %v4943_v7, %s4450_s25  ;;  %7039 = vst [vmem:[#allocation44_spill] sm:$0xff] %v4954_v41  ;;  %v5012_v7 = vld [vmem:[#allocation2 + $0xb2] sm:$0xff] }
  0x8e   : > { %569 = vst.msk [vmem:[#allocation3 + $0x40] sm:$0xff] %vm560_vm3, %v481_v37  ;;  %v4952_v37 = vld [vmem:[#allocation2 + $0xc8] sm:$0xff] }
  0x8f   : > { %v469_v47 = vpop.permute.xlu1 %468  ;;  %385 = vst.msk [vmem:[#allocation3 + $0x88] sm:$0xff] %vm225_vm0, %v4952_v37  ;;  %v467_v2 = vpop.permute.xlu0 %466 }
  0x90   : > { %673 = vrot.lane.b32.xlu1 %v4927_v10, %s4450_s25  ;;  %563 = vst.msk [vmem:[#allocation3 + $0x10] sm:$0xff] %vm560_vm3, %v469_v47  ;;  %v4966_v47 = vld [vmem:[#allocation2 + $0x98] sm:$0xff] }
  0x91   : > { %669 = vrot.lane.b32.xlu2 %v4931_v5, %s4450_s25  ;;  %7040 = vst [vmem:[#allocation45_spill] sm:$0xff] %v4958_v31  ;;  %v5089_v5 = vld [vmem:[#allocation2 + $0x122] sm:$0xff] }
  0x92   : > { %562 = vst.msk [vmem:[#allocation3 + $0x8] sm:$0xff] %vm560_vm3, %v467_v2 }
  0x93   : > { %7041 = vst [vmem:[#allocation46_spill] sm:$0xff] %v4970_v4 }
  0x94   : > { %383 = vst.msk [vmem:[#allocation3 + $0x78] sm:$0xff] %vm225_vm0, %v4964_v24 }
  0x95   : > { %v487_v8 = vpop.permute.xlu2 %486  ;;  %381 = vst.msk [vmem:[#allocation3 + $0x68] sm:$0xff] %vm225_vm0, %v4966_v47  ;;  %689 = vrot.lane.b32.xlu0 %v4970_v4, %s4450_s25  ;;  %v4997_v4 = vld [vmem:[#allocation2 + $0xe2] sm:$0xff] }
  0x96   : > { %572 = vst.msk [vmem:[#allocation3 + $0x58] sm:$0xff] %vm560_vm3, %v487_v8  ;;  %v4979_v8 = vld [vmem:[#allocation2 + $0xf0] sm:$0xff] }
  0x97   : > { %v471_v2 = vpop.permute.xlu1 %470  ;;  %7042 = vst [vmem:[#allocation47_spill] sm:$0xff] %v4981_v35  ;;  %v477_v3 = vpop.permute.xlu0 %476 }
  0x98   : > { %679 = vrot.lane.b32.xlu1 %v4954_v41, %s4450_s25  ;;  %564 = vst.msk [vmem:[#allocation3 + $0x18] sm:$0xff] %vm560_vm3, %v471_v2  ;;  %v4993_v2 = vld [vmem:[#allocation2 + $0xc0] sm:$0xff] }
  0x99   : > { %675 = vrot.lane.b32.xlu2 %v4958_v31, %s4450_s25  ;;  %388 = vst.msk [vmem:[#allocation3 + $0xa0] sm:$0xff] %vm225_vm0, %v4979_v8  ;;  %v5066_v31 = vld [vmem:[#allocation2 + $0xfa] sm:$0xff] }
  0x9a   : > { %7043 = vst [vmem:[#allocation48_spill] sm:$0xff] %v4985_v25 }
  0x9b   : > { %567 = vst.msk [vmem:[#allocation3 + $0x30] sm:$0xff] %vm560_vm3, %v477_v3 }
  0x9c   : > { %7044 = vst [vmem:[#allocation49_spill] sm:$0xff] %v4997_v4 }
  0x9d   : > { %v493_v1 = vpop.permute.xlu2 %492  ;;  %386 = vst.msk [vmem:[#allocation3 + $0x90] sm:$0xff] %vm225_vm0, %v4991_v18  ;;  %695 = vrot.lane.b32.xlu0 %v4997_v4, %s4450_s25  ;;  %v5018_v4 = vld [vmem:[#allocation2 + $0xf8] sm:$0xff] }
  0x9e   : > { %575 = vst.msk [vmem:[#allocation3 + $0x70] sm:$0xff] %vm560_vm3, %v493_v1  ;;  %v5006_v1 = vld [vmem:[#allocation2 + $0x110] sm:$0xff] }
  0x9f   : > { %384 = vst.msk [vmem:[#allocation3 + $0x80] sm:$0xff] %vm225_vm0, %v4993_v2  ;;  %v479_v3 = vpop.permute.xlu1 %478  ;;  %v483_v41 = vpop.permute.xlu0 %482 }
  0xa0   : > { %685 = vrot.lane.b32.xlu1 %v4981_v35, %s4450_s25  ;;  %568 = vst.msk [vmem:[#allocation3 + $0x38] sm:$0xff] %vm560_vm3, %v479_v3  ;;  %v5008_v35 = vld [vmem:[#allocation2 + $0xca] sm:$0xff]  ;;  %v5020_v3 = vld [vmem:[#allocation2 + $0xe0] sm:$0xff] }
  0xa1   : > { %681 = vrot.lane.b32.xlu2 %v4985_v25, %s4450_s25  ;;  %7045 = vst [vmem:[#allocation50_spill] sm:$0xff] %v5008_v35  ;;  %v5039_v25 = vld [vmem:[#allocation2 + $0xda] sm:$0xff] }
  0xa2   : > { %391 = vst.msk [vmem:[#allocation3 + $0xb8] sm:$0xff] %vm225_vm0, %v5006_v1 }
  0xa3   : > { %7046 = vst [vmem:[#allocation51_spill] sm:$0xff] %v5012_v7 }
  0xa4   : > { %570 = vst.msk [vmem:[#allocation3 + $0x48] sm:$0xff] %vm560_vm3, %v483_v41 }
  0xa5   : > { %v499_v10 = vpop.permute.xlu2 %498  ;;  %7047 = vst [vmem:[#allocation52_spill] sm:$0xff] %v5024_v36  ;;  %701 = vrot.lane.b32.xlu0 %v5024_v36, %s4450_s25  ;;  %v5045_v36 = vld [vmem:[#allocation2 + $0x120] sm:$0xff] }
  0xa6   : > { %578 = vst.msk [vmem:[#allocation3 + $0x88] sm:$0xff] %vm560_vm3, %v499_v10  ;;  %v5033_v10 = vld [vmem:[#allocation2 + $0x138] sm:$0xff] }
  0xa7   : > { %389 = vst.msk [vmem:[#allocation3 + $0xa8] sm:$0xff] %vm225_vm0, %v5018_v4  ;;  %v485_v41 = vpop.permute.xlu1 %484 }
  0xa8   : > { %691 = vrot.lane.b32.xlu1 %v5008_v35, %s4450_s25  ;;  %387 = vst.msk [vmem:[#allocation3 + $0x98] sm:$0xff] %vm225_vm0, %v5020_v3  ;;  %v5035_v35 = vld [vmem:[#allocation2 + $0xf2] sm:$0xff] }
  0xa9   : > { %687 = vrot.lane.b32.xlu2 %v5012_v7, %s4450_s25  ;;  %571 = vst.msk [vmem:[#allocation3 + $0x50] sm:$0xff] %vm560_vm3, %v485_v41  ;;  %v489_v7 = vpop.permute.xlu0 %488  ;;  %v5047_v41 = vld [vmem:[#allocation2 + $0x108] sm:$0xff] }
  0xaa   : > { %7048 = vst [vmem:[#allocation53_spill] sm:$0xff] %v5035_v35 }
  0xab   : > { %394 = vst.msk [vmem:[#allocation3 + $0xd0] sm:$0xff] %vm225_vm0, %v5033_v10 }
  0xac   : > { %7049 = vst [vmem:[#allocation54_spill] sm:$0xff] %v5039_v25 }
  0xad   : > { %v505_v60 = vpop.permute.xlu2 %504  ;;  %573 = vst.msk [vmem:[#allocation3 + $0x60] sm:$0xff] %vm560_vm3, %v489_v7  ;;  %707 = vrot.lane.b32.xlu0 %v5051_v15, %s4450_s25 }
  0xae   : > { %581 = vst.msk [vmem:[#allocation3 + $0xa0] sm:$0xff] %vm560_vm3, %v505_v60  ;;  %v5060_v60 = vld [vmem:[#allocation2 + $0x158] sm:$0xff] }
  0xaf   : > { %7050 = vst [vmem:[#allocation55_spill] sm:$0xff] %v5051_v15  ;;  %v491_v7 = vpop.permute.xlu1 %490  ;;  %v5072_v15 = vld [vmem:[#allocation2 + $0x140] sm:$0xff] }
  0xb0   : > { %697 = vrot.lane.b32.xlu1 %v5035_v35, %s4450_s25  ;;  %392 = vst.msk [vmem:[#allocation3 + $0xc0] sm:$0xff] %vm225_vm0, %v5045_v36  ;;  %v5062_v35 = vld [vmem:[#allocation2 + $0x112] sm:$0xff] }
  0xb1   : > { %693 = vrot.lane.b32.xlu2 %v5039_v25, %s4450_s25  ;;  %390 = vst.msk [vmem:[#allocation3 + $0xb0] sm:$0xff] %vm225_vm0, %v5047_v41  ;;  %v495_v25 = vpop.permute.xlu0 %494 }
  0xb2   : > { %574 = vst.msk [vmem:[#allocation3 + $0x68] sm:$0xff] %vm560_vm3, %v491_v7  ;;  %v5074_v7 = vld [vmem:[#allocation2 + $0x128] sm:$0xff] }
  0xb3   : > { %7051 = vst [vmem:[#allocation56_spill] sm:$0xff] %v5062_v35 }
  0xb4   : > { %397 = vst.msk [vmem:[#allocation3 + $0xe8] sm:$0xff] %vm225_vm0, %v5060_v60 }
  0xb5   : > { %7052 = vst [vmem:[#allocation57_spill] sm:$0xff] %v5066_v31  ;;  %v511_v13 = vpop.permute.xlu2 %510  ;;  %713 = vrot.lane.b32.xlu0 %v5078_v62, %s4450_s25 }
  0xb6   : > { %576 = vst.msk [vmem:[#allocation3 + $0x78] sm:$0xff] %vm560_vm3, %v495_v25 }
  0xb7   : > { %584 = vst.msk [vmem:[#allocation3 + $0xb8] sm:$0xff] %vm560_vm3, %v511_v13  ;;  %v497_v25 = vpop.permute.xlu1 %496  ;;  %v5087_v13 = vld [vmem:[#allocation2 + $0x13a] sm:$0xff] }
  0xb8   : > { %703 = vrot.lane.b32.xlu1 %v5062_v35, %s4450_s25  ;;  %7053 = vst [vmem:[#allocation58_spill] sm:$0xff] %v5078_v62  ;;  %v5112_v62 = vld [vmem:[#allocation2 + $0x142] sm:$0xff] }
  0xb9   : > { %699 = vrot.lane.b32.xlu2 %v5066_v31, %s4450_s25  ;;  %395 = vst.msk [vmem:[#allocation3 + $0xd8] sm:$0xff] %vm225_vm0, %v5072_v15  ;;  %v501_v35 = vpop.permute.xlu0 %500 }
  0xba   : > { %393 = vst.msk [vmem:[#allocation3 + $0xc8] sm:$0xff] %vm225_vm0, %v5074_v7 }
  0xbb   : > { %577 = vst.msk [vmem:[#allocation3 + $0x80] sm:$0xff] %vm560_vm3, %v497_v25  ;;  %v5101_v25 = vld [vmem:[#allocation2 + $0x172] sm:$0xff] }
  0xbc   : > { %7054 = vst [vmem:[#allocation59_spill] sm:$0xff] %v5087_v13 }
  0xbd   : > { %7055 = vst [vmem:[#allocation60_spill] sm:$0xff] %v5089_v5  ;;  %v517_v31 = vpop.permute.xlu2 %516  ;;  %719 = vrot.lane.b32.xlu0 %v5101_v25, %s4450_s25 }
  0xbe   : > { %579 = vst.msk [vmem:[#allocation3 + $0x90] sm:$0xff] %vm560_vm3, %v501_v35 }
  0xbf   : > { %587 = vst.msk [vmem:[#allocation3 + $0xd0] sm:$0xff] %vm560_vm3, %v517_v31  ;;  %v503_v35 = vpop.permute.xlu1 %502  ;;  %v5110_v31 = vld [vmem:[#allocation2 + $0x15a] sm:$0xff] }
  0xc0   : > { %709 = vrot.lane.b32.xlu1 %v5087_v13, %s4450_s25  ;;  %7056 = vst [vmem:[#allocation61_spill] sm:$0xff] %v5101_v25 }
  0xc1   : > { %705 = vrot.lane.b32.xlu2 %v5089_v5, %s4450_s25  ;;  %398 = vst.msk [vmem:[#allocation3 + $0xf0] sm:$0xff] %vm225_vm0, %v5095_v0  ;;  %v507_v13 = vpop.permute.xlu0 %506  ;;  %v5117_v5 = vld [vmem:[#allocation2 + $0x170] sm:$0xff] }
  0xc2   : > { %396 = vst.msk [vmem:[#allocation3 + $0xe0] sm:$0xff] %vm225_vm0, %v5097_v9 }
  0xc3   : > { %580 = vst.msk [vmem:[#allocation3 + $0x98] sm:$0xff] %vm560_vm3, %v503_v35 }
  0xc4   : > { %7057 = vst [vmem:[#allocation62_spill] sm:$0xff] %v5110_v31 }
  0xc5   : > { %7058 = vst [vmem:[#allocation63_spill] sm:$0xff] %v5112_v62  ;;  %854 = vrot.lane.b32.xlu0 %v4847_v61, %s4451_s26 }
  0xc6   : > { %582 = vst.msk [vmem:[#allocation3 + $0xa8] sm:$0xff] %vm560_vm3, %v507_v13  ;;  %v5126_v13 = vld [vmem:[#allocation2 + $0x16a] sm:$0xff] }
  0xc7   : > { %399 = vst.msk [vmem:[#allocation3 + $0xf8] sm:$0xff] %vm225_vm0, %v5117_v5  ;;  %v509_v25 = vpop.permute.xlu1 %508 }
  0xc8   : > { %715 = vrot.lane.b32.xlu1 %v5110_v31, %s4450_s25  ;;  %583 = vst.msk [vmem:[#allocation3 + $0xb0] sm:$0xff] %vm560_vm3, %v509_v25 }
  0xc9   : > { %711 = vrot.lane.b32.xlu2 %v5112_v62, %s4450_s25  ;;  %v513_v35 = vpop.permute.xlu0 %512 }
  0xca   : > { %585 = vst.msk [vmem:[#allocation3 + $0xc0] sm:$0xff] %vm560_vm3, %v513_v35 }
  0xcd   : > { %860 = vrot.lane.b32.xlu0 %v4913_v16, %s4451_s26 }
  0xcf   : > { %v515_v62 = vpop.permute.xlu1 %514 }
  0xd0   : > { %850 = vrot.lane.b32.xlu1 %v4867_v19, %s4451_s26  ;;  %586 = vst.msk [vmem:[#allocation3 + $0xc8] sm:$0xff] %vm560_vm3, %v515_v62 }
  0xd1   : > { %717 = vrot.lane.b32.xlu2 %v5126_v13, %s4450_s25  ;;  %v519_v61 = vpop.permute.xlu0 %518 }
  0xd2   : > { %588 = vst.msk [vmem:[#allocation3 + $0xd8] sm:$0xff] %vm560_vm3, %v519_v61 }
  0xd3   : > { %v523_v31 = vpop.permute.xlu2 %522 }
  0xd4   : > { %590 = vst.msk [vmem:[#allocation3 + $0xe8] sm:$0xff] %vm560_vm3, %v523_v31 }
  0xd5   : > { %866 = vrot.lane.b32.xlu0 %v4939_v30, %s4451_s26 }
  0xd7   : > { %v521_v25 = vpop.permute.xlu1 %520 }
  0xd8   : > { %856 = vrot.lane.b32.xlu1 %v4857_v6, %s4451_s26  ;;  %589 = vst.msk [vmem:[#allocation3 + $0xe0] sm:$0xff] %vm560_vm3, %v521_v25  ;;  %v5174_v25 = vld [vmem:[%s4512_s23 + $0xf0] sm:$0xff] }
  0xd9   : > { %852 = vrot.lane.b32.xlu2 %v4889_v42, %s4451_s26  ;;  %v525_v62 = vpop.permute.xlu0 %524  ;;  %7059 = vst [vmem:[#allocation64_spill] sm:$0xff] %v5174_v25 }
  0xda   : > { %591 = vst.msk [vmem:[#allocation3 + $0xf0] sm:$0xff] %vm560_vm3, %v525_v62 }
  0xdb   : > { %v658_v19 = vpop.permute.xlu2 %657  ;;  %334 = vst.msk [vmem:[#allocation2 + $0x181] sm:$0xff] %vm225_vm0, %v5174_v25 }
  0xdc   : > { %754 = vst.msk [vmem:[#allocation3] sm:$0xff] %vm753_vm4, %v658_v19 }
  0xdd   : > { %872 = vrot.lane.b32.xlu0 %v4966_v47, %s4451_s26 }
  0xe0   : > { %862 = vrot.lane.b32.xlu1 %v4878_v63, %s4451_s26 }
  0xe1   : > { %858 = vrot.lane.b32.xlu2 %v4887_v29, %s4451_s26  ;;  %v660_v6 = vpop.permute.xlu0 %659 }
  0xe2   : > { %755 = vst.msk [vmem:[#allocation3 + $0x8] sm:$0xff] %vm753_vm4, %v660_v6 }
  0xe3   : > { %v664_v42 = vpop.permute.xlu2 %663 }
  0xe4   : > { %757 = vst.msk [vmem:[#allocation3 + $0x18] sm:$0xff] %vm753_vm4, %v664_v42 }
  0xe5   : > { %878 = vrot.lane.b32.xlu0 %v4993_v2, %s4451_s26 }
  0xe8   : > { %868 = vrot.lane.b32.xlu1 %v4900_v23, %s4451_s26 }
  0xe9   : > { %864 = vrot.lane.b32.xlu2 %v4911_v43, %s4451_s26  ;;  %v666_v35 = vpop.permute.xlu0 %665 }
  0xea   : > { %v527_v31 = vpop.permute.xlu1 %526  ;;  %758 = vst.msk [vmem:[#allocation3 + $0x20] sm:$0xff] %vm753_vm4, %v666_v35 }
  0xeb   : > { %592 = vst.msk [vmem:[#allocation3 + $0xf8] sm:$0xff] %vm560_vm3, %v527_v31  ;;  %v670_v63 = vpop.permute.xlu2 %669  ;;  %v5196_v31 = vld [vmem:[%s4512_s23 + $0xf8] sm:$0xff] }
  0xec   : > { %760 = vst.msk [vmem:[#allocation3 + $0x30] sm:$0xff] %vm753_vm4, %v670_v63 }
  0xed   : > { %884 = vrot.lane.b32.xlu0 %v5020_v3, %s4451_s26  ;;  %7060 = vst [vmem:[#allocation65_spill] sm:$0xff] %v5196_v31 }
  0xee   : > { %335 = vst.msk [vmem:[#allocation2 + $0x189] sm:$0xff] %vm225_vm0, %v5196_v31 }
  0xf0   : > { %874 = vrot.lane.b32.xlu1 %v4925_v59, %s4451_s26 }
  0xf1   : > { %870 = vrot.lane.b32.xlu2 %v4937_v11, %s4451_s26  ;;  %v672_v19 = vpop.permute.xlu0 %671 }
  0xf2   : > { %v662_v23 = vpop.permute.xlu1 %661  ;;  %761 = vst.msk [vmem:[#allocation3 + $0x38] sm:$0xff] %vm753_vm4, %v672_v19 }
  0xf3   : > { %756 = vst.msk [vmem:[#allocation3 + $0x10] sm:$0xff] %vm753_vm4, %v662_v23  ;;  %v676_v61 = vpop.permute.xlu2 %675 }
  0xf4   : > { %763 = vst.msk [vmem:[#allocation3 + $0x48] sm:$0xff] %vm753_vm4, %v676_v61 }
  0xf5   : > { %890 = vrot.lane.b32.xlu0 %v5047_v41, %s4451_s26 }
  0xf8   : > { %880 = vrot.lane.b32.xlu1 %v4952_v37, %s4451_s26 }
  0xf9   : > { %876 = vrot.lane.b32.xlu2 %v4964_v24, %s4451_s26  ;;  %v678_v42 = vpop.permute.xlu0 %677 }
  0xfa   : > { %v668_v59 = vpop.permute.xlu1 %667  ;;  %764 = vst.msk [vmem:[#allocation3 + $0x50] sm:$0xff] %vm753_vm4, %v678_v42 }
  0xfb   : > { %759 = vst.msk [vmem:[#allocation3 + $0x28] sm:$0xff] %vm753_vm4, %v668_v59  ;;  %v682_v62 = vpop.permute.xlu2 %681 }
  0xfc   : > { %766 = vst.msk [vmem:[#allocation3 + $0x60] sm:$0xff] %vm753_vm4, %v682_v62  ;;  %v5227_v62 = vld [vmem:[#allocation2 + $0x180] sm:$0xff] }
  0xfd   : > { %896 = vrot.lane.b32.xlu0 %v5074_v7, %s4451_s26 }
 0x100   : > { %886 = vrot.lane.b32.xlu1 %v4979_v8, %s4451_s26 }
 0x101   : > { %882 = vrot.lane.b32.xlu2 %v4991_v18, %s4451_s26  ;;  %v684_v63 = vpop.permute.xlu0 %683 }
 0x102   : > { %v674_v37 = vpop.permute.xlu1 %673  ;;  %767 = vst.msk [vmem:[#allocation3 + $0x68] sm:$0xff] %vm753_vm4, %v684_v63  ;;  %v5238_v63 = vld [vmem:[#allocation2 + $0x188] sm:$0xff] }
 0x103   : > { %762 = vst.msk [vmem:[#allocation3 + $0x40] sm:$0xff] %vm753_vm4, %v674_v37  ;;  %v688_v6 = vpop.permute.xlu2 %687 }
 0x104   : > { %769 = vst.msk [vmem:[#allocation3 + $0x78] sm:$0xff] %vm753_vm4, %v688_v6 }
 0x105   : > { %902 = vrot.lane.b32.xlu0 %v5097_v9, %s4451_s26 }
 0x108   : > { %892 = vrot.lane.b32.xlu1 %v5006_v1, %s4451_s26 }
 0x109   : > { %888 = vrot.lane.b32.xlu2 %v5018_v4, %s4451_s26  ;;  %v690_v23 = vpop.permute.xlu0 %689 }
 0x10a   : > { %v680_v8 = vpop.permute.xlu1 %679  ;;  %770 = vst.msk [vmem:[#allocation3 + $0x80] sm:$0xff] %vm753_vm4, %v690_v23 }
 0x10b   : > { %765 = vst.msk [vmem:[#allocation3 + $0x58] sm:$0xff] %vm753_vm4, %v680_v8  ;;  %v694_v35 = vpop.permute.xlu2 %693 }
 0x10c   : > { %772 = vst.msk [vmem:[#allocation3 + $0x90] sm:$0xff] %vm753_vm4, %v694_v35 }
 0x10d   : > { %908 = vrot.lane.b32.xlu0 %v5117_v5, %s4451_s26 }
 0x110   : > { %898 = vrot.lane.b32.xlu1 %v5033_v10, %s4451_s26 }
 0x111   : > { %894 = vrot.lane.b32.xlu2 %v5045_v36, %s4451_s26  ;;  %v696_v19 = vpop.permute.xlu0 %695 }
 0x112   : > { %v686_v1 = vpop.permute.xlu1 %685  ;;  %773 = vst.msk [vmem:[#allocation3 + $0x98] sm:$0xff] %vm753_vm4, %v696_v19  ;;  %v5332_v19 = vld [vmem:[#allocation2 + $0x189] sm:$0xff] }
 0x113   : > { %768 = vst.msk [vmem:[#allocation3 + $0x70] sm:$0xff] %vm753_vm4, %v686_v1  ;;  %v700_v61 = vpop.permute.xlu2 %699 }
 0x114   : > { %775 = vst.msk [vmem:[#allocation3 + $0xa8] sm:$0xff] %vm753_vm4, %v700_v61  ;;  %v7061_v61 = vld [vmem:[#allocation39_spill] sm:$0xff] }
 0x115   : > { %1043 = vrot.lane.b32.xlu0 %v4560_v12, %s4452_s27 }
 0x118   : > { %904 = vrot.lane.b32.xlu1 %v5060_v60, %s4451_s26 }
 0x119   : > { %900 = vrot.lane.b32.xlu2 %v5072_v15, %s4451_s26  ;;  %v702_v42 = vpop.permute.xlu0 %701 }
 0x11a   : > { %v692_v10 = vpop.permute.xlu1 %691  ;;  %776 = vst.msk [vmem:[#allocation3 + $0xb0] sm:$0xff] %vm753_vm4, %v702_v42  ;;  %v7063_v42 = vld [vmem:[#allocation42_spill] sm:$0xff] }
 0x11b   : > { %771 = vst.msk [vmem:[#allocation3 + $0x88] sm:$0xff] %vm753_vm4, %v692_v10  ;;  %v706_v59 = vpop.permute.xlu2 %705 }
 0x11c   : > { %778 = vst.msk [vmem:[#allocation3 + $0xc0] sm:$0xff] %vm753_vm4, %v706_v59 }
 0x11d   : > { %1049 = vrot.lane.b32.xlu0 %v4606_v22, %s4452_s27 }
 0x120   : > { %910 = vrot.lane.b32.xlu1 %v5227_v62, %s4451_s26 }
 0x121   : > { %906 = vrot.lane.b32.xlu2 %v5095_v0, %s4451_s26  ;;  %v708_v12 = vpop.permute.xlu0 %707 }
 0x122   : > { %v698_v37 = vpop.permute.xlu1 %697  ;;  %779 = vst.msk [vmem:[#allocation3 + $0xc8] sm:$0xff] %vm753_vm4, %v708_v12  ;;  %v7065_v12 = vld [vmem:[#allocation36_spill] sm:$0xff] }
 0x123   : > { %774 = vst.msk [vmem:[#allocation3 + $0xa0] sm:$0xff] %vm753_vm4, %v698_v37  ;;  %v712_v6 = vpop.permute.xlu2 %711 }
 0x124   : > { %781 = vst.msk [vmem:[#allocation3 + $0xd8] sm:$0xff] %vm753_vm4, %v712_v6  ;;  %v7064_v6 = vld [vmem:[#allocation35_spill] sm:$0xff] }
 0x125   : > { %1055 = vrot.lane.b32.xlu0 %v4633_v28, %s4452_s27 }
 0x128   : > { %1045 = vrot.lane.b32.xlu1 %v4596_v20, %s4452_s27 }
 0x129   : > { %912 = vrot.lane.b32.xlu2 %v5238_v63, %s4451_s26  ;;  %v714_v22 = vpop.permute.xlu0 %713 }
 0x12a   : > { %v704_v8 = vpop.permute.xlu1 %703  ;;  %782 = vst.msk [vmem:[#allocation3 + $0xe0] sm:$0xff] %vm753_vm4, %v714_v22  ;;  %v7066_v22 = vld [vmem:[#allocation45_spill] sm:$0xff] }
 0x12b   : > { %777 = vst.msk [vmem:[#allocation3 + $0xb8] sm:$0xff] %vm753_vm4, %v704_v8  ;;  %v718_v35 = vpop.permute.xlu2 %717 }
 0x12c   : > { %784 = vst.msk [vmem:[#allocation3 + $0xf0] sm:$0xff] %vm753_vm4, %v718_v35 }
 0x12d   : > { %1061 = vrot.lane.b32.xlu0 %v4660_v34, %s4452_s27 }
 0x130   : > { %1051 = vrot.lane.b32.xlu1 %v4602_v21, %s4452_s27 }
 0x131   : > { %1047 = vrot.lane.b32.xlu2 %v4579_v17, %s4452_s27  ;;  %v720_v28 = vpop.permute.xlu0 %719 }
 0x132   : > { %v710_v20 = vpop.permute.xlu1 %709  ;;  %785 = vst.msk [vmem:[#allocation3 + $0xf8] sm:$0xff] %vm753_vm4, %v720_v28  ;;  %v7068_v28 = vld [vmem:[#allocation38_spill] sm:$0xff] }
 0x133   : > { %780 = vst.msk [vmem:[#allocation3 + $0xd0] sm:$0xff] %vm753_vm4, %v710_v20  ;;  %v853_v23 = vpop.permute.xlu2 %852 }
 0x134   : > { %948 = vst.msk [vmem:[#allocation3 + $0x8] sm:$0xff] %vm946_vm5, %v853_v23  ;;  %v7067_v23 = vld [vmem:[#allocation37_spill] sm:$0xff] }
 0x135   : > { %1067 = vrot.lane.b32.xlu0 %v4687_v40, %s4452_s27 }
 0x138   : > { %1057 = vrot.lane.b32.xlu1 %v4629_v27, %s4452_s27 }
 0x139   : > { %1053 = vrot.lane.b32.xlu2 %v4627_v26, %s4452_s27  ;;  %v855_v34 = vpop.permute.xlu0 %854 }
 0x13a   : > { %v716_v17 = vpop.permute.xlu1 %715  ;;  %949 = vst.msk [vmem:[#allocation3 + $0x10] sm:$0xff] %vm946_vm5, %v855_v34  ;;  %v7069_v34 = vld [vmem:[#allocation48_spill] sm:$0xff] }
 0x13b   : > { %783 = vst.msk [vmem:[#allocation3 + $0xe8] sm:$0xff] %vm753_vm4, %v716_v17  ;;  %v859_v21 = vpop.permute.xlu2 %858 }
 0x13c   : > { %951 = vst.msk [vmem:[#allocation3 + $0x20] sm:$0xff] %vm946_vm5, %v859_v21 }
 0x13d   : > { %1073 = vrot.lane.b32.xlu0 %v4714_v46, %s4452_s27 }
 0x140   : > { %1063 = vrot.lane.b32.xlu1 %v4656_v33, %s4452_s27 }
 0x141   : > { %1059 = vrot.lane.b32.xlu2 %v4654_v32, %s4452_s27  ;;  %v861_v40 = vpop.permute.xlu0 %860 }
 0x142   : > { %v851_v27 = vpop.permute.xlu1 %850  ;;  %952 = vst.msk [vmem:[#allocation3 + $0x28] sm:$0xff] %vm946_vm5, %v861_v40  ;;  %v7071_v40 = vld [vmem:[#allocation41_spill] sm:$0xff] }
 0x143   : > { %947 = vst.msk [vmem:[#allocation3] sm:$0xff] %vm946_vm5, %v851_v27  ;;  %v865_v26 = vpop.permute.xlu2 %864 }
 0x144   : > { %954 = vst.msk [vmem:[#allocation3 + $0x38] sm:$0xff] %vm946_vm5, %v865_v26  ;;  %v7070_v26 = vld [vmem:[#allocation40_spill] sm:$0xff] }
 0x145   : > { %1079 = vrot.lane.b32.xlu0 %v4741_v50, %s4452_s27 }
 0x148   : > { %1069 = vrot.lane.b32.xlu1 %v4683_v39, %s4452_s27 }
 0x149   : > { %1065 = vrot.lane.b32.xlu2 %v4681_v38, %s4452_s27  ;;  %v867_v46 = vpop.permute.xlu0 %866 }
 0x14a   : > { %v857_v33 = vpop.permute.xlu1 %856  ;;  %955 = vst.msk [vmem:[#allocation3 + $0x40] sm:$0xff] %vm946_vm5, %v867_v46  ;;  %v7072_v46 = vld [vmem:[#allocation51_spill] sm:$0xff] }
 0x14b   : > { %950 = vst.msk [vmem:[#allocation3 + $0x18] sm:$0xff] %vm946_vm5, %v857_v33  ;;  %v871_v32 = vpop.permute.xlu2 %870 }
 0x14c   : > { %957 = vst.msk [vmem:[#allocation3 + $0x50] sm:$0xff] %vm946_vm5, %v871_v32 }
 0x14d   : > { %1085 = vrot.lane.b32.xlu0 %v4769_v53, %s4452_s27 }
 0x150   : > { %1075 = vrot.lane.b32.xlu1 %v4710_v45, %s4452_s27 }
 0x151   : > { %1071 = vrot.lane.b32.xlu2 %v4708_v44, %s4452_s27  ;;  %v873_v50 = vpop.permute.xlu0 %872 }
 0x152   : > { %v863_v39 = vpop.permute.xlu1 %862  ;;  %958 = vst.msk [vmem:[#allocation3 + $0x58] sm:$0xff] %vm946_vm5, %v873_v50  ;;  %v7074_v50 = vld [vmem:[#allocation44_spill] sm:$0xff] }
 0x153   : > { %953 = vst.msk [vmem:[#allocation3 + $0x30] sm:$0xff] %vm946_vm5, %v863_v39  ;;  %v877_v38 = vpop.permute.xlu2 %876 }
 0x154   : > { %960 = vst.msk [vmem:[#allocation3 + $0x68] sm:$0xff] %vm946_vm5, %v877_v38  ;;  %v7073_v38 = vld [vmem:[#allocation43_spill] sm:$0xff] }
 0x155   : > { %1091 = vrot.lane.b32.xlu0 %v4797_v56, %s4452_s27 }
 0x158   : > { %1081 = vrot.lane.b32.xlu1 %v4737_v49, %s4452_s27 }
 0x159   : > { %1077 = vrot.lane.b32.xlu2 %v4729_v48, %s4452_s27  ;;  %v879_v53 = vpop.permute.xlu0 %878 }
 0x15a   : > { %v869_v45 = vpop.permute.xlu1 %868  ;;  %961 = vst.msk [vmem:[#allocation3 + $0x70] sm:$0xff] %vm946_vm5, %v879_v53  ;;  %v7075_v53 = vld [vmem:[#allocation54_spill] sm:$0xff] }
 0x15b   : > { %956 = vst.msk [vmem:[#allocation3 + $0x48] sm:$0xff] %vm946_vm5, %v869_v45  ;;  %v883_v44 = vpop.permute.xlu2 %882 }
 0x15c   : > { %963 = vst.msk [vmem:[#allocation3 + $0x80] sm:$0xff] %vm946_vm5, %v883_v44 }
 0x15d   : > { %1097 = vrot.lane.b32.xlu0 %v4865_v14, %s4452_s27 }
 0x160   : > { %1087 = vrot.lane.b32.xlu1 %v4765_v52, %s4452_s27  ;;  %v5317_v52 = vld [vmem:[#allocation2 + $0x181] sm:$0xff] }
 0x161   : > { %1083 = vrot.lane.b32.xlu2 %v4757_v51, %s4452_s27  ;;  %v885_v56 = vpop.permute.xlu0 %884 }
 0x162   : > { %v875_v49 = vpop.permute.xlu1 %874  ;;  %964 = vst.msk [vmem:[#allocation3 + $0x88] sm:$0xff] %vm946_vm5, %v885_v56  ;;  %v7077_v56 = vld [vmem:[#allocation47_spill] sm:$0xff] }
 0x163   : > { %959 = vst.msk [vmem:[#allocation3 + $0x60] sm:$0xff] %vm946_vm5, %v875_v49  ;;  %v889_v48 = vpop.permute.xlu2 %888 }
 0x164   : > { %966 = vst.msk [vmem:[#allocation3 + $0x98] sm:$0xff] %vm946_vm5, %v889_v48  ;;  %v7076_v48 = vld [vmem:[#allocation46_spill] sm:$0xff] }
 0x165   : > { %1103 = vrot.lane.b32.xlu0 %v5317_v52, %s4452_s27 }
 0x168   : > { %1093 = vrot.lane.b32.xlu1 %v4793_v55, %s4452_s27 }
 0x169   : > { %1089 = vrot.lane.b32.xlu2 %v4785_v54, %s4452_s27  ;;  %v891_v14 = vpop.permute.xlu0 %890 }
 0x16a   : > { %v881_v51 = vpop.permute.xlu1 %880  ;;  %967 = vst.msk [vmem:[#allocation3 + $0xa0] sm:$0xff] %vm946_vm5, %v891_v14  ;;  %v7078_v14 = vld [vmem:[#allocation57_spill] sm:$0xff] }
 0x16b   : > { %962 = vst.msk [vmem:[#allocation3 + $0x78] sm:$0xff] %vm946_vm5, %v881_v51  ;;  %v895_v1 = vpop.permute.xlu2 %894 }
 0x16c   : > { %969 = vst.msk [vmem:[#allocation3 + $0xb0] sm:$0xff] %vm946_vm5, %v895_v1 }
 0x16d   : > { %1238 = vrot.lane.b32.xlu0 %v7061_v61, %s4453_s28  ;;  %v7080_v61 = vld [vmem:[#allocation50_spill] sm:$0xff] }
 0x170   : > { %1099 = vrot.lane.b32.xlu1 %v4821_v58, %s4452_s27 }
 0x171   : > { %1095 = vrot.lane.b32.xlu2 %v4813_v57, %s4452_s27  ;;  %v897_v10 = vpop.permute.xlu0 %896  ;;  %v7062_v57 = vld [vmem:[#allocation34_spill] sm:$0xff] }
 0x172   : > { %v887_v54 = vpop.permute.xlu1 %886  ;;  %970 = vst.msk [vmem:[#allocation3 + $0xb8] sm:$0xff] %vm946_vm5, %v897_v10 }
 0x173   : > { %965 = vst.msk [vmem:[#allocation3 + $0x90] sm:$0xff] %vm946_vm5, %v887_v54  ;;  %v901_v55 = vpop.permute.xlu2 %900 }
 0x174   : > { %972 = vst.msk [vmem:[#allocation3 + $0xc8] sm:$0xff] %vm946_vm5, %v901_v55  ;;  %v7079_v55 = vld [vmem:[#allocation49_spill] sm:$0xff] }
 0x175   : > { %1244 = vrot.lane.b32.xlu0 %v7063_v42, %s4453_s28  ;;  %v7082_v42 = vld [vmem:[#allocation52_spill] sm:$0xff] }
 0x178   : > { %1105 = vrot.lane.b32.xlu1 %v5332_v19, %s4452_s27 }
 0x179   : > { %1101 = vrot.lane.b32.xlu2 %v7062_v57, %s4452_s27  ;;  %v903_v37 = vpop.permute.xlu0 %902 }
 0x17a   : > { %v893_v58 = vpop.permute.xlu1 %892  ;;  %973 = vst.msk [vmem:[#allocation3 + $0xd0] sm:$0xff] %vm946_vm5, %v903_v37  ;;  %v7083_v37 = vld [vmem:[#allocation53_spill] sm:$0xff] }
 0x17b   : > { %968 = vst.msk [vmem:[#allocation3 + $0xa8] sm:$0xff] %vm946_vm5, %v893_v58  ;;  %v907_v59 = vpop.permute.xlu2 %906  ;;  %v7081_v58 = vld [vmem:[#allocation60_spill] sm:$0xff] }
 0x17c   : > { %975 = vst.msk [vmem:[#allocation3 + $0xe0] sm:$0xff] %vm946_vm5, %v907_v59 }
 0x17d   : > { %1250 = vrot.lane.b32.xlu0 %v7066_v22, %s4453_s28  ;;  %v7085_v22 = vld [vmem:[#allocation55_spill] sm:$0xff] }
 0x180   : > { %1240 = vrot.lane.b32.xlu1 %v7064_v6, %s4453_s28 }
 0x181   : > { %1236 = vrot.lane.b32.xlu2 %v7065_v12, %s4453_s28  ;;  %v909_v20 = vpop.permute.xlu0 %908 }
 0x182   : > { %v899_v8 = vpop.permute.xlu1 %898  ;;  %976 = vst.msk [vmem:[#allocation3 + $0xe8] sm:$0xff] %vm946_vm5, %v909_v20  ;;  %v7086_v20 = vld [vmem:[#allocation56_spill] sm:$0xff] }
 0x183   : > { %971 = vst.msk [vmem:[#allocation3 + $0xc0] sm:$0xff] %vm946_vm5, %v899_v8  ;;  %v913_v35 = vpop.permute.xlu2 %912  ;;  %v7084_v8 = vld [vmem:[#allocation63_spill] sm:$0xff] }
 0x184   : > { %978 = vst.msk [vmem:[#allocation3 + $0xf8] sm:$0xff] %vm946_vm5, %v913_v35 }
 0x185   : > { %1256 = vrot.lane.b32.xlu0 %v7069_v34, %s4453_s28  ;;  %v7088_v34 = vld [vmem:[#allocation59_spill] sm:$0xff] }
 0x188   : > { %1246 = vrot.lane.b32.xlu1 %v7067_v23, %s4453_s28 }
 0x189   : > { %1242 = vrot.lane.b32.xlu2 %v7068_v28, %s4453_s28  ;;  %v1044_v27 = vpop.permute.xlu0 %1043 }
 0x18a   : > { %v905_v17 = vpop.permute.xlu1 %904  ;;  %1140 = vst.msk [vmem:[#allocation3] sm:$0xff] %vm1139_vm6, %v1044_v27  ;;  %v5420_v27 = vld [vmem:[#allocation2 + $0x18a] sm:$0xff] }
 0x18b   : > { %974 = vst.msk [vmem:[#allocation3 + $0xd8] sm:$0xff] %vm946_vm5, %v905_v17  ;;  %v1048_v21 = vpop.permute.xlu2 %1047 }
 0x18c   : > { %1142 = vst.msk [vmem:[#allocation3 + $0x10] sm:$0xff] %vm1139_vm6, %v1048_v21  ;;  %v7087_v21 = vld [vmem:[#allocation58_spill] sm:$0xff] }
 0x18d   : > { %1262 = vrot.lane.b32.xlu0 %v7072_v46, %s4453_s28 }
 0x190   : > { %1252 = vrot.lane.b32.xlu1 %v7070_v26, %s4453_s28 }
 0x191   : > { %1248 = vrot.lane.b32.xlu2 %v7071_v40, %s4453_s28  ;;  %v1050_v39 = vpop.permute.xlu0 %1049 }
 0x192   : > { %v911_v33 = vpop.permute.xlu1 %910  ;;  %1143 = vst.msk [vmem:[#allocation3 + $0x18] sm:$0xff] %vm1139_vm6, %v1050_v39 }
 0x193   : > { %977 = vst.msk [vmem:[#allocation3 + $0xf0] sm:$0xff] %vm946_vm5, %v911_v33  ;;  %v1054_v32 = vpop.permute.xlu2 %1053  ;;  %v7089_v33 = vld [vmem:[#allocation61_spill] sm:$0xff] }
 0x194   : > { %1145 = vst.msk [vmem:[#allocation3 + $0x28] sm:$0xff] %vm1139_vm6, %v1054_v32  ;;  %v7090_v32 = vld [vmem:[#allocation62_spill] sm:$0xff] }
 0x195   : > { %1268 = vrot.lane.b32.xlu0 %v7075_v53, %s4453_s28 }
 0x198   : > { %1258 = vrot.lane.b32.xlu1 %v7073_v38, %s4453_s28  ;;  %v1366_v38 = vld [vmem:[#allocation2 + $0x30] sm:$0xff] }
 0x199   : > { %1254 = vrot.lane.b32.xlu2 %v7074_v50, %s4453_s28  ;;  %v1056_v49 = vpop.permute.xlu0 %1055 }
 0x19a   : > { %v1046_v45 = vpop.permute.xlu1 %1045  ;;  %1146 = vst.msk [vmem:[#allocation3 + $0x30] sm:$0xff] %vm1139_vm6, %v1056_v49  ;;  %v1367_v49 = vld [vmem:[#allocation2 + $0x38] sm:$0xff] }
 0x19b   : > { %1141 = vst.msk [vmem:[#allocation3 + $0x8] sm:$0xff] %vm1139_vm6, %v1046_v45  ;;  %v1060_v44 = vpop.permute.xlu2 %1059  ;;  %v5435_v45 = vld [vmem:[#allocation2 + $0x182] sm:$0xff] }
 0x19c   : > { %1148 = vst.msk [vmem:[#allocation3 + $0x40] sm:$0xff] %vm1139_vm6, %v1060_v44 }
 0x19d   : > { %1274 = vrot.lane.b32.xlu0 %v7078_v14, %s4453_s28  ;;  %v1373_v14 = vld [vmem:[#allocation2 + $0x80] sm:$0xff] }
 0x1a0   : > { %1264 = vrot.lane.b32.xlu1 %v7076_v48, %s4453_s28 }
 0x1a1   : > { %1260 = vrot.lane.b32.xlu2 %v7077_v56, %s4453_s28  ;;  %v1062_v54 = vpop.permute.xlu0 %1061 }
 0x1a2   : > { %v1052_v51 = vpop.permute.xlu1 %1051  ;;  %1149 = vst.msk [vmem:[#allocation3 + $0x48] sm:$0xff] %vm1139_vm6, %v1062_v54 }
 0x1a3   : > { %1144 = vst.msk [vmem:[#allocation3 + $0x20] sm:$0xff] %vm1139_vm6, %v1052_v51  ;;  %v1066_v1 = vpop.permute.xlu2 %1065  ;;  %v1370_v51 = vld [vmem:[#allocation2 + $0x60] sm:$0xff] }
 0x1a4   : > { %1151 = vst.msk [vmem:[#allocation3 + $0x58] sm:$0xff] %vm1139_vm6, %v1066_v1 }
 0x1a5   : > { %1280 = vrot.lane.b32.xlu0 %v7081_v58, %s4453_s28  ;;  %v1382_v58 = vld [vmem:[#allocation2 + $0xf0] sm:$0xff] }
 0x1a8   : > { %1270 = vrot.lane.b32.xlu1 %v7079_v55, %s4453_s28  ;;  %v1376_v55 = vld [vmem:[#allocation2 + $0xa8] sm:$0xff] }
 0x1a9   : > { %1266 = vrot.lane.b32.xlu2 %v7080_v61, %s4453_s28  ;;  %v1068_v59 = vpop.permute.xlu0 %1067 }
 0x1aa   : > { %v1058_v10 = vpop.permute.xlu1 %1057  ;;  %1152 = vst.msk [vmem:[#allocation3 + $0x60] sm:$0xff] %vm1139_vm6, %v1068_v59 }
 0x1ab   : > { %1147 = vst.msk [vmem:[#allocation3 + $0x38] sm:$0xff] %vm1139_vm6, %v1058_v10  ;;  %v1072_v57 = vpop.permute.xlu2 %1071  ;;  %v1379_v10 = vld [vmem:[#allocation2 + $0xc8] sm:$0xff] }
 0x1ac   : > { %1154 = vst.msk [vmem:[#allocation3 + $0x70] sm:$0xff] %vm1139_vm6, %v1072_v57 }
 0x1ad   : > { %1286 = vrot.lane.b32.xlu0 %v7084_v8, %s4453_s28 }
 0x1b0   : > { %1276 = vrot.lane.b32.xlu1 %v7082_v42, %s4453_s28  ;;  %v1385_v42 = vld [vmem:[#allocation2 + $0x110] sm:$0xff] }
 0x1b1   : > { %1272 = vrot.lane.b32.xlu2 %v7083_v37, %s4453_s28  ;;  %v1074_v35 = vpop.permute.xlu0 %1073 }
 0x1b2   : > { %v1064_v6 = vpop.permute.xlu1 %1063  ;;  %1155 = vst.msk [vmem:[#allocation3 + $0x78] sm:$0xff] %vm1139_vm6, %v1074_v35 }
 0x1b3   : > { %1150 = vst.msk [vmem:[#allocation3 + $0x50] sm:$0xff] %vm1139_vm6, %v1064_v6  ;;  %v1078_v12 = vpop.permute.xlu2 %1077  ;;  %v1388_v6 = vld [vmem:[#allocation2 + $0x138] sm:$0xff] }
 0x1b4   : > { %1157 = vst.msk [vmem:[#allocation3 + $0x88] sm:$0xff] %vm1139_vm6, %v1078_v12 }
 0x1b5   : > { %1292 = vrot.lane.b32.xlu0 %v5126_v13, %s4453_s28 }
 0x1b8   : > { %1282 = vrot.lane.b32.xlu1 %v7085_v22, %s4453_s28 }
 0x1b9   : > { %1278 = vrot.lane.b32.xlu2 %v7086_v20, %s4453_s28  ;;  %v1080_v17 = vpop.permute.xlu0 %1079 }
 0x1ba   : > { %v1070_v23 = vpop.permute.xlu1 %1069  ;;  %1158 = vst.msk [vmem:[#allocation3 + $0x90] sm:$0xff] %vm1139_vm6, %v1080_v17  ;;  %v1397_v17 = vld [vmem:[#allocation2 + $0x1a0] sm:$0xff] }
 0x1bb   : > { %1153 = vst.msk [vmem:[#allocation3 + $0x68] sm:$0xff] %vm1139_vm6, %v1070_v23  ;;  %v1084_v28 = vpop.permute.xlu2 %1083  ;;  %v1560_v23 = vld [vmem:[#allocation2 + $0x39] sm:$0xff] }
 0x1bc   : > { %1160 = vst.msk [vmem:[#allocation3 + $0xa0] sm:$0xff] %vm1139_vm6, %v1084_v28 }
 0x1bd   : > { %1298 = vrot.lane.b32.xlu0 %v5420_v27, %s4453_s28 }
 0x1c0   : > { %1288 = vrot.lane.b32.xlu1 %v7087_v21, %s4453_s28  ;;  %v1565_v21 = vld [vmem:[#allocation2 + $0x79] sm:$0xff] }
 0x1c1   : > { %1284 = vrot.lane.b32.xlu2 %v7088_v34, %s4453_s28  ;;  %v1086_v13 = vpop.permute.xlu0 %1085 }
 0x1c2   : > { %v1076_v26 = vpop.permute.xlu1 %1075  ;;  %1161 = vst.msk [vmem:[#allocation3 + $0xa8] sm:$0xff] %vm1139_vm6, %v1086_v13  ;;  %v1561_v13 = vld [vmem:[#allocation2 + $0x49] sm:$0xff] }
 0x1c3   : > { %1156 = vst.msk [vmem:[#allocation3 + $0x80] sm:$0xff] %vm1139_vm6, %v1076_v26  ;;  %v1090_v40 = vpop.permute.xlu2 %1089  ;;  %v1563_v26 = vld [vmem:[#allocation2 + $0x61] sm:$0xff] }
 0x1c4   : > { %1163 = vst.msk [vmem:[#allocation3 + $0xb8] sm:$0xff] %vm1139_vm6, %v1090_v40 }
 0x1c5   : > { %1434 = vrot.lane.b32.xlu0 %v4887_v29, %s4454_s29 }
 0x1c8   : > { %1294 = vrot.lane.b32.xlu1 %v7089_v33, %s4453_s28  ;;  %v1568_v33 = vld [vmem:[#allocation2 + $0x99] sm:$0xff] }
 0x1c9   : > { %1290 = vrot.lane.b32.xlu2 %v7090_v32, %s4453_s28  ;;  %v1092_v50 = vpop.permute.xlu0 %1091 }
 0x1ca   : > { %v1082_v46 = vpop.permute.xlu1 %1081  ;;  %1164 = vst.msk [vmem:[#allocation3 + $0xc0] sm:$0xff] %vm1139_vm6, %v1092_v50  ;;  %v1564_v50 = vld [vmem:[#allocation2 + $0x69] sm:$0xff] }
 0x1cb   : > { %1159 = vst.msk [vmem:[#allocation3 + $0x98] sm:$0xff] %vm1139_vm6, %v1082_v46  ;;  %v1096_v39 = vpop.permute.xlu2 %1095 }
 0x1cc   : > { %1166 = vst.msk [vmem:[#allocation3 + $0xd0] sm:$0xff] %vm1139_vm6, %v1096_v39  ;;  %v1566_v39 = vld [vmem:[#allocation2 + $0x81] sm:$0xff] }
 0x1cd   : > { %1440 = vrot.lane.b32.xlu0 %v4911_v43, %s4454_s29 }
 0x1d0   : > { %1430 = vrot.lane.b32.xlu1 %v1366_v38, %s4454_s29 }
 0x1d1   : > { %1296 = vrot.lane.b32.xlu2 %v5435_v45, %s4453_s28  ;;  %v1098_v29 = vpop.permute.xlu0 %1097 }
 0x1d2   : > { %v1088_v44 = vpop.permute.xlu1 %1087  ;;  %1167 = vst.msk [vmem:[#allocation3 + $0xd8] sm:$0xff] %vm1139_vm6, %v1098_v29 }
 0x1d3   : > { %1162 = vst.msk [vmem:[#allocation3 + $0xb0] sm:$0xff] %vm1139_vm6, %v1088_v44  ;;  %v1102_v53 = vpop.permute.xlu2 %1101  ;;  %v1571_v44 = vld [vmem:[#allocation2 + $0xc1] sm:$0xff] }
 0x1d4   : > { %1169 = vst.msk [vmem:[#allocation3 + $0xe8] sm:$0xff] %vm1139_vm6, %v1102_v53 }
 0x1d5   : > { %1446 = vrot.lane.b32.xlu0 %v4937_v11, %s4454_s29 }
 0x1d8   : > { %1436 = vrot.lane.b32.xlu1 %v4913_v16, %s4454_s29 }
 0x1d9   : > { %1432 = vrot.lane.b32.xlu2 %v1367_v49, %s4454_s29  ;;  %v1104_v43 = vpop.permute.xlu0 %1103  ;;  %v1569_v49 = vld [vmem:[#allocation2 + $0xa9] sm:$0xff] }
 0x1da   : > { %v1094_v48 = vpop.permute.xlu1 %1093  ;;  %1170 = vst.msk [vmem:[#allocation3 + $0xf0] sm:$0xff] %vm1139_vm6, %v1104_v43  ;;  %v1574_v43 = vld [vmem:[#allocation2 + $0xe1] sm:$0xff] }
 0x1db   : > { %1165 = vst.msk [vmem:[#allocation3 + $0xc8] sm:$0xff] %vm1139_vm6, %v1094_v48  ;;  %v1237_v56 = vpop.permute.xlu2 %1236 }
 0x1dc   : > { %1333 = vst.msk [vmem:[#allocation3] sm:$0xff] %vm1332_vm7, %v1237_v56  ;;  %v1567_v56 = vld [vmem:[#allocation2 + $0x91] sm:$0xff] }
 0x1dd   : > { %1452 = vrot.lane.b32.xlu0 %v4964_v24, %s4454_s29 }
 0x1e0   : > { %1442 = vrot.lane.b32.xlu1 %v4939_v30, %s4454_s29 }
 0x1e1   : > { %1438 = vrot.lane.b32.xlu2 %v1370_v51, %s4454_s29  ;;  %v1239_v11 = vpop.permute.xlu0 %1238 }
 0x1e2   : > { %v1100_v16 = vpop.permute.xlu1 %1099  ;;  %1334 = vst.msk [vmem:[#allocation3 + $0x8] sm:$0xff] %vm1332_vm7, %v1239_v11 }
 0x1e3   : > { %1168 = vst.msk [vmem:[#allocation3 + $0xe0] sm:$0xff] %vm1139_vm6, %v1100_v16  ;;  %v1243_v1 = vpop.permute.xlu2 %1242 }
 0x1e4   : > { %1336 = vst.msk [vmem:[#allocation3 + $0x18] sm:$0xff] %vm1332_vm7, %v1243_v1  ;;  %v1572_v1 = vld [vmem:[#allocation2 + $0xc9] sm:$0xff] }
 0x1e5   : > { %1458 = vrot.lane.b32.xlu0 %v4991_v18, %s4454_s29 }
 0x1e8   : > { %1448 = vrot.lane.b32.xlu1 %v4966_v47, %s4454_s29 }
 0x1e9   : > { %1444 = vrot.lane.b32.xlu2 %v1373_v14, %s4454_s29  ;;  %v1245_v24 = vpop.permute.xlu0 %1244  ;;  %v1570_v14 = vld [vmem:[#allocation2 + $0xb1] sm:$0xff] }
 0x1ea   : > { %v1106_v30 = vpop.permute.xlu1 %1105  ;;  %1337 = vst.msk [vmem:[#allocation3 + $0x20] sm:$0xff] %vm1332_vm7, %v1245_v24 }
 0x1eb   : > { %1171 = vst.msk [vmem:[#allocation3 + $0xf8] sm:$0xff] %vm1139_vm6, %v1106_v30  ;;  %v1249_v54 = vpop.permute.xlu2 %1248  ;;  %v1577_v30 = vld [vmem:[#allocation2 + $0x109] sm:$0xff] }
 0x1ec   : > { %1339 = vst.msk [vmem:[#allocation3 + $0x30] sm:$0xff] %vm1332_vm7, %v1249_v54 }
 0x1ed   : > { %1464 = vrot.lane.b32.xlu0 %v5018_v4, %s4454_s29 }
 0x1f0   : > { %1454 = vrot.lane.b32.xlu1 %v4993_v2, %s4454_s29 }
 0x1f1   : > { %1450 = vrot.lane.b32.xlu2 %v1376_v55, %s4454_s29  ;;  %v1251_v18 = vpop.permute.xlu0 %1250  ;;  %v1575_v55 = vld [vmem:[#allocation2 + $0xf1] sm:$0xff] }
 0x1f2   : > { %v1241_v47 = vpop.permute.xlu1 %1240  ;;  %1340 = vst.msk [vmem:[#allocation3 + $0x38] sm:$0xff] %vm1332_vm7, %v1251_v18  ;;  %v1580_v18 = vld [vmem:[#allocation2 + $0x129] sm:$0xff] }
 0x1f3   : > { %1335 = vst.msk [vmem:[#allocation3 + $0x10] sm:$0xff] %vm1332_vm7, %v1241_v47  ;;  %v1255_v61 = vpop.permute.xlu2 %1254 }
 0x1f4   : > { %1342 = vst.msk [vmem:[#allocation3 + $0x48] sm:$0xff] %vm1332_vm7, %v1255_v61  ;;  %v1573_v61 = vld [vmem:[#allocation2 + $0xd9] sm:$0xff] }
 0x1f5   : > { %1470 = vrot.lane.b32.xlu0 %v5045_v36, %s4454_s29 }
 0x1f8   : > { %1460 = vrot.lane.b32.xlu1 %v5020_v3, %s4454_s29 }
 0x1f9   : > { %1456 = vrot.lane.b32.xlu2 %v1379_v10, %s4454_s29  ;;  %v1257_v4 = vpop.permute.xlu0 %1256 }
 0x1fa   : > { %v1247_v2 = vpop.permute.xlu1 %1246  ;;  %1343 = vst.msk [vmem:[#allocation3 + $0x50] sm:$0xff] %vm1332_vm7, %v1257_v4 }
 0x1fb   : > { %1338 = vst.msk [vmem:[#allocation3 + $0x28] sm:$0xff] %vm1332_vm7, %v1247_v2  ;;  %v1261_v57 = vpop.permute.xlu2 %1260 }
 0x1fc   : > { %1345 = vst.msk [vmem:[#allocation3 + $0x60] sm:$0xff] %vm1332_vm7, %v1261_v57  ;;  %v1578_v57 = vld [vmem:[#allocation2 + $0x111] sm:$0xff] }
 0x1fd   : > { %1476 = vrot.lane.b32.xlu0 %v5072_v15, %s4454_s29 }
 0x200   : > { %1466 = vrot.lane.b32.xlu1 %v5047_v41, %s4454_s29 }
 0x201   : > { %1462 = vrot.lane.b32.xlu2 %v1382_v58, %s4454_s29  ;;  %v1263_v36 = vpop.permute.xlu0 %1262  ;;  %v1576_v58 = vld [vmem:[#allocation2 + $0xf9] sm:$0xff] }
 0x202   : > { %v1253_v3 = vpop.permute.xlu1 %1252  ;;  %1346 = vst.msk [vmem:[#allocation3 + $0x68] sm:$0xff] %vm1332_vm7, %v1263_v36 }
 0x203   : > { %1341 = vst.msk [vmem:[#allocation3 + $0x40] sm:$0xff] %vm1332_vm7, %v1253_v3  ;;  %v1267_v59 = vpop.permute.xlu2 %1266  ;;  %v1583_v3 = vld [vmem:[#allocation2 + $0x151] sm:$0xff] }
 0x204   : > { %1348 = vst.msk [vmem:[#allocation3 + $0x78] sm:$0xff] %vm1332_vm7, %v1267_v59 }
 0x205   : > { %1482 = vrot.lane.b32.xlu0 %v5095_v0, %s4454_s29 }
 0x208   : > { %1472 = vrot.lane.b32.xlu1 %v5074_v7, %s4454_s29 }
 0x209   : > { %1468 = vrot.lane.b32.xlu2 %v1385_v42, %s4454_s29  ;;  %v1269_v15 = vpop.permute.xlu0 %1268  ;;  %v1581_v42 = vld [vmem:[#allocation2 + $0x139] sm:$0xff] }
 0x20a   : > { %v1259_v41 = vpop.permute.xlu1 %1258  ;;  %1349 = vst.msk [vmem:[#allocation3 + $0x80] sm:$0xff] %vm1332_vm7, %v1269_v15  ;;  %v1586_v15 = vld [vmem:[#allocation2 + $0x171] sm:$0xff] }
 0x20b   : > { %1344 = vst.msk [vmem:[#allocation3 + $0x58] sm:$0xff] %vm1332_vm7, %v1259_v41  ;;  %v1273_v37 = vpop.permute.xlu2 %1272 }
 0x20c   : > { %1351 = vst.msk [vmem:[#allocation3 + $0x90] sm:$0xff] %vm1332_vm7, %v1273_v37  ;;  %v1579_v37 = vld [vmem:[#allocation2 + $0x121] sm:$0xff] }
 0x20d   : > { %1488 = vrot.lane.b32.xlu0 %v5238_v63, %s4454_s29  ;;  %v1396_v63 = vld [vmem:[#allocation2 + $0x198] sm:$0xff] }
 0x210   : > { %1478 = vrot.lane.b32.xlu1 %v5097_v9, %s4454_s29  ;;  %v1559_v9 = vld [vmem:[#allocation2 + $0x31] sm:$0xff] }
 0x211   : > { %1474 = vrot.lane.b32.xlu2 %v1388_v6, %s4454_s29  ;;  %v1275_v0 = vpop.permute.xlu0 %1274 }
 0x212   : > { %v1265_v7 = vpop.permute.xlu1 %1264  ;;  %1352 = vst.msk [vmem:[#allocation3 + $0x98] sm:$0xff] %vm1332_vm7, %v1275_v0 }
 0x213   : > { %1347 = vst.msk [vmem:[#allocation3 + $0x70] sm:$0xff] %vm1332_vm7, %v1265_v7  ;;  %v1279_v12 = vpop.permute.xlu2 %1278 }
 0x214   : > { %1354 = vst.msk [vmem:[#allocation3 + $0xa8] sm:$0xff] %vm1332_vm7, %v1279_v12  ;;  %v1584_v12 = vld [vmem:[#allocation2 + $0x159] sm:$0xff] }
 0x215   : > { %1623 = vrot.lane.b32.xlu0 %v1559_v9, %s4455_s30  ;;  %v1582_v9 = vld [vmem:[#allocation2 + $0x141] sm:$0xff] }
 0x218   : > { %1484 = vrot.lane.b32.xlu1 %v5117_v5, %s4454_s29  ;;  %v1562_v5 = vld [vmem:[#allocation2 + $0x51] sm:$0xff] }
 0x219   : > { %1480 = vrot.lane.b32.xlu2 %v5060_v60, %s4454_s29  ;;  %v1281_v22 = vpop.permute.xlu0 %1280 }
 0x21a   : > { %v1271_v8 = vpop.permute.xlu1 %1270  ;;  %1355 = vst.msk [vmem:[#allocation3 + $0xb0] sm:$0xff] %vm1332_vm7, %v1281_v22 }
 0x21b   : > { %1350 = vst.msk [vmem:[#allocation3 + $0x88] sm:$0xff] %vm1332_vm7, %v1271_v8  ;;  %v1285_v35 = vpop.permute.xlu2 %1284  ;;  %v1589_v8 = vld [vmem:[#allocation2 + $0x199] sm:$0xff] }
 0x21c   : > { %1357 = vst.msk [vmem:[#allocation3 + $0xc0] sm:$0xff] %vm1332_vm7, %v1285_v35 }
 0x21d   : > { %1629 = vrot.lane.b32.xlu0 %v1562_v5, %s4455_s30  ;;  %v1585_v5 = vld [vmem:[#allocation2 + $0x169] sm:$0xff] }
 0x220   : > { %1490 = vrot.lane.b32.xlu1 %v1396_v63, %s4454_s29 }
 0x221   : > { %1486 = vrot.lane.b32.xlu2 %v5227_v62, %s4454_s29  ;;  %v1287_v28 = vpop.permute.xlu0 %1286 }
 0x222   : > { %v1277_v60 = vpop.permute.xlu1 %1276  ;;  %1358 = vst.msk [vmem:[#allocation3 + $0xc8] sm:$0xff] %vm1332_vm7, %v1287_v28  ;;  %v1590_v28 = vld [vmem:[#allocation2 + $0x1a1] sm:$0xff] }
 0x223   : > { %1353 = vst.msk [vmem:[#allocation3 + $0xa0] sm:$0xff] %vm1332_vm7, %v1277_v60  ;;  %v1291_v20 = vpop.permute.xlu2 %1290  ;;  %v1753_v60 = vld [vmem:[#allocation2 + $0x3a] sm:$0xff] }
 0x224   : > { %1360 = vst.msk [vmem:[#allocation3 + $0xd8] sm:$0xff] %vm1332_vm7, %v1291_v20 }
 0x225   : > { %1635 = vrot.lane.b32.xlu0 %v1565_v21, %s4455_s30 }
 0x228   : > { %1625 = vrot.lane.b32.xlu1 %v1560_v23, %s4455_s30 }
 0x229   : > { %1492 = vrot.lane.b32.xlu2 %v1397_v17, %s4454_s29  ;;  %v1293_v40 = vpop.permute.xlu0 %1292 }
 0x22a   : > { %v1283_v62 = vpop.permute.xlu1 %1282  ;;  %1361 = vst.msk [vmem:[#allocation3 + $0xe0] sm:$0xff] %vm1332_vm7, %v1293_v40  ;;  %v1752_v40 = vld [vmem:[#allocation2 + $0x32] sm:$0xff] }
 0x22b   : > { %1356 = vst.msk [vmem:[#allocation3 + $0xb8] sm:$0xff] %vm1332_vm7, %v1283_v62  ;;  %v1297_v34 = vpop.permute.xlu2 %1296 }
 0x22c   : > { %1363 = vst.msk [vmem:[#allocation3 + $0xf0] sm:$0xff] %vm1332_vm7, %v1297_v34  ;;  %v1754_v34 = vld [vmem:[#allocation2 + $0x4a] sm:$0xff] }
 0x22d   : > { %1641 = vrot.lane.b32.xlu0 %v1568_v33, %s4455_s30 }
 0x230   : > { %1631 = vrot.lane.b32.xlu1 %v1563_v26, %s4455_s30 }
 0x231   : > { %1627 = vrot.lane.b32.xlu2 %v1561_v13, %s4455_s30  ;;  %v1299_v38 = vpop.permute.xlu0 %1298  ;;  %v1759_v13 = vld [vmem:[#allocation2 + $0x82] sm:$0xff] }
 0x232   : > { %v1289_v32 = vpop.permute.xlu1 %1288  ;;  %1364 = vst.msk [vmem:[#allocation3 + $0xf8] sm:$0xff] %vm1332_vm7, %v1299_v38  ;;  %v1762_v38 = vld [vmem:[#allocation2 + $0xaa] sm:$0xff] }
 0x233   : > { %1359 = vst.msk [vmem:[#allocation3 + $0xd0] sm:$0xff] %vm1332_vm7, %v1289_v32  ;;  %v1433_v46 = vpop.permute.xlu2 %1432  ;;  %v1757_v32 = vld [vmem:[#allocation2 + $0x6a] sm:$0xff] }
 0x234   : > { %1528 = vst.msk [vmem:[#allocation3 + $0x8] sm:$0xff] %vm1526_vm8, %v1433_v46 }
 0x235   : > { %1647 = vrot.lane.b32.xlu0 %v1571_v44, %s4455_s30 }
 0x238   : > { %1637 = vrot.lane.b32.xlu1 %v1566_v39, %s4455_s30  ;;  %v1755_v39 = vld [vmem:[#allocation2 + $0x52] sm:$0xff] }
 0x239   : > { %1633 = vrot.lane.b32.xlu2 %v1564_v50, %s4455_s30  ;;  %v1435_v48 = vpop.permute.xlu0 %1434 }
 0x23a   : > { %v1295_v53 = vpop.permute.xlu1 %1294  ;;  %1529 = vst.msk [vmem:[#allocation3 + $0x10] sm:$0xff] %vm1526_vm8, %v1435_v48  ;;  %v1765_v48 = vld [vmem:[#allocation2 + $0xca] sm:$0xff] }
 0x23b   : > { %1362 = vst.msk [vmem:[#allocation3 + $0xe8] sm:$0xff] %vm1332_vm7, %v1295_v53  ;;  %v1439_v29 = vpop.permute.xlu2 %1438  ;;  %v1760_v53 = vld [vmem:[#allocation2 + $0x92] sm:$0xff] }
 0x23c   : > { %1531 = vst.msk [vmem:[#allocation3 + $0x20] sm:$0xff] %vm1526_vm8, %v1439_v29 }
 0x23d   : > { %1653 = vrot.lane.b32.xlu0 %v1574_v43, %s4455_s30 }
 0x240   : > { %1643 = vrot.lane.b32.xlu1 %v1569_v49, %s4455_s30  ;;  %v1758_v49 = vld [vmem:[#allocation2 + $0x7a] sm:$0xff] }
 0x241   : > { %1639 = vrot.lane.b32.xlu2 %v1567_v56, %s4455_s30  ;;  %v1441_v11 = vpop.permute.xlu0 %1440 }
 0x242   : > { %v1431_v51 = vpop.permute.xlu1 %1430  ;;  %1532 = vst.msk [vmem:[#allocation3 + $0x28] sm:$0xff] %vm1526_vm8, %v1441_v11  ;;  %v1768_v11 = vld [vmem:[#allocation2 + $0xf2] sm:$0xff] }
 0x243   : > { %1527 = vst.msk [vmem:[#allocation3] sm:$0xff] %vm1526_vm8, %v1431_v51  ;;  %v1445_v16 = vpop.permute.xlu2 %1444  ;;  %v1763_v51 = vld [vmem:[#allocation2 + $0xb2] sm:$0xff] }
 0x244   : > { %1534 = vst.msk [vmem:[#allocation3 + $0x38] sm:$0xff] %vm1526_vm8, %v1445_v16 }
 0x245   : > { %1659 = vrot.lane.b32.xlu0 %v1577_v30, %s4455_s30 }
 0x248   : > { %1649 = vrot.lane.b32.xlu1 %v1572_v1, %s4455_s30  ;;  %v1761_v1 = vld [vmem:[#allocation2 + $0x9a] sm:$0xff] }
 0x249   : > { %1645 = vrot.lane.b32.xlu2 %v1570_v14, %s4455_s30  ;;  %v1447_v47 = vpop.permute.xlu0 %1446 }
 0x24a   : > { %v1437_v54 = vpop.permute.xlu1 %1436  ;;  %1535 = vst.msk [vmem:[#allocation3 + $0x40] sm:$0xff] %vm1526_vm8, %v1447_v47  ;;  %v1771_v47 = vld [vmem:[#allocation2 + $0x112] sm:$0xff] }
 0x24b   : > { %1530 = vst.msk [vmem:[#allocation3 + $0x18] sm:$0xff] %vm1526_vm8, %v1437_v54  ;;  %v1451_v24 = vpop.permute.xlu2 %1450  ;;  %v1766_v54 = vld [vmem:[#allocation2 + $0xda] sm:$0xff] }
 0x24c   : > { %1537 = vst.msk [vmem:[#allocation3 + $0x50] sm:$0xff] %vm1526_vm8, %v1451_v24 }
 0x24d   : > { %1665 = vrot.lane.b32.xlu0 %v1580_v18, %s4455_s30 }
 0x250   : > { %1655 = vrot.lane.b32.xlu1 %v1575_v55, %s4455_s30  ;;  %v1764_v55 = vld [vmem:[#allocation2 + $0xc2] sm:$0xff] }
 0x251   : > { %1651 = vrot.lane.b32.xlu2 %v1573_v61, %s4455_s30  ;;  %v1453_v4 = vpop.permute.xlu0 %1452 }
 0x252   : > { %v1443_v10 = vpop.permute.xlu1 %1442  ;;  %1538 = vst.msk [vmem:[#allocation3 + $0x58] sm:$0xff] %vm1526_vm8, %v1453_v4 }
 0x253   : > { %1533 = vst.msk [vmem:[#allocation3 + $0x30] sm:$0xff] %vm1526_vm8, %v1443_v10  ;;  %v1457_v2 = vpop.permute.xlu2 %1456  ;;  %v1769_v10 = vld [vmem:[#allocation2 + $0xfa] sm:$0xff] }
 0x254   : > { %1540 = vst.msk [vmem:[#allocation3 + $0x68] sm:$0xff] %vm1526_vm8, %v1457_v2 }
 0x255   : > { %1671 = vrot.lane.b32.xlu0 %v1583_v3, %s4455_s30  ;;  %v1774_v3 = vld [vmem:[#allocation2 + $0x13a] sm:$0xff] }
 0x258   : > { %1661 = vrot.lane.b32.xlu1 %v1578_v57, %s4455_s30  ;;  %v1767_v57 = vld [vmem:[#allocation2 + $0xe2] sm:$0xff] }
 0x259   : > { %1657 = vrot.lane.b32.xlu2 %v1576_v58, %s4455_s30  ;;  %v1459_v41 = vpop.permute.xlu0 %1458 }
 0x25a   : > { %v1449_v59 = vpop.permute.xlu1 %1448  ;;  %1541 = vst.msk [vmem:[#allocation3 + $0x70] sm:$0xff] %vm1526_vm8, %v1459_v41 }
 0x25b   : > { %1536 = vst.msk [vmem:[#allocation3 + $0x48] sm:$0xff] %vm1526_vm8, %v1449_v59  ;;  %v1463_v36 = vpop.permute.xlu2 %1462  ;;  %v1772_v59 = vld [vmem:[#allocation2 + $0x122] sm:$0xff] }
 0x25c   : > { %1543 = vst.msk [vmem:[#allocation3 + $0x80] sm:$0xff] %vm1526_vm8, %v1463_v36 }
 0x25d   : > { %1677 = vrot.lane.b32.xlu0 %v1586_v15, %s4455_s30  ;;  %v1775_v15 = vld [vmem:[#allocation2 + $0x142] sm:$0xff] }
 0x260   : > { %1667 = vrot.lane.b32.xlu1 %v1581_v42, %s4455_s30  ;;  %v1770_v42 = vld [vmem:[#allocation2 + $0x10a] sm:$0xff] }
 0x261   : > { %1663 = vrot.lane.b32.xlu2 %v1579_v37, %s4455_s30  ;;  %v1465_v0 = vpop.permute.xlu0 %1464 }
 0x262   : > { %v1455_v6 = vpop.permute.xlu1 %1454  ;;  %1544 = vst.msk [vmem:[#allocation3 + $0x88] sm:$0xff] %vm1526_vm8, %v1465_v0  ;;  %v1981_v0 = vld [vmem:[%s6903_s1 + $0x20] sm:$0xf] }
 0x263   : > { %1539 = vst.msk [vmem:[#allocation3 + $0x60] sm:$0xff] %vm1526_vm8, %v1455_v6  ;;  %v1469_v7 = vpop.permute.xlu2 %1468  ;;  %4341 = vmatpush.msk.msra.mxu0 %vm2083_vm10, %v1981_v0  ;;  %4411 = vmatpush.msk.msra.mxu2 %vm2083_vm10, %v1981_v0 }
 0x264   : > { %1546 = vst.msk [vmem:[#allocation3 + $0x98] sm:$0xff] %vm1526_vm8, %v1469_v7 }
 0x265   : > { %1683 = vrot.lane.b32.xlu0 %v1589_v8, %s4455_s30  ;;  %v1980_v8 = vld [vmem:[%s6903_s1 + $0x18] sm:$0xff] }
 0x266   : > { %2099 = vmatpush.msra.mxu0 %v1980_v8  ;;  %4412 = vmatpush.msra.mxu2 %v1980_v8 }
 0x268   : > { %1673 = vrot.lane.b32.xlu1 %v1584_v12, %s4455_s30 }
 0x269   : > { %1669 = vrot.lane.b32.xlu2 %v1582_v9, %s4455_s30  ;;  %v1471_v22 = vpop.permute.xlu0 %1470  ;;  %v1773_v9 = vld [vmem:[#allocation2 + $0x12a] sm:$0xff] }
 0x26a   : > { %v1461_v35 = vpop.permute.xlu1 %1460  ;;  %1547 = vst.msk [vmem:[#allocation3 + $0xa0] sm:$0xff] %vm1526_vm8, %v1471_v22 }
 0x26b   : > { %1542 = vst.msk [vmem:[#allocation3 + $0x78] sm:$0xff] %vm1526_vm8, %v1461_v35  ;;  %v1475_v63 = vpop.permute.xlu2 %1474 }
 0x26c   : > { %1549 = vst.msk [vmem:[#allocation3 + $0xb0] sm:$0xff] %vm1526_vm8, %v1475_v63 }
 0x26d   : > { %1818 = vrot.lane.b32.xlu0 %v1753_v60, %s4456_s6  ;;  %v1978_v60 = vld [vmem:[%s6903_s1 + $0x8] sm:$0xff] }
 0x270   : > { %1679 = vrot.lane.b32.xlu1 %v5317_v52, %s4455_s30  ;;  %v1756_v52 = vld [vmem:[#allocation2 + $0x62] sm:$0xff] }
 0x271   : > { %1675 = vrot.lane.b32.xlu2 %v1585_v5, %s4455_s30  ;;  %v1477_v17 = vpop.permute.xlu0 %1476  ;;  %v1979_v5 = vld [vmem:[%s6903_s1 + $0x10] sm:$0xff] }
 0x272   : > { %v1467_v20 = vpop.permute.xlu1 %1466  ;;  %1550 = vst.msk [vmem:[#allocation3 + $0xb8] sm:$0xff] %vm1526_vm8, %v1477_v17  ;;  %2100 = vmatpush.msra.mxu0 %v1979_v5  ;;  %4413 = vmatpush.msra.mxu2 %v1979_v5 }
 0x273   : > { %1545 = vst.msk [vmem:[#allocation3 + $0x90] sm:$0xff] %vm1526_vm8, %v1467_v20  ;;  %v1481_v23 = vpop.permute.xlu2 %1480  ;;  %v1777_v20 = vld [vmem:[#allocation2 + $0x15a] sm:$0xff] }
 0x274   : > { %1552 = vst.msk [vmem:[#allocation3 + $0xc8] sm:$0xff] %vm1526_vm8, %v1481_v23  ;;  %v1977_v23 = vld [vmem:[%s6903_s1] sm:$0xff]  ;;  %2101 = vmatpush.msra.mxu0 %v1978_v60  ;;  %4414 = vmatpush.msra.mxu2 %v1978_v60 }
 0x275   : > { %1824 = vrot.lane.b32.xlu0 %v1756_v52, %s4456_s6 }
 0x276   : > { %2102 = vmatpush.msra.mxu0 %v1977_v23  ;;  %4415 = vmatpush.msra.mxu2 %v1977_v23 }
 0x278   : > { %1685 = vrot.lane.b32.xlu1 %v1590_v28, %s4455_s30 }
 0x279   : > { %1681 = vrot.lane.b32.xlu2 %v5332_v19, %s4455_s30  ;;  %v1483_v26 = vpop.permute.xlu0 %1482 }
 0x27a   : > { %v1473_v21 = vpop.permute.xlu1 %1472  ;;  %1553 = vst.msk [vmem:[#allocation3 + $0xd0] sm:$0xff] %vm1526_vm8, %v1483_v26 }
 0x27b   : > { %1548 = vst.msk [vmem:[#allocation3 + $0xa8] sm:$0xff] %vm1526_vm8, %v1473_v21  ;;  %v1487_v62 = vpop.permute.xlu2 %1486  ;;  %v1778_v21 = vld [vmem:[#allocation2 + $0x16a] sm:$0xff] }
 0x27c   : > { %1555 = vst.msk [vmem:[#allocation3 + $0xe0] sm:$0xff] %vm1526_vm8, %v1487_v62 }
 0x27d   : > { %1830 = vrot.lane.b32.xlu0 %v1759_v13, %s4456_s6 }
 0x280   : > { %1820 = vrot.lane.b32.xlu1 %v1754_v34, %s4456_s6 }
 0x281   : > { %1816 = vrot.lane.b32.xlu2 %v1752_v40, %s4456_s6  ;;  %v1489_v46 = vpop.permute.xlu0 %1488  ;;  %v1776_v40 = vld [vmem:[#allocation2 + $0x152] sm:$0xff] }
 0x282   : > { %v1479_v19 = vpop.permute.xlu1 %1478  ;;  %1556 = vst.msk [vmem:[#allocation3 + $0xe8] sm:$0xff] %vm1526_vm8, %v1489_v46 }
 0x283   : > { %1551 = vst.msk [vmem:[#allocation3 + $0xc0] sm:$0xff] %vm1526_vm8, %v1479_v19  ;;  %v1493_v33 = vpop.permute.xlu2 %1492 }
 0x284   : > { %1558 = vst.msk [vmem:[#allocation3 + $0xf8] sm:$0xff] %vm1526_vm8, %v1493_v33 }
 0x285   : > { %1836 = vrot.lane.b32.xlu0 %v1762_v38, %s4456_s6 }
 0x288   : > { %1826 = vrot.lane.b32.xlu1 %v1757_v32, %s4456_s6 }
 0x289   : > { %1822 = vrot.lane.b32.xlu2 %v1755_v39, %s4456_s6  ;;  %v1624_v29 = vpop.permute.xlu0 %1623 }
 0x28a   : > { %v1485_v50 = vpop.permute.xlu1 %1484  ;;  %1720 = vst.msk [vmem:[#allocation3] sm:$0xff] %vm1719_vm9, %v1624_v29 }
 0x28b   : > { %1554 = vst.msk [vmem:[#allocation3 + $0xd8] sm:$0xff] %vm1526_vm8, %v1485_v50  ;;  %v1628_v44 = vpop.permute.xlu2 %1627 }
 0x28c   : > { %1722 = vst.msk [vmem:[#allocation3 + $0x10] sm:$0xff] %vm1719_vm9, %v1628_v44  ;;  %v1779_v44 = vld [vmem:[#allocation2 + $0x172] sm:$0xff] }
 0x28d   : > { %1842 = vrot.lane.b32.xlu0 %v1765_v48, %s4456_s6 }
 0x290   : > { %1832 = vrot.lane.b32.xlu1 %v1760_v53, %s4456_s6 }
 0x291   : > { %1828 = vrot.lane.b32.xlu2 %v1758_v49, %s4456_s6  ;;  %v1630_v16 = vpop.permute.xlu0 %1629 }
 0x292   : > { %v1491_v56 = vpop.permute.xlu1 %1490  ;;  %1723 = vst.msk [vmem:[#allocation3 + $0x18] sm:$0xff] %vm1719_vm9, %v1630_v16 }
 0x293   : > { %1557 = vst.msk [vmem:[#allocation3 + $0xf0] sm:$0xff] %vm1526_vm8, %v1491_v56  ;;  %v1634_v43 = vpop.permute.xlu2 %1633 }
 0x294   : > { %1725 = vst.msk [vmem:[#allocation3 + $0x28] sm:$0xff] %vm1719_vm9, %v1634_v43 }
 0x295   : > { %1848 = vrot.lane.b32.xlu0 %v1768_v11, %s4456_s6 }
 0x298   : > { %1838 = vrot.lane.b32.xlu1 %v1763_v51, %s4456_s6 }
 0x299   : > { %1834 = vrot.lane.b32.xlu2 %v1761_v1, %s4456_s6  ;;  %v1636_v24 = vpop.permute.xlu0 %1635 }
 0x29a   : > { %v1626_v14 = vpop.permute.xlu1 %1625  ;;  %1726 = vst.msk [vmem:[#allocation3 + $0x30] sm:$0xff] %vm1719_vm9, %v1636_v24 }
 0x29b   : > { %1721 = vst.msk [vmem:[#allocation3 + $0x8] sm:$0xff] %vm1719_vm9, %v1626_v14  ;;  %v1640_v30 = vpop.permute.xlu2 %1639 }
 0x29c   : > { %1728 = vst.msk [vmem:[#allocation3 + $0x40] sm:$0xff] %vm1719_vm9, %v1640_v30 }
 0x29d   : > { %1854 = vrot.lane.b32.xlu0 %v1771_v47, %s4456_s6 }
 0x2a0   : > { %1844 = vrot.lane.b32.xlu1 %v1766_v54, %s4456_s6 }
 0x2a1   : > { %1840 = vrot.lane.b32.xlu2 %v1764_v55, %s4456_s6  ;;  %v1642_v2 = vpop.permute.xlu0 %1641 }
 0x2a2   : > { %v1632_v61 = vpop.permute.xlu1 %1631  ;;  %1729 = vst.msk [vmem:[#allocation3 + $0x48] sm:$0xff] %vm1719_vm9, %v1642_v2 }
 0x2a3   : > { %1724 = vst.msk [vmem:[#allocation3 + $0x20] sm:$0xff] %vm1719_vm9, %v1632_v61  ;;  %v1646_v18 = vpop.permute.xlu2 %1645 }
 0x2a4   : > { %1731 = vst.msk [vmem:[#allocation3 + $0x58] sm:$0xff] %vm1719_vm9, %v1646_v18 }
 0x2a5   : > { %1860 = vrot.lane.b32.xlu0 %v1774_v3, %s4456_s6 }
 0x2a8   : > { %1850 = vrot.lane.b32.xlu1 %v1769_v10, %s4456_s6 }
 0x2a9   : > { %1846 = vrot.lane.b32.xlu2 %v1767_v57, %s4456_s6  ;;  %v1648_v36 = vpop.permute.xlu0 %1647 }
 0x2aa   : > { %v1638_v4 = vpop.permute.xlu1 %1637  ;;  %1732 = vst.msk [vmem:[#allocation3 + $0x60] sm:$0xff] %vm1719_vm9, %v1648_v36 }
 0x2ab   : > { %1727 = vst.msk [vmem:[#allocation3 + $0x38] sm:$0xff] %vm1719_vm9, %v1638_v4  ;;  %v1652_v58 = vpop.permute.xlu2 %1651 }
 0x2ac   : > { %1734 = vst.msk [vmem:[#allocation3 + $0x70] sm:$0xff] %vm1719_vm9, %v1652_v58 }
 0x2ad   : > { %1866 = vrot.lane.b32.xlu0 %v1777_v20, %s4456_s6 }
 0x2b0   : > { %1856 = vrot.lane.b32.xlu1 %v1772_v59, %s4456_s6 }
 0x2b1   : > { %1852 = vrot.lane.b32.xlu2 %v1770_v42, %s4456_s6  ;;  %v1654_v6 = vpop.permute.xlu0 %1653 }
 0x2b2   : > { %v1644_v41 = vpop.permute.xlu1 %1643  ;;  %1735 = vst.msk [vmem:[#allocation3 + $0x78] sm:$0xff] %vm1719_vm9, %v1654_v6 }
 0x2b3   : > { %1730 = vst.msk [vmem:[#allocation3 + $0x50] sm:$0xff] %vm1719_vm9, %v1644_v41  ;;  %v1658_v37 = vpop.permute.xlu2 %1657 }
 0x2b4   : > { %1737 = vst.msk [vmem:[#allocation3 + $0x88] sm:$0xff] %vm1719_vm9, %v1658_v37 }
 0x2b5   : > { %1872 = vrot.lane.b32.xlu0 %v5435_v45, %s4456_s6 }
 0x2b8   : > { %1862 = vrot.lane.b32.xlu1 %v1775_v15, %s4456_s6 }
 0x2b9   : > { %1858 = vrot.lane.b32.xlu2 %v1773_v9, %s4456_s6  ;;  %v1660_v35 = vpop.permute.xlu0 %1659 }
 0x2ba   : > { %v1650_v7 = vpop.permute.xlu1 %1649  ;;  %1738 = vst.msk [vmem:[#allocation3 + $0x90] sm:$0xff] %vm1719_vm9, %v1660_v35 }
 0x2bb   : > { %1733 = vst.msk [vmem:[#allocation3 + $0x68] sm:$0xff] %vm1719_vm9, %v1650_v7  ;;  %v1664_v12 = vpop.permute.xlu2 %1663 }
 0x2bc   : > { %1740 = vst.msk [vmem:[#allocation3 + $0xa0] sm:$0xff] %vm1719_vm9, %v1664_v12 }
 0x2c0   : > { %1868 = vrot.lane.b32.xlu1 %v1778_v21, %s4456_s6 }
 0x2c1   : > { %v1666_v28 = vpop.permute.xlu0 %1665  ;;  %1864 = vrot.lane.b32.xlu2 %v1776_v40, %s4456_s6 }
 0x2c2   : > { %v1656_v63 = vpop.permute.xlu1 %1655  ;;  %1741 = vst.msk [vmem:[#allocation3 + $0xa8] sm:$0xff] %vm1719_vm9, %v1666_v28  ;;  %v1783_v28 = vld [vmem:[#allocation2 + $0x1a2] sm:$0xff] }
 0x2c3   : > { %1736 = vst.msk [vmem:[#allocation3 + $0x80] sm:$0xff] %vm1719_vm9, %v1656_v63  ;;  %v1670_v22 = vpop.permute.xlu2 %1669  ;;  %1878 = vrot.lane.b32.xlu0 %v1783_v28, %s4456_s6 }
 0x2c4   : > { %1743 = vst.msk [vmem:[#allocation3 + $0xb8] sm:$0xff] %vm1719_vm9, %v1670_v22 }
 0x2c8   : > { %1874 = vrot.lane.b32.xlu1 %v5420_v27, %s4456_s6 }
 0x2c9   : > { %v1672_v62 = vpop.permute.xlu0 %1671  ;;  %1870 = vrot.lane.b32.xlu2 %v1779_v44, %s4456_s6 }
 0x2ca   : > { %v1662_v17 = vpop.permute.xlu1 %1661  ;;  %1744 = vst.msk [vmem:[#allocation3 + $0xc0] sm:$0xff] %vm1719_vm9, %v1672_v62  ;;  %v1782_v62 = vld [vmem:[#allocation2 + $0x19a] sm:$0xff] }
 0x2cb   : > { %1739 = vst.msk [vmem:[#allocation3 + $0x98] sm:$0xff] %vm1719_vm9, %v1662_v17  ;;  %v1676_v52 = vpop.permute.xlu2 %1675 }
 0x2cc   : > { %1746 = vst.msk [vmem:[#allocation3 + $0xd0] sm:$0xff] %vm1719_vm9, %v1676_v52 }
 0x2d1   : > { %v1678_v13 = vpop.permute.xlu0 %1677  ;;  %1876 = vrot.lane.b32.xlu2 %v1782_v62, %s4456_s6 }
 0x2d2   : > { %v1668_v34 = vpop.permute.xlu1 %1667  ;;  %1747 = vst.msk [vmem:[#allocation3 + $0xd8] sm:$0xff] %vm1719_vm9, %v1678_v13 }
 0x2d3   : > { %1742 = vst.msk [vmem:[#allocation3 + $0xb0] sm:$0xff] %vm1719_vm9, %v1668_v34  ;;  %v1682_v26 = vpop.permute.xlu2 %1681  ;;  %v2392_v34 = vld [vmem:[#allocation2 + $0x1] sm:$0xff] }
 0x2d4   : > { %1749 = vst.msk [vmem:[#allocation3 + $0xe8] sm:$0xff] %vm1719_vm9, %v1682_v26  ;;  %2456 = vrot.lane.b32.xlu1 %v2392_v34, %s4449_s24 }
 0x2d9   : > { %v1684_v33 = vpop.permute.xlu0 %1683 }
 0x2da   : > { %v1674_v45 = vpop.permute.xlu1 %1673  ;;  %1750 = vst.msk [vmem:[#allocation3 + $0xf0] sm:$0xff] %vm1719_vm9, %v1684_v33 }
 0x2db   : > { %1745 = vst.msk [vmem:[#allocation3 + $0xc8] sm:$0xff] %vm1719_vm9, %v1674_v45  ;;  %v1817_v19 = vpop.permute.xlu2 %1816  ;;  %v2393_v45 = vld [vmem:[#allocation2 + $0x9] sm:$0xff] }
 0x2dc   : > { %1913 = vst.msk [vmem:[#allocation3] sm:$0xff] %vm1912_vm11, %v1817_v19  ;;  %v5737_v19 = vld [vmem:[%s6904_s2] ss:$0 sm:$0xff]  ;;  %2458 = vrot.lane.b32.xlu2 %v2393_v45, %s4449_s24 }
 0x2e1   : > { %v1819_v27 = vpop.permute.xlu0 %1818 }
 0x2e2   : > { %v1680_v32 = vpop.permute.xlu1 %1679  ;;  %1914 = vst.msk [vmem:[#allocation3 + $0x8] sm:$0xff] %vm1912_vm11, %v1819_v27 }
 0x2e3   : > { %1748 = vst.msk [vmem:[#allocation3 + $0xe0] sm:$0xff] %vm1719_vm9, %v1680_v32  ;;  %v1945_v46 = vld [vmem:[#allocation3] sm:$0xff]  ;;  %v1823_v39 = vpop.permute.xlu2 %1822 }
 0x2e4   : > { %4342 = vmatmul.msk.f32.vlgmr.msra.gmra.mxu0 %vm1986_vm12, %v1945_v46  ;;  %1916 = vst.msk [vmem:[#allocation3 + $0x18] sm:$0xff] %vm1912_vm11, %v1823_v39 }
 0x2e9   : > { %v1825_v53 = vpop.permute.xlu0 %1824  ;;  %v1946_v29 = vld [vmem:[#allocation3 + $0x8] sm:$0xff] }
 0x2ea   : > { %v1686_v38 = vpop.permute.xlu1 %1685  ;;  %1917 = vst.msk [vmem:[#allocation3 + $0x20] sm:$0xff] %vm1912_vm11, %v1825_v53 }
 0x2eb   : > { %1751 = vst.msk [vmem:[#allocation3 + $0xf8] sm:$0xff] %vm1719_vm9, %v1686_v38  ;;  %v1829_v50 = vpop.permute.xlu2 %1828  ;;  %v1948_v11 = vld [vmem:[#allocation3 + $0x18] sm:$0xff] }
 0x2ec   : > { %1919 = vst.msk [vmem:[#allocation3 + $0x30] sm:$0xff] %vm1912_vm11, %v1829_v50  ;;  %4343 = vmatmul.msk.f32.gmra.mxu0 %vm1986_vm12, %v1946_v29 }
 0x2f1   : > { %v1831_v56 = vpop.permute.xlu0 %1830  ;;  %v1949_v55 = vld [vmem:[#allocation3 + $0x20] sm:$0xff] }
 0x2f2   : > { %v1821_v49 = vpop.permute.xlu1 %1820  ;;  %1920 = vst.msk [vmem:[#allocation3 + $0x38] sm:$0xff] %vm1912_vm11, %v1831_v56 }
 0x2f3   : > { %1915 = vst.msk [vmem:[#allocation3 + $0x10] sm:$0xff] %vm1912_vm11, %v1821_v49  ;;  %v1835_v48 = vpop.permute.xlu2 %1834  ;;  %v1951_v3 = vld [vmem:[#allocation3 + $0x30] sm:$0xff] }
 0x2f4   : > { %1922 = vst.msk [vmem:[#allocation3 + $0x48] sm:$0xff] %vm1912_vm11, %v1835_v48 }
 0x2f9   : > { %v1837_v1 = vpop.permute.xlu0 %1836  ;;  %v1952_v36 = vld [vmem:[#allocation3 + $0x38] sm:$0xff] }
 0x2fa   : > { %v1827_v43 = vpop.permute.xlu1 %1826  ;;  %v1947_v51 = vld [vmem:[#allocation3 + $0x10] sm:$0xff]  ;;  %1923 = vst.msk [vmem:[#allocation3 + $0x50] sm:$0xff] %vm1912_vm11, %v1837_v1 }
 0x2fb   : > { %1918 = vst.msk [vmem:[#allocation3 + $0x28] sm:$0xff] %vm1912_vm11, %v1827_v43  ;;  %4344 = vmatmul.msk.f32.gmra.mxu0 %vm1986_vm12, %v1947_v51  ;;  %v1841_v16 = vpop.permute.xlu2 %1840  ;;  %v1954_v0 = vld [vmem:[#allocation3 + $0x48] sm:$0xff] }
 0x2fc   : > { %1925 = vst.msk [vmem:[#allocation3 + $0x60] sm:$0xff] %vm1912_vm11, %v1841_v16 }
 0x301   : > { %v1843_v54 = vpop.permute.xlu0 %1842  ;;  %v1955_v35 = vld [vmem:[#allocation3 + $0x50] sm:$0xff] }
 0x302   : > { %v1833_v14 = vpop.permute.xlu1 %1832  ;;  %1926 = vst.msk [vmem:[#allocation3 + $0x68] sm:$0xff] %vm1912_vm11, %v1843_v54  ;;  %v1950_v10 = vld [vmem:[#allocation3 + $0x28] sm:$0xff] }
 0x303   : > { %1921 = vst.msk [vmem:[#allocation3 + $0x40] sm:$0xff] %vm1912_vm11, %v1833_v14  ;;  %4345 = vmatmul.msk.f32.gmra.mxu0 %vm1986_vm12, %v1948_v11  ;;  %v1847_v30 = vpop.permute.xlu2 %1846  ;;  %v1957_v23 = vld [vmem:[#allocation3 + $0x60] sm:$0xff] }
 0x304   : > { %1928 = vst.msk [vmem:[#allocation3 + $0x78] sm:$0xff] %vm1912_vm11, %v1847_v30 }
 0x309   : > { %v1849_v61 = vpop.permute.xlu0 %1848  ;;  %v1958_v52 = vld [vmem:[#allocation3 + $0x68] sm:$0xff] }
 0x30a   : > { %v1839_v24 = vpop.permute.xlu1 %1838  ;;  %1929 = vst.msk [vmem:[#allocation3 + $0x80] sm:$0xff] %vm1912_vm11, %v1849_v61  ;;  %v1953_v15 = vld [vmem:[#allocation3 + $0x40] sm:$0xff] }
 0x30b   : > { %1924 = vst.msk [vmem:[#allocation3 + $0x58] sm:$0xff] %vm1912_vm11, %v1839_v24  ;;  %4346 = vmatmul.msk.f32.gmra.mxu0 %vm1986_vm12, %v1949_v55  ;;  %v1853_v47 = vpop.permute.xlu2 %1852  ;;  %v1960_v46 = vld [vmem:[#allocation3 + $0x78] sm:$0xff] }
 0x30c   : > { %1931 = vst.msk [vmem:[#allocation3 + $0x90] sm:$0xff] %vm1912_vm11, %v1853_v47 }
 0x311   : > { %v1961_v2 = vld [vmem:[#allocation3 + $0x80] sm:$0xff]  ;;  %v1855_v57 = vpop.permute.xlu0 %1854 }
 0x312   : > { %v1845_v18 = vpop.permute.xlu1 %1844  ;;  %4358 = vmatmul.msk.f32.vlgmr.msra.gmra.mxu2 %vm1986_vm12, %v1961_v2  ;;  %1932 = vst.msk [vmem:[#allocation3 + $0x98] sm:$0xff] %vm1912_vm11, %v1855_v57  ;;  %v1956_v5 = vld [vmem:[#allocation3 + $0x58] sm:$0xff] }
 0x313   : > { %1927 = vst.msk [vmem:[#allocation3 + $0x70] sm:$0xff] %vm1912_vm11, %v1845_v18  ;;  %4347 = vmatmul.msk.f32.gmra.mxu0 %vm1986_vm12, %v1950_v10  ;;  %v1859_v4 = vpop.permute.xlu2 %1858  ;;  %v1963_v37 = vld [vmem:[#allocation3 + $0x90] sm:$0xff] }
 0x314   : > { %1934 = vst.msk [vmem:[#allocation3 + $0xa8] sm:$0xff] %vm1912_vm11, %v1859_v4 }
 0x319   : > { %v1861_v59 = vpop.permute.xlu0 %1860  ;;  %v1964_v12 = vld [vmem:[#allocation3 + $0x98] sm:$0xff] }
 0x31a   : > { %v1851_v58 = vpop.permute.xlu1 %1850  ;;  %1935 = vst.msk [vmem:[#allocation3 + $0xb0] sm:$0xff] %vm1912_vm11, %v1861_v59  ;;  %v1959_v40 = vld [vmem:[#allocation3 + $0x70] sm:$0xff] }
 0x31b   : > { %1930 = vst.msk [vmem:[#allocation3 + $0x88] sm:$0xff] %vm1912_vm11, %v1851_v58  ;;  %4348 = vmatmul.msk.f32.gmra.mxu0 %vm1986_vm12, %v1951_v3  ;;  %v1865_v7 = vpop.permute.xlu2 %1864  ;;  %v1966_v22 = vld [vmem:[#allocation3 + $0xa8] sm:$0xff] }
 0x31c   : > { %1937 = vst.msk [vmem:[#allocation3 + $0xc0] sm:$0xff] %vm1912_vm11, %v1865_v7 }
 0x321   : > { %v1867_v9 = vpop.permute.xlu0 %1866  ;;  %v1967_v20 = vld [vmem:[#allocation3 + $0xb0] sm:$0xff] }
 0x322   : > { %v1962_v42 = vld [vmem:[#allocation3 + $0x88] sm:$0xff]  ;;  %v1857_v41 = vpop.permute.xlu1 %1856  ;;  %1938 = vst.msk [vmem:[#allocation3 + $0xc8] sm:$0xff] %vm1912_vm11, %v1867_v9 }
 0x323   : > { %4349 = vmatmul.msk.f32.gmra.mxu0 %vm1986_vm12, %v1952_v36  ;;  %4359 = vmatmul.msk.f32.gmra.mxu2 %vm1986_vm12, %v1962_v42  ;;  %1933 = vst.msk [vmem:[#allocation3 + $0xa0] sm:$0xff] %vm1912_vm11, %v1857_v41  ;;  %v1871_v60 = vpop.permute.xlu2 %1870  ;;  %v1969_v26 = vld [vmem:[#allocation3 + $0xc0] sm:$0xff] }
 0x324   : > { %1940 = vst.msk [vmem:[#allocation3 + $0xd8] sm:$0xff] %vm1912_vm11, %v1871_v60 }
 0x329   : > { %v1873_v21 = vpop.permute.xlu0 %1872  ;;  %v1970_v33 = vld [vmem:[#allocation3 + $0xc8] sm:$0xff] }
 0x32a   : > { %v1863_v6 = vpop.permute.xlu1 %1862  ;;  %v1965_v8 = vld [vmem:[#allocation3 + $0xa0] sm:$0xff]  ;;  %1941 = vst.msk [vmem:[#allocation3 + $0xe0] sm:$0xff] %vm1912_vm11, %v1873_v21 }
 0x32b   : > { %4350 = vmatmul.msk.f32.gmra.mxu0 %vm1986_vm12, %v1953_v15  ;;  %4360 = vmatmul.msk.f32.gmra.mxu2 %vm1986_vm12, %v1963_v37  ;;  %1936 = vst.msk [vmem:[#allocation3 + $0xb8] sm:$0xff] %vm1912_vm11, %v1863_v6  ;;  %v1972_v56 = vld [vmem:[#allocation3 + $0xd8] sm:$0xff] }
 0x331   : > { %v1973_v16 = vld [vmem:[#allocation3 + $0xe0] sm:$0xff] }
 0x332   : > { %v1869_v63 = vpop.permute.xlu1 %1868  ;;  %v1968_v17 = vld [vmem:[#allocation3 + $0xb8] sm:$0xff] }
 0x333   : > { %4351 = vmatmul.msk.f32.gmra.mxu0 %vm1986_vm12, %v1954_v0  ;;  %4361 = vmatmul.msk.f32.gmra.mxu2 %vm1986_vm12, %v1964_v12  ;;  %1939 = vst.msk [vmem:[#allocation3 + $0xd0] sm:$0xff] %vm1912_vm11, %v1869_v63 }
 0x33a   : > { %v1875_v13 = vpop.permute.xlu1 %1874  ;;  %v1971_v50 = vld [vmem:[#allocation3 + $0xd0] sm:$0xff] }
 0x33b   : > { %4352 = vmatmul.msk.f32.gmra.mxu0 %vm1986_vm12, %v1955_v35  ;;  %4362 = vmatmul.msk.f32.gmra.mxu2 %vm1986_vm12, %v1965_v8  ;;  %1942 = vst.msk [vmem:[#allocation3 + $0xe8] sm:$0xff] %vm1912_vm11, %v1875_v13 }
 0x342   : > { %v1974_v55 = vld [vmem:[#allocation3 + $0xe8] sm:$0xff] }
 0x343   : > { %4353 = vmatmul.msk.f32.gmra.mxu0 %vm1986_vm12, %v1956_v5  ;;  %4363 = vmatmul.msk.f32.gmra.mxu2 %vm1986_vm12, %v1966_v22 }
 0x34b   : > { %4354 = vmatmul.msk.f32.gmra.mxu0 %vm1986_vm12, %v1957_v23  ;;  %4364 = vmatmul.msk.f32.gmra.mxu2 %vm1986_vm12, %v1967_v20 }
 0x353   : > { %4355 = vmatmul.msk.f32.gmra.mxu0 %vm1986_vm12, %v1958_v52  ;;  %4365 = vmatmul.msk.f32.gmra.mxu2 %vm1986_vm12, %v1968_v17 }
 0x35b   : > { %4356 = vmatmul.msk.f32.gmra.mxu0 %vm1986_vm12, %v1959_v40  ;;  %4366 = vmatmul.msk.f32.gmra.mxu2 %vm1986_vm12, %v1969_v26 }
 0x361   : > { %v2104_v32 = vpop.f32.mrf.mxu0 }
 0x362   : > { %v2105_v39 = vadd.f32 %v5737_v19, %v2104_v32 }
 0x363   : > { %4357 = vmatmul.msk.f32.gmra.mxu0 %vm1986_vm12, %v1960_v46  ;;  %4367 = vmatmul.msk.f32.gmra.mxu2 %vm1986_vm12, %v1970_v33 }
 0x364   : > { %vm2200_vm13 = vcmp.ge.f32.partialorder %v2105_v39, 0.0  ;;  %v2232_v27 = vmul.f32 0.2, %v2105_v39 }
 0x366   : > { %v2264_v38 = vsel %vm2200_vm13, %v2105_v39, %v2232_v27 }
 0x367   : > { %2296 = vst.msk [vmem:[#allocation2 + $0x19] sm:$0xff] %vm225_vm0, %v2264_v38 }
 0x369   : > { %v2107_v44 = vpop.f32.mrf.mxu0 }
 0x36a   : > { %v2108_v53 = vadd.f32 %v5737_v19, %v2107_v44 }
 0x36b   : > { %4368 = vmatmul.msk.f32.gmra.mxu2 %vm1986_vm12, %v1971_v50 }
 0x36c   : > { %vm2201_vm14 = vcmp.ge.f32.partialorder %v2108_v53, 0.0  ;;  %v2233_v48 = vmul.f32 0.2, %v2108_v53 }
 0x36e   : > { %v2394_v29 = vld [vmem:[#allocation2 + $0x19] sm:$0xff]  ;;  %v2265_v43 = vsel %vm2201_vm14, %v2108_v53, %v2233_v48 }
 0x36f   : > { %v5746_v49 = vld [vmem:[#allocation2 + $0x18] sm:$0xff]  ;;  %2460 = vrot.lane.b32.xlu0 %v2394_v29, %s4449_s24  ;;  %2297 = vst.msk [vmem:[#allocation2 + $0x21] sm:$0xff] %vm225_vm0, %v2265_v43  ;;  %v1877_v29 = vpop.permute.xlu2 %1876 }
 0x370   : > { %2362 = vst.msk [vmem:[#allocation3 + $0x10] sm:$0xff] %vm225_vm0, %v5746_v49 }
 0x371   : > { %1943 = vst.msk [vmem:[#allocation3 + $0xf0] sm:$0xff] %vm1912_vm11, %v1877_v29 }
 0x373   : > { %4369 = vmatmul.msk.f32.gmra.mxu2 %vm1986_vm12, %v1972_v56 }
 0x376   : > { %v2395_v11 = vld [vmem:[#allocation2 + $0x21] sm:$0xff] }
 0x377   : > { %v5754_v14 = vld [vmem:[#allocation2 + $0x20] sm:$0xff]  ;;  %2462 = vrot.lane.b32.xlu1 %v2395_v11, %s4449_s24 }
 0x378   : > { %v2110_v51 = vpop.f32.mrf.mxu0  ;;  %2363 = vst.msk [vmem:[#allocation3 + $0x18] sm:$0xff] %vm225_vm0, %v5754_v14 }
 0x379   : > { %v2111_v1 = vadd.f32 %v5737_v19, %v2110_v51 }
 0x37b   : > { %vm2202_vm15 = vcmp.ge.f32.partialorder %v2111_v1, 0.0  ;;  %v2234_v30 = vmul.f32 0.2, %v2111_v1  ;;  %4370 = vmatmul.msk.f32.gmra.mxu2 %vm1986_vm12, %v1973_v16 }
 0x37d   : > { %v2266_v54 = vsel %vm2202_vm15, %v2111_v1, %v2234_v30 }
 0x37e   : > { %2298 = vst.msk [vmem:[#allocation2 + $0x31] sm:$0xff] %vm225_vm0, %v2266_v54 }
 0x380   : > { %v2113_v24 = vpop.f32.mrf.mxu0 }
 0x381   : > { %v2114_v47 = vadd.f32 %v5737_v19, %v2113_v24 }
 0x383   : > { %vm2203_vm1 = vcmp.ge.f32.partialorder %v2114_v47, 0.0  ;;  %v2235_v61 = vmul.f32 0.2, %v2114_v47  ;;  %4371 = vmatmul.msk.f32.gmra.mxu2 %vm1986_vm12, %v1974_v55 }
 0x385   : > { %v2267_v18 = vsel %vm2203_vm1, %v2114_v47, %v2235_v61  ;;  %v2396_v10 = vld [vmem:[#allocation2 + $0x31] sm:$0xff] }
 0x386   : > { %v5763_v2 = vld [vmem:[#allocation2 + $0x30] sm:$0xff]  ;;  %2299 = vst.msk [vmem:[#allocation2 + $0x39] sm:$0xff] %vm225_vm0, %v2267_v18  ;;  %2464 = vrot.lane.b32.xlu2 %v2396_v10, %s4449_s24 }
 0x387   : > { %2364 = vst.msk [vmem:[#allocation3 + $0x20] sm:$0xff] %vm225_vm0, %v5763_v2 }
 0x388   : > { %v2116_v57 = vpop.f32.mrf.mxu0 }
 0x389   : > { %v2117_v4 = vadd.f32 %v5737_v19, %v2116_v57  ;;  %v2329_v57 = vld [vmem:[#allocation2 + $0x8] sm:$0xff] }
 0x38a   : > { %2361 = vst.msk [vmem:[#allocation3 + $0x8] sm:$0xff] %vm225_vm0, %v2329_v57 }
 0x38b   : > { %vm2204_vm2 = vcmp.ge.f32.partialorder %v2117_v4, 0.0  ;;  %v2236_v58 = vmul.f32 0.2, %v2117_v4 }
 0x38d   : > { %v2268_v3 = vsel %vm2204_vm2, %v2117_v4, %v2236_v58  ;;  %v2397_v59 = vld [vmem:[#allocation2 + $0x39] sm:$0xff] }
 0x38e   : > { %v5770_v36 = vld [vmem:[#allocation2 + $0x38] sm:$0xff]  ;;  %2300 = vst.msk [vmem:[#allocation2 + $0x49] sm:$0xff] %vm225_vm0, %v2268_v3  ;;  %2466 = vrot.lane.b32.xlu0 %v2397_v59, %s4449_s24  ;;  %v2459_v59 = vpop.permute.xlu2 %2458 }
 0x38f   : > { %2365 = vst.msk [vmem:[#allocation3 + $0x28] sm:$0xff] %vm225_vm0, %v5770_v36 }
 0x390   : > { %v2119_v42 = vpop.f32.mrf.mxu0  ;;  %2553 = vst.msk [vmem:[#allocation3 + $0x8] sm:$0xff] %vm560_vm3, %v2459_v59 }
 0x391   : > { %v2120_v41 = vadd.f32 %v5737_v19, %v2119_v42 }
 0x393   : > { %vm2205_vm13 = vcmp.ge.f32.partialorder %v2120_v41, 0.0  ;;  %v2237_v37 = vmul.f32 0.2, %v2120_v41 }
 0x395   : > { %v2269_v15 = vsel %vm2205_vm13, %v2120_v41, %v2237_v37  ;;  %v2398_v6 = vld [vmem:[#allocation2 + $0x49] sm:$0xff]  ;;  %v2152_v9 = vpop.f32.mrf.mxu2  ;;  %v1879_v37 = vpop.permute.xlu0 %1878 }
 0x396   : > { %v5777_v7 = vld [vmem:[#allocation2 + $0x48] sm:$0xff]  ;;  %2301 = vst.msk [vmem:[#allocation2 + $0x51] sm:$0xff] %vm225_vm0, %v2269_v15  ;;  %2468 = vrot.lane.b32.xlu1 %v2398_v6, %s4449_s24  ;;  %v2153_v35 = vadd.f32 %v5737_v19, %v2152_v9 }
 0x397   : > { %2366 = vst.msk [vmem:[#allocation3 + $0x30] sm:$0xff] %vm225_vm0, %v5777_v7 }
 0x398   : > { %v2122_v12 = vpop.f32.mrf.mxu0  ;;  %vm2216_vm15 = vcmp.ge.f32.partialorder %v2153_v35, 0.0  ;;  %v2248_v22 = vmul.f32 0.2, %v2153_v35  ;;  %1944 = vst.msk [vmem:[#allocation3 + $0xf8] sm:$0xff] %vm1912_vm11, %v1879_v37 }
 0x399   : > { %v2123_v0 = vadd.f32 %v5737_v19, %v2122_v12 }
 0x39a   : > { %v2280_v20 = vsel %vm2216_vm15, %v2153_v35, %v2248_v22 }
 0x39b   : > { %vm2206_vm14 = vcmp.ge.f32.partialorder %v2123_v0, 0.0  ;;  %v2238_v8 = vmul.f32 0.2, %v2123_v0  ;;  %2312 = vst.msk [vmem:[#allocation2 + $0xd9] sm:$0xff] %vm225_vm0, %v2280_v20 }
 0x39d   : > { %v2270_v63 = vsel %vm2206_vm14, %v2123_v0, %v2238_v8  ;;  %v2399_v5 = vld [vmem:[#allocation2 + $0x51] sm:$0xff] }
 0x39e   : > { %v5785_v60 = vld [vmem:[#allocation2 + $0x50] sm:$0xff]  ;;  %2302 = vst.msk [vmem:[#allocation2 + $0x61] sm:$0xff] %vm225_vm0, %v2270_v63  ;;  %2470 = vrot.lane.b32.xlu2 %v2399_v5, %s4449_s24 }
 0x39f   : > { %2367 = vst.msk [vmem:[#allocation3 + $0x38] sm:$0xff] %vm225_vm0, %v5785_v60 }
 0x3a0   : > { %v2125_v23 = vpop.f32.mrf.mxu0 }
 0x3a1   : > { %v2126_v28 = vadd.f32 %v5737_v19, %v2125_v23 }
 0x3a2   : > { %v5803_v40 = vld [vmem:[#allocation2 + $0xd8] sm:$0xff] }
 0x3a3   : > { %vm2207_vm1 = vcmp.ge.f32.partialorder %v2126_v28, 0.0  ;;  %v2239_v17 = vmul.f32 0.2, %v2126_v28  ;;  %2378 = vst.msk [vmem:[#allocation3 + $0x90] sm:$0xff] %vm225_vm0, %v5803_v40 }
 0x3a5   : > { %v2271_v52 = vsel %vm2207_vm1, %v2126_v28, %v2239_v17  ;;  %v5793_v21 = vld [vmem:[#allocation2 + $0x61] sm:$0xff] }
 0x3a6   : > { %v5795_v62 = vld [vmem:[#allocation2 + $0x60] sm:$0xff]  ;;  %2303 = vst.msk [vmem:[#allocation2 + $0x69] sm:$0xff] %vm225_vm0, %v2271_v52  ;;  %v2155_v34 = vpop.f32.mrf.mxu2  ;;  %2472 = vrot.lane.b32.xlu0 %v5793_v21, %s4449_s24 }
 0x3a7   : > { %v2156_v26 = vadd.f32 %v5737_v19, %v2155_v34  ;;  %2368 = vst.msk [vmem:[#allocation3 + $0x40] sm:$0xff] %vm225_vm0, %v5795_v62 }
 0x3a8   : > { %v2128_v13 = vpop.f32.mrf.mxu0 }
 0x3a9   : > { %vm2217_vm2 = vcmp.ge.f32.partialorder %v2156_v26, 0.0  ;;  %v2249_v45 = vmul.f32 0.2, %v2156_v26  ;;  %v2129_v33 = vadd.f32 %v5737_v19, %v2128_v13  ;;  %v2328_v13 = vld [vmem:[#allocation2] sm:$0xff] }
 0x3aa   : > { %2360 = vst.msk [vmem:[#allocation3] sm:$0xff] %vm225_vm0, %v2328_v13 }
 0x3ab   : > { %v2281_v32 = vsel %vm2217_vm2, %v2156_v26, %v2249_v45  ;;  %vm2208_vm13 = vcmp.ge.f32.partialorder %v2129_v33, 0.0  ;;  %v2240_v46 = vmul.f32 0.2, %v2129_v33 }
 0x3ac   : > { %2313 = vst.msk [vmem:[#allocation2 + $0xe1] sm:$0xff] %vm225_vm0, %v2281_v32 }
 0x3ad   : > { %v2272_v39 = vsel %vm2208_vm13, %v2129_v33, %v2240_v46  ;;  %v5809_v27 = vld [vmem:[#allocation2 + $0x69] sm:$0xff] }
 0x3ae   : > { %v5811_v38 = vld [vmem:[#allocation2 + $0x68] sm:$0xff]  ;;  %2304 = vst.msk [vmem:[#allocation2 + $0x79] sm:$0xff] %vm225_vm0, %v2272_v39  ;;  %v2158_v50 = vpop.f32.mrf.mxu2  ;;  %2474 = vrot.lane.b32.xlu1 %v5809_v27, %s4449_s24  ;;  %v2457_v39 = vpop.permute.xlu1 %2456 }
 0x3af   : > { %v2159_v44 = vadd.f32 %v5737_v19, %v2158_v50  ;;  %2369 = vst.msk [vmem:[#allocation3 + $0x48] sm:$0xff] %vm225_vm0, %v5811_v38 }
 0x3b0   : > { %v2131_v53 = vpop.f32.mrf.mxu0  ;;  %2552 = vst.msk [vmem:[#allocation3] sm:$0xff] %vm560_vm3, %v2457_v39 }
 0x3b1   : > { %vm2218_vm14 = vcmp.ge.f32.partialorder %v2159_v44, 0.0  ;;  %v2250_v48 = vmul.f32 0.2, %v2159_v44  ;;  %v2132_v56 = vadd.f32 %v5737_v19, %v2131_v53 }
 0x3b3   : > { %v2282_v43 = vsel %vm2218_vm14, %v2159_v44, %v2250_v48  ;;  %vm2209_vm15 = vcmp.ge.f32.partialorder %v2132_v56, 0.0  ;;  %v2241_v51 = vmul.f32 0.2, %v2132_v56  ;;  %v5822_v16 = vld [vmem:[#allocation2 + $0xe0] sm:$0xff] }
 0x3b4   : > { %2314 = vst.msk [vmem:[#allocation2 + $0xf1] sm:$0xff] %vm225_vm0, %v2282_v43 }
 0x3b5   : > { %v2273_v1 = vsel %vm2209_vm15, %v2132_v56, %v2241_v51  ;;  %v5824_v11 = vld [vmem:[#allocation2 + $0x79] sm:$0xff]  ;;  %2379 = vst.msk [vmem:[#allocation3 + $0x98] sm:$0xff] %vm225_vm0, %v5822_v16 }
 0x3b6   : > { %v5826_v30 = vld [vmem:[#allocation2 + $0x78] sm:$0xff]  ;;  %2305 = vst.msk [vmem:[#allocation2 + $0x81] sm:$0xff] %vm225_vm0, %v2273_v1  ;;  %v2161_v54 = vpop.f32.mrf.mxu2  ;;  %2476 = vrot.lane.b32.xlu2 %v5824_v11, %s4449_s24 }
 0x3b7   : > { %v2162_v24 = vadd.f32 %v5737_v19, %v2161_v54  ;;  %2370 = vst.msk [vmem:[#allocation3 + $0x50] sm:$0xff] %vm225_vm0, %v5826_v30 }
 0x3b8   : > { %v2134_v55 = vpop.f32.mrf.mxu0 }
 0x3b9   : > { %vm2219_vm1 = vcmp.ge.f32.partialorder %v2162_v24, 0.0  ;;  %v2251_v47 = vmul.f32 0.2, %v2162_v24  ;;  %v2135_v61 = vadd.f32 %v5737_v19, %v2134_v55 }
 0x3bb   : > { %v2283_v18 = vsel %vm2219_vm1, %v2162_v24, %v2251_v47  ;;  %vm2210_vm2 = vcmp.ge.f32.partialorder %v2135_v61, 0.0  ;;  %v2242_v10 = vmul.f32 0.2, %v2135_v61  ;;  %v5848_v15 = vld [vmem:[#allocation2 + $0xf0] sm:$0xff] }
 0x3bc   : > { %2315 = vst.msk [vmem:[#allocation2 + $0xf9] sm:$0xff] %vm225_vm0, %v2283_v18 }
 0x3bd   : > { %v2274_v4 = vsel %vm2210_vm2, %v2135_v61, %v2242_v10  ;;  %v5838_v58 = vld [vmem:[#allocation2 + $0x81] sm:$0xff]  ;;  %2380 = vst.msk [vmem:[#allocation3 + $0xa0] sm:$0xff] %vm225_vm0, %v5848_v15 }
 0x3be   : > { %2306 = vst.msk [vmem:[#allocation2 + $0x91] sm:$0xff] %vm225_vm0, %v2274_v4  ;;  %v2164_v3 = vpop.f32.mrf.mxu2  ;;  %2478 = vrot.lane.b32.xlu0 %v5838_v58, %s4449_s24  ;;  %v5844_v42 = vld [vmem:[#allocation2 + $0x80] sm:$0xff] }
 0x3bf   : > { %v2165_v41 = vadd.f32 %v5737_v19, %v2164_v3  ;;  %2371 = vst.msk [vmem:[#allocation3 + $0x58] sm:$0xff] %vm225_vm0, %v5844_v42  ;;  %v6072_v25 = vld [vmem:[#allocation2 + $0x7a] sm:$0xff] }
 0x3c0   : > { %v2137_v6 = vpop.f32.mrf.mxu0  ;;  %7096 = vst [vmem:[#allocation45_spill] sm:$0xff] %v6072_v25 }
 0x3c1   : > { %vm2220_vm13 = vcmp.ge.f32.partialorder %v2165_v41, 0.0  ;;  %v2252_v12 = vmul.f32 0.2, %v2165_v41  ;;  %v2138_v0 = vadd.f32 %v5737_v19, %v2137_v6 }
 0x3c3   : > { %v2284_v9 = vsel %vm2220_vm13, %v2165_v41, %v2252_v12  ;;  %vm2211_vm14 = vcmp.ge.f32.partialorder %v2138_v0, 0.0  ;;  %v2243_v8 = vmul.f32 0.2, %v2138_v0  ;;  %v5857_v35 = vld [vmem:[#allocation2 + $0xf8] sm:$0xff] }
 0x3c4   : > { %2316 = vst.msk [vmem:[#allocation2 + $0x109] sm:$0xff] %vm225_vm0, %v2284_v9 }
 0x3c5   : > { %v2275_v63 = vsel %vm2211_vm14, %v2138_v0, %v2243_v8  ;;  %v5859_v22 = vld [vmem:[#allocation2 + $0x91] sm:$0xff]  ;;  %2381 = vst.msk [vmem:[#allocation3 + $0xa8] sm:$0xff] %vm225_vm0, %v5857_v35 }
 0x3c6   : > { %v5861_v5 = vld [vmem:[#allocation2 + $0x90] sm:$0xff]  ;;  %2307 = vst.msk [vmem:[#allocation2 + $0x99] sm:$0xff] %vm225_vm0, %v2275_v63  ;;  %v2167_v20 = vpop.f32.mrf.mxu2  ;;  %2480 = vrot.lane.b32.xlu1 %v5859_v22, %s4449_s24 }
 0x3c7   : > { %v2168_v23 = vadd.f32 %v5737_v19, %v2167_v20  ;;  %2372 = vst.msk [vmem:[#allocation3 + $0x60] sm:$0xff] %vm225_vm0, %v5861_v5 }
 0x3c8   : > { %v2140_v28 = vpop.f32.mrf.mxu0 }
 0x3c9   : > { %vm2221_vm15 = vcmp.ge.f32.partialorder %v2168_v23, 0.0  ;;  %v2253_v17 = vmul.f32 0.2, %v2168_v23  ;;  %v2141_v52 = vadd.f32 %v5737_v19, %v2140_v28 }
 0x3cb   : > { %v2285_v34 = vsel %vm2221_vm15, %v2168_v23, %v2253_v17  ;;  %vm2212_vm1 = vcmp.ge.f32.partialorder %v2141_v52, 0.0  ;;  %v2244_v26 = vmul.f32 0.2, %v2141_v52  ;;  %v5881_v50 = vld [vmem:[#allocation2 + $0x108] sm:$0xff] }
 0x3cc   : > { %2317 = vst.msk [vmem:[#allocation2 + $0x111] sm:$0xff] %vm225_vm0, %v2285_v34  ;;  %v5927_v34 = vld [vmem:[#allocation2 + $0xd9] sm:$0xff] }
 0x3cd   : > { %v2276_v45 = vsel %vm2212_vm1, %v2141_v52, %v2244_v26  ;;  %v5873_v33 = vld [vmem:[#allocation2 + $0x99] sm:$0xff]  ;;  %2382 = vst.msk [vmem:[#allocation3 + $0xb0] sm:$0xff] %vm225_vm0, %v5881_v50 }
 0x3ce   : > { %v5876_v32 = vld [vmem:[#allocation2 + $0x98] sm:$0xff]  ;;  %2308 = vst.msk [vmem:[#allocation2 + $0xa9] sm:$0xff] %vm225_vm0, %v2276_v45  ;;  %v2170_v46 = vpop.f32.mrf.mxu2  ;;  %2482 = vrot.lane.b32.xlu2 %v5873_v33, %s4449_s24 }
 0x3cf   : > { %v2171_v44 = vadd.f32 %v5737_v19, %v2170_v46  ;;  %2373 = vst.msk [vmem:[#allocation3 + $0x68] sm:$0xff] %vm225_vm0, %v5876_v32 }
 0x3d0   : > { %v2143_v53 = vpop.f32.mrf.mxu0 }
 0x3d1   : > { %vm2222_vm2 = vcmp.ge.f32.partialorder %v2171_v44, 0.0  ;;  %v2254_v29 = vmul.f32 0.2, %v2171_v44  ;;  %v2144_v48 = vadd.f32 %v5737_v19, %v2143_v53 }
 0x3d3   : > { %v2286_v56 = vsel %vm2222_vm2, %v2171_v44, %v2254_v29  ;;  %vm2213_vm13 = vcmp.ge.f32.partialorder %v2144_v48, 0.0  ;;  %v2245_v43 = vmul.f32 0.2, %v2144_v48  ;;  %v5891_v51 = vld [vmem:[#allocation2 + $0x110] sm:$0xff] }
 0x3d4   : > { %2318 = vst.msk [vmem:[#allocation2 + $0x121] sm:$0xff] %vm225_vm0, %v2286_v56 }
 0x3d5   : > { %v2277_v1 = vsel %vm2213_vm13, %v2144_v48, %v2245_v43  ;;  %v5893_v54 = vld [vmem:[#allocation2 + $0xa9] sm:$0xff]  ;;  %2383 = vst.msk [vmem:[#allocation3 + $0xb8] sm:$0xff] %vm225_vm0, %v5891_v51  ;;  %v5946_v48 = vld [vmem:[#allocation2 + $0xf9] sm:$0xff] }
 0x3d6   : > { %v5895_v24 = vld [vmem:[#allocation2 + $0xa8] sm:$0xff]  ;;  %2309 = vst.msk [vmem:[#allocation2 + $0xb1] sm:$0xff] %vm225_vm0, %v2277_v1  ;;  %v2173_v55 = vpop.f32.mrf.mxu2  ;;  %2484 = vrot.lane.b32.xlu0 %v5893_v54, %s4449_s24 }
 0x3d7   : > { %v2174_v47 = vadd.f32 %v5737_v19, %v2173_v55  ;;  %2374 = vst.msk [vmem:[#allocation3 + $0x70] sm:$0xff] %vm225_vm0, %v5895_v24  ;;  %v5955_v1 = vld [vmem:[#allocation2 + $0xe1] sm:$0xff] }
 0x3d8   : > { %v2146_v61 = vpop.f32.mrf.mxu0  ;;  %v1975_v55 = vld [vmem:[#allocation3 + $0xf0] sm:$0xff] }
 0x3d9   : > { %vm2223_vm14 = vcmp.ge.f32.partialorder %v2174_v47, 0.0  ;;  %v2255_v18 = vmul.f32 0.2, %v2174_v47  ;;  %v2147_v10 = vadd.f32 %v5737_v19, %v2146_v61  ;;  %4372 = vmatmul.msk.f32.gmra.mxu2 %vm1986_vm12, %v1975_v55 }
 0x3db   : > { %v2287_v57 = vsel %vm2223_vm14, %v2174_v47, %v2255_v18  ;;  %vm2214_vm15 = vcmp.ge.f32.partialorder %v2147_v10, 0.0  ;;  %v2246_v4 = vmul.f32 0.2, %v2147_v10  ;;  %v5906_v3 = vld [vmem:[#allocation2 + $0x120] sm:$0xff] }
 0x3dc   : > { %2319 = vst.msk [vmem:[#allocation2 + $0x129] sm:$0xff] %vm225_vm0, %v2287_v57 }
 0x3dd   : > { %v2278_v59 = vsel %vm2214_vm15, %v2147_v10, %v2246_v4  ;;  %v5909_v41 = vld [vmem:[#allocation2 + $0xb1] sm:$0xff]  ;;  %2384 = vst.msk [vmem:[#allocation3 + $0xc0] sm:$0xff] %vm225_vm0, %v5906_v3  ;;  %v5970_v4 = vld [vmem:[#allocation2 + $0x121] sm:$0xff] }
 0x3de   : > { %2310 = vst.msk [vmem:[#allocation2 + $0xc1] sm:$0xff] %vm225_vm0, %v2278_v59  ;;  %v2176_v37 = vpop.f32.mrf.mxu2  ;;  %2486 = vrot.lane.b32.xlu1 %v5909_v41, %s4449_s24  ;;  %v5916_v6 = vld [vmem:[#allocation2 + $0xb0] sm:$0xff] }
 0x3df   : > { %v2177_v12 = vadd.f32 %v5737_v19, %v2176_v37  ;;  %2375 = vst.msk [vmem:[#allocation3 + $0x78] sm:$0xff] %vm225_vm0, %v5916_v6  ;;  %v5972_v59 = vld [vmem:[#allocation2 + $0xf1] sm:$0xff] }
 0x3e0   : > { %v2149_v0 = vpop.f32.mrf.mxu0  ;;  %v2465_v9 = vpop.permute.xlu2 %2464 }
 0x3e1   : > { %vm2224_vm1 = vcmp.ge.f32.partialorder %v2177_v12, 0.0  ;;  %v2256_v8 = vmul.f32 0.2, %v2177_v12  ;;  %v2150_v63 = vadd.f32 %v5737_v19, %v2149_v0  ;;  %2556 = vst.msk [vmem:[#allocation3 + $0x20] sm:$0xff] %vm560_vm3, %v2465_v9  ;;  %v2461_v20 = vpop.permute.xlu0 %2460  ;;  %v1976_v0 = vld [vmem:[#allocation3 + $0xf8] sm:$0xff] }
 0x3e2   : > { %2554 = vst.msk [vmem:[#allocation3 + $0x10] sm:$0xff] %vm560_vm3, %v2461_v20  ;;  %4373 = vmatmul.msk.f32.gmra.mxu2 %vm1986_vm12, %v1976_v0 }
 0x3e3   : > { %v2288_v23 = vsel %vm2224_vm1, %v2177_v12, %v2256_v8  ;;  %vm2215_vm2 = vcmp.ge.f32.partialorder %v2150_v63, 0.0  ;;  %v2247_v28 = vmul.f32 0.2, %v2150_v63  ;;  %v5925_v17 = vld [vmem:[#allocation2 + $0x128] sm:$0xff] }
 0x3e4   : > { %2320 = vst.msk [vmem:[#allocation2 + $0x139] sm:$0xff] %vm225_vm0, %v2288_v23  ;;  %v5980_v12 = vld [vmem:[#allocation2 + $0x109] sm:$0xff] }
 0x3e5   : > { %v2279_v52 = vsel %vm2215_vm2, %v2150_v63, %v2247_v28  ;;  %v5929_v26 = vld [vmem:[#allocation2 + $0xc1] sm:$0xff]  ;;  %2385 = vst.msk [vmem:[#allocation3 + $0xc8] sm:$0xff] %vm225_vm0, %v5925_v17 }
 0x3e6   : > { %v5931_v13 = vld [vmem:[#allocation2 + $0xc0] sm:$0xff]  ;;  %2311 = vst.msk [vmem:[#allocation2 + $0xc9] sm:$0xff] %vm225_vm0, %v2279_v52  ;;  %v2179_v45 = vpop.f32.mrf.mxu2  ;;  %2492 = vrot.lane.b32.xlu1 %v5927_v34, %s4449_s24  ;;  %2488 = vrot.lane.b32.xlu2 %v5929_v26, %s4449_s24  ;;  %v5992_v52 = vld [vmem:[#allocation2 + $0x111] sm:$0xff] }
 0x3e7   : > { %v2180_v46 = vadd.f32 %v5737_v19, %v2179_v45  ;;  %2376 = vst.msk [vmem:[#allocation3 + $0x80] sm:$0xff] %vm225_vm0, %v5931_v13 }
 0x3e9   : > { %vm2225_vm13 = vcmp.ge.f32.partialorder %v2180_v46, 0.0  ;;  %v2257_v39 = vmul.f32 0.2, %v2180_v46  ;;  %v2463_v29 = vpop.permute.xlu1 %2462 }
 0x3ea   : > { %2555 = vst.msk [vmem:[#allocation3 + $0x18] sm:$0xff] %vm560_vm3, %v2463_v29 }
 0x3eb   : > { %v2289_v44 = vsel %vm2225_vm13, %v2180_v46, %v2257_v39  ;;  %v5943_v53 = vld [vmem:[#allocation2 + $0x138] sm:$0xff]  ;;  %v6000_v46 = vld [vmem:[#allocation2 + $0x129] sm:$0xff] }
 0x3ec   : > { %2321 = vst.msk [vmem:[#allocation2 + $0x141] sm:$0xff] %vm225_vm0, %v2289_v44 }
 0x3ed   : > { %v5948_v56 = vld [vmem:[#allocation2 + $0xc9] sm:$0xff]  ;;  %2386 = vst.msk [vmem:[#allocation3 + $0xd0] sm:$0xff] %vm225_vm0, %v5943_v53 }
 0x3ee   : > { %v2182_v43 = vpop.f32.mrf.mxu2  ;;  %2498 = vrot.lane.b32.xlu1 %v5946_v48, %s4449_s24  ;;  %2490 = vrot.lane.b32.xlu0 %v5948_v56, %s4449_s24  ;;  %v5957_v47 = vld [vmem:[#allocation2 + $0xc8] sm:$0xff] }
 0x3ef   : > { %v2183_v61 = vadd.f32 %v5737_v19, %v2182_v43  ;;  %2494 = vrot.lane.b32.xlu2 %v5955_v1, %s4449_s24  ;;  %2377 = vst.msk [vmem:[#allocation3 + $0x88] sm:$0xff] %vm225_vm0, %v5957_v47 }
 0x3f1   : > { %vm2226_vm14 = vcmp.ge.f32.partialorder %v2183_v61, 0.0  ;;  %v2258_v18 = vmul.f32 0.2, %v2183_v61 }
 0x3f3   : > { %v2290_v10 = vsel %vm2226_vm14, %v2183_v61, %v2258_v18  ;;  %v5968_v57 = vld [vmem:[#allocation2 + $0x140] sm:$0xff] }
 0x3f4   : > { %2322 = vst.msk [vmem:[#allocation2 + $0x151] sm:$0xff] %vm225_vm0, %v2290_v10  ;;  %v5990_v28 = vld [vmem:[#allocation2 + $0x141] sm:$0xff]  ;;  %v6009_v61 = vld [vmem:[#allocation2 + $0x139] sm:$0xff] }
 0x3f5   : > { %2387 = vst.msk [vmem:[#allocation3 + $0xd8] sm:$0xff] %vm225_vm0, %v5968_v57 }
 0x3f6   : > { %v2185_v37 = vpop.f32.mrf.mxu2  ;;  %2504 = vrot.lane.b32.xlu1 %v5970_v4, %s4449_s24  ;;  %2496 = vrot.lane.b32.xlu0 %v5972_v59, %s4449_s24 }
 0x3f7   : > { %v2186_v9 = vadd.f32 %v5737_v19, %v2185_v37  ;;  %2500 = vrot.lane.b32.xlu2 %v5980_v12, %s4449_s24 }
 0x3f8   : > { %v2471_v8 = vpop.permute.xlu2 %2470 }
 0x3f9   : > { %vm2227_vm15 = vcmp.ge.f32.partialorder %v2186_v9, 0.0  ;;  %v2259_v63 = vmul.f32 0.2, %v2186_v9  ;;  %2559 = vst.msk [vmem:[#allocation3 + $0x38] sm:$0xff] %vm560_vm3, %v2471_v8 }
 0x3fb   : > { %v2291_v20 = vsel %vm2227_vm15, %v2186_v9, %v2259_v63  ;;  %v5987_v23 = vld [vmem:[#allocation2 + $0x150] sm:$0xff] }
 0x3fc   : > { %2323 = vst.msk [vmem:[#allocation2 + $0x159] sm:$0xff] %vm225_vm0, %v2291_v20  ;;  %v6015_v10 = vld [vmem:[#allocation2 + $0x151] sm:$0xff] }
 0x3fd   : > { %2388 = vst.msk [vmem:[#allocation3 + $0xe0] sm:$0xff] %vm225_vm0, %v5987_v23 }
 0x3fe   : > { %v2188_v45 = vpop.f32.mrf.mxu2  ;;  %2510 = vrot.lane.b32.xlu1 %v5990_v28, %s4449_s24  ;;  %2502 = vrot.lane.b32.xlu0 %v5992_v52, %s4449_s24 }
 0x3ff   : > { %v2189_v39 = vadd.f32 %v5737_v19, %v2188_v45  ;;  %2506 = vrot.lane.b32.xlu2 %v6000_v46, %s4449_s24 }
 0x400   : > { %v2467_v44 = vpop.permute.xlu0 %2466 }
 0x401   : > { %vm2228_vm1 = vcmp.ge.f32.partialorder %v2189_v39, 0.0  ;;  %v2260_v29 = vmul.f32 0.2, %v2189_v39  ;;  %2557 = vst.msk [vmem:[#allocation3 + $0x28] sm:$0xff] %vm560_vm3, %v2467_v44  ;;  %v2585_v44 = vld [vmem:[#allocation2 + $0xa] sm:$0xff] }
 0x403   : > { %v2292_v43 = vsel %vm2228_vm1, %v2189_v39, %v2260_v29  ;;  %v6007_v55 = vld [vmem:[#allocation2 + $0x158] sm:$0xff] }
 0x404   : > { %2324 = vst.msk [vmem:[#allocation2 + $0x169] sm:$0xff] %vm225_vm0, %v2292_v43  ;;  %v6028_v45 = vld [vmem:[#allocation2 + $0x159] sm:$0xff]  ;;  %v2584_v43 = vld [vmem:[#allocation2 + $0x2] sm:$0xff] }
 0x405   : > { %2389 = vst.msk [vmem:[#allocation3 + $0xe8] sm:$0xff] %vm225_vm0, %v6007_v55 }
 0x406   : > { %v2191_v18 = vpop.f32.mrf.mxu2  ;;  %2508 = vrot.lane.b32.xlu0 %v6009_v61, %s4449_s24 }
 0x407   : > { %v2192_v37 = vadd.f32 %v5737_v19, %v2191_v18  ;;  %2512 = vrot.lane.b32.xlu2 %v6015_v10, %s4449_s24 }
 0x408   : > { %v2469_v0 = vpop.permute.xlu1 %2468 }
 0x409   : > { %vm2229_vm2 = vcmp.ge.f32.partialorder %v2192_v37, 0.0  ;;  %v2261_v9 = vmul.f32 0.2, %v2192_v37  ;;  %2558 = vst.msk [vmem:[#allocation3 + $0x30] sm:$0xff] %vm560_vm3, %v2469_v0  ;;  %v6046_v0 = vld [vmem:[#allocation2 + $0x32] sm:$0xff] }
 0x40a   : > { %7091 = vst [vmem:[#allocation39_spill] sm:$0xff] %v6046_v0 }
 0x40b   : > { %v2293_v8 = vsel %vm2229_vm2, %v2192_v37, %v2261_v9  ;;  %v6021_v63 = vld [vmem:[#allocation2 + $0x169] sm:$0xff]  ;;  %v6048_v9 = vld [vmem:[#allocation2 + $0x1a] sm:$0xff] }
 0x40c   : > { %v6023_v20 = vld [vmem:[#allocation2 + $0x168] sm:$0xff]  ;;  %2325 = vst.msk [vmem:[#allocation2 + $0x171] sm:$0xff] %vm225_vm0, %v2293_v8  ;;  %2516 = vrot.lane.b32.xlu1 %v6021_v63, %s4449_s24 }
 0x40d   : > { %2390 = vst.msk [vmem:[#allocation3 + $0xf0] sm:$0xff] %vm225_vm0, %v6023_v20  ;;  %v6054_v8 = vld [vmem:[#allocation2 + $0x22] sm:$0xff] }
 0x40e   : > { %2514 = vrot.lane.b32.xlu0 %v6028_v45, %s4449_s24  ;;  %7092 = vst [vmem:[#allocation34_spill] sm:$0xff] %v6048_v9 }
 0x410   : > { %v2477_v39 = vpop.permute.xlu2 %2476 }
 0x411   : > { %2562 = vst.msk [vmem:[#allocation3 + $0x50] sm:$0xff] %vm560_vm3, %v2477_v39 }
 0x413   : > { %v6035_v29 = vld [vmem:[#allocation2 + $0x171] sm:$0xff] }
 0x414   : > { %2650 = vrot.lane.b32.xlu1 %v2585_v44, %s4450_s25  ;;  %2518 = vrot.lane.b32.xlu2 %v6035_v29, %s4449_s24  ;;  %v6040_v18 = vld [vmem:[#allocation2 + $0x170] sm:$0xff] }
 0x415   : > { %2391 = vst.msk [vmem:[#allocation3 + $0xf8] sm:$0xff] %vm225_vm0, %v6040_v18  ;;  %v6059_v44 = vld [vmem:[#allocation2 + $0x52] sm:$0xff] }
 0x416   : > { %2648 = vrot.lane.b32.xlu0 %v2584_v43, %s4450_s25  ;;  %7093 = vst [vmem:[#allocation42_spill] sm:$0xff] %v6059_v44  ;;  %v6061_v43 = vld [vmem:[#allocation2 + $0x3a] sm:$0xff] }
 0x417   : > { %7094 = vst [vmem:[#allocation35_spill] sm:$0xff] %v6061_v43 }
 0x418   : > { %v2473_v37 = vpop.permute.xlu0 %2472 }
 0x419   : > { %2560 = vst.msk [vmem:[#allocation3 + $0x40] sm:$0xff] %vm560_vm3, %v2473_v37  ;;  %v6067_v37 = vld [vmem:[#allocation2 + $0x4a] sm:$0xff] }
 0x41a   : > { %7095 = vst [vmem:[#allocation36_spill] sm:$0xff] %v6067_v37 }
 0x41c   : > { %2656 = vrot.lane.b32.xlu1 %v6046_v0, %s4450_s25  ;;  %2652 = vrot.lane.b32.xlu2 %v6048_v9, %s4450_s25  ;;  %v6085_v0 = vld [vmem:[#allocation2 + $0x9a] sm:$0xff] }
 0x41d   : > { %7099 = vst [vmem:[#allocation48_spill] sm:$0xff] %v6085_v0  ;;  %v2613_v9 = vld [vmem:[#allocation2 + $0x15a] sm:$0xff] }
 0x41e   : > { %2654 = vrot.lane.b32.xlu0 %v6054_v8, %s4450_s25 }
 0x420   : > { %v2475_v39 = vpop.permute.xlu1 %2474 }
 0x421   : > { %2561 = vst.msk [vmem:[#allocation3 + $0x48] sm:$0xff] %vm560_vm3, %v2475_v39  ;;  %v6074_v39 = vld [vmem:[#allocation2 + $0x62] sm:$0xff] }
 0x422   : > { %7097 = vst [vmem:[#allocation37_spill] sm:$0xff] %v6074_v39 }
 0x424   : > { %2662 = vrot.lane.b32.xlu1 %v6059_v44, %s4450_s25  ;;  %2658 = vrot.lane.b32.xlu2 %v6061_v43, %s4450_s25  ;;  %v6080_v44 = vld [vmem:[#allocation2 + $0x6a] sm:$0xff] }
 0x425   : > { %7098 = vst [vmem:[#allocation38_spill] sm:$0xff] %v6080_v44 }
 0x426   : > { %2660 = vrot.lane.b32.xlu0 %v6067_v37, %s4450_s25  ;;  %v6127_v37 = vld [vmem:[#allocation2 + $0xf2] sm:$0xff] }
 0x427   : > { %7109 = vst [vmem:[#allocation49_spill] sm:$0xff] %v6127_v37 }
 0x428   : > { %v2483_v31 = vpop.permute.xlu2 %2482 }
 0x429   : > { %2565 = vst.msk [vmem:[#allocation3 + $0x68] sm:$0xff] %vm560_vm3, %v2483_v31  ;;  %v6087_v31 = vld [vmem:[#allocation2 + $0x82] sm:$0xff] }
 0x42a   : > { %7100 = vst [vmem:[#allocation40_spill] sm:$0xff] %v6087_v31 }
 0x42c   : > { %2668 = vrot.lane.b32.xlu1 %v6072_v25, %s4450_s25  ;;  %2664 = vrot.lane.b32.xlu2 %v6074_v39, %s4450_s25  ;;  %v6093_v25 = vld [vmem:[#allocation2 + $0x92] sm:$0xff] }
 0x42d   : > { %7101 = vst [vmem:[#allocation41_spill] sm:$0xff] %v6093_v25 }
 0x42e   : > { %2666 = vrot.lane.b32.xlu0 %v6080_v44, %s4450_s25  ;;  %v6098_v44 = vld [vmem:[#allocation2 + $0xc2] sm:$0xff] }
 0x42f   : > { %7102 = vst [vmem:[#allocation51_spill] sm:$0xff] %v6098_v44 }
 0x430   : > { %v2479_v43 = vpop.permute.xlu0 %2478 }
 0x431   : > { %2563 = vst.msk [vmem:[#allocation3 + $0x58] sm:$0xff] %vm560_vm3, %v2479_v43  ;;  %v6100_v43 = vld [vmem:[#allocation2 + $0xaa] sm:$0xff] }
 0x432   : > { %7103 = vst [vmem:[#allocation43_spill] sm:$0xff] %v6100_v43 }
 0x434   : > { %2674 = vrot.lane.b32.xlu1 %v6085_v0, %s4450_s25  ;;  %2670 = vrot.lane.b32.xlu2 %v6087_v31, %s4450_s25  ;;  %v6106_v0 = vld [vmem:[#allocation2 + $0xb2] sm:$0xff] }
 0x435   : > { %7104 = vst [vmem:[#allocation44_spill] sm:$0xff] %v6106_v0 }
 0x436   : > { %2672 = vrot.lane.b32.xlu0 %v6093_v25, %s4450_s25  ;;  %v6111_v25 = vld [vmem:[#allocation2 + $0xe2] sm:$0xff] }
 0x437   : > { %7105 = vst [vmem:[#allocation54_spill] sm:$0xff] %v6111_v25 }
 0x438   : > { %v2481_v39 = vpop.permute.xlu1 %2480 }
 0x439   : > { %2564 = vst.msk [vmem:[#allocation3 + $0x60] sm:$0xff] %vm560_vm3, %v2481_v39  ;;  %v6113_v39 = vld [vmem:[#allocation2 + $0xca] sm:$0xff] }
 0x43a   : > { %7106 = vst [vmem:[#allocation46_spill] sm:$0xff] %v6113_v39 }
 0x43c   : > { %2680 = vrot.lane.b32.xlu1 %v6098_v44, %s4450_s25  ;;  %2676 = vrot.lane.b32.xlu2 %v6100_v43, %s4450_s25  ;;  %v6119_v44 = vld [vmem:[#allocation2 + $0xda] sm:$0xff] }
 0x43d   : > { %7107 = vst [vmem:[#allocation47_spill] sm:$0xff] %v6119_v44 }
 0x43e   : > { %2678 = vrot.lane.b32.xlu0 %v6106_v0, %s4450_s25 }
 0x440   : > { %v2489_v31 = vpop.permute.xlu2 %2488 }
 0x441   : > { %2568 = vst.msk [vmem:[#allocation3 + $0x80] sm:$0xff] %vm560_vm3, %v2489_v31  ;;  %v6125_v31 = vld [vmem:[#allocation2 + $0x10a] sm:$0xff] }
 0x442   : > { %7108 = vst [vmem:[#allocation57_spill] sm:$0xff] %v6125_v31 }
 0x444   : > { %2686 = vrot.lane.b32.xlu1 %v6111_v25, %s4450_s25  ;;  %2682 = vrot.lane.b32.xlu2 %v6113_v39, %s4450_s25  ;;  %v6133_v25 = vld [vmem:[#allocation2 + $0xfa] sm:$0xff] }
 0x445   : > { %7110 = vst [vmem:[#allocation50_spill] sm:$0xff] %v6133_v25 }
 0x446   : > { %2684 = vrot.lane.b32.xlu0 %v6119_v44, %s4450_s25  ;;  %v6141_v44 = vld [vmem:[#allocation2 + $0x112] sm:$0xff] }
 0x447   : > { %7112 = vst [vmem:[#allocation52_spill] sm:$0xff] %v6141_v44 }
 0x448   : > { %v2485_v43 = vpop.permute.xlu0 %2484 }
 0x449   : > { %2566 = vst.msk [vmem:[#allocation3 + $0x70] sm:$0xff] %vm560_vm3, %v2485_v43  ;;  %v2495_v0 = vpop.permute.xlu2 %2494 }
 0x44a   : > { %2571 = vst.msk [vmem:[#allocation3 + $0x98] sm:$0xff] %vm560_vm3, %v2495_v0  ;;  %v6139_v0 = vld [vmem:[#allocation2 + $0x12a] sm:$0xff] }
 0x44b   : > { %7111 = vst [vmem:[#allocation60_spill] sm:$0xff] %v6139_v0 }
 0x44c   : > { %2692 = vrot.lane.b32.xlu1 %v6125_v31, %s4450_s25  ;;  %2688 = vrot.lane.b32.xlu2 %v6127_v37, %s4450_s25  ;;  %v6147_v31 = vld [vmem:[#allocation2 + $0x122] sm:$0xff] }
 0x44d   : > { %7113 = vst [vmem:[#allocation53_spill] sm:$0xff] %v6147_v31 }
 0x44e   : > { %2690 = vrot.lane.b32.xlu0 %v6133_v25, %s4450_s25  ;;  %v6153_v25 = vld [vmem:[#allocation2 + $0x13a] sm:$0xff] }
 0x44f   : > { %7114 = vst [vmem:[#allocation63_spill] sm:$0xff] %v6153_v25 }
 0x450   : > { %v2487_v39 = vpop.permute.xlu1 %2486 }
 0x451   : > { %2567 = vst.msk [vmem:[#allocation3 + $0x78] sm:$0xff] %vm560_vm3, %v2487_v39  ;;  %v2501_v43 = vpop.permute.xlu2 %2500 }
 0x452   : > { %2574 = vst.msk [vmem:[#allocation3 + $0xb0] sm:$0xff] %vm560_vm3, %v2501_v43  ;;  %v2612_v43 = vld [vmem:[#allocation2 + $0x152] sm:$0xff] }
 0x454   : > { %2698 = vrot.lane.b32.xlu1 %v6139_v0, %s4450_s25  ;;  %2694 = vrot.lane.b32.xlu2 %v6141_v44, %s4450_s25  ;;  %v6158_v0 = vld [vmem:[#allocation2 + $0x142] sm:$0xff] }
 0x455   : > { %7115 = vst [vmem:[#allocation55_spill] sm:$0xff] %v6158_v0 }
 0x456   : > { %2696 = vrot.lane.b32.xlu0 %v6147_v31, %s4450_s25 }
 0x458   : > { %v2493_v37 = vpop.permute.xlu1 %2492 }
 0x459   : > { %2570 = vst.msk [vmem:[#allocation3 + $0x90] sm:$0xff] %vm560_vm3, %v2493_v37  ;;  %v2507_v39 = vpop.permute.xlu2 %2506 }
 0x45a   : > { %2577 = vst.msk [vmem:[#allocation3 + $0xc8] sm:$0xff] %vm560_vm3, %v2507_v39  ;;  %v2615_v39 = vld [vmem:[#allocation2 + $0x172] sm:$0xff] }
 0x45c   : > { %2704 = vrot.lane.b32.xlu1 %v2612_v43, %s4450_s25  ;;  %2700 = vrot.lane.b32.xlu2 %v6153_v25, %s4450_s25  ;;  %v2614_v43 = vld [vmem:[#allocation2 + $0x16a] sm:$0xff] }
 0x45e   : > { %2702 = vrot.lane.b32.xlu0 %v6158_v0, %s4450_s25 }
 0x460   : > { %v2499_v44 = vpop.permute.xlu1 %2498  ;;  %v2491_v31 = vpop.permute.xlu0 %2490 }
 0x461   : > { %2573 = vst.msk [vmem:[#allocation3 + $0xa8] sm:$0xff] %vm560_vm3, %v2499_v44  ;;  %v2513_v37 = vpop.permute.xlu2 %2512 }
 0x462   : > { %2569 = vst.msk [vmem:[#allocation3 + $0x88] sm:$0xff] %vm560_vm3, %v2491_v31 }
 0x463   : > { %2580 = vst.msk [vmem:[#allocation3 + $0xe0] sm:$0xff] %vm560_vm3, %v2513_v37 }
 0x464   : > { %2710 = vrot.lane.b32.xlu1 %v2615_v39, %s4450_s25  ;;  %2706 = vrot.lane.b32.xlu2 %v2613_v9, %s4450_s25 }
 0x466   : > { %2708 = vrot.lane.b32.xlu0 %v2614_v43, %s4450_s25 }
 0x468   : > { %v2505_v25 = vpop.permute.xlu1 %2504  ;;  %v2497_v0 = vpop.permute.xlu0 %2496 }
 0x469   : > { %2576 = vst.msk [vmem:[#allocation3 + $0xc0] sm:$0xff] %vm560_vm3, %v2505_v25 }
 0x46a   : > { %2572 = vst.msk [vmem:[#allocation3 + $0xa0] sm:$0xff] %vm560_vm3, %v2497_v0 }
 0x46c   : > { %2844 = vrot.lane.b32.xlu1 %v5763_v2, %s4451_s26  ;;  %2840 = vrot.lane.b32.xlu2 %v5746_v49, %s4451_s26 }
 0x46e   : > { %2842 = vrot.lane.b32.xlu0 %v5754_v14, %s4451_s26  ;;  %v2519_v44 = vpop.permute.xlu2 %2518  ;;  %v2194_v14 = vpop.f32.mrf.mxu2 }
 0x46f   : > { %2583 = vst.msk [vmem:[#allocation3 + $0xf8] sm:$0xff] %vm560_vm3, %v2519_v44  ;;  %v2195_v2 = vadd.f32 %v5737_v19, %v2194_v14 }
 0x470   : > { %v2511_v9 = vpop.permute.xlu1 %2510  ;;  %v2503_v31 = vpop.permute.xlu0 %2502 }
 0x471   : > { %2579 = vst.msk [vmem:[#allocation3 + $0xd8] sm:$0xff] %vm560_vm3, %v2511_v9  ;;  %vm2230_vm13 = vcmp.ge.f32.partialorder %v2195_v2, 0.0 }
 0x472   : > { %2575 = vst.msk [vmem:[#allocation3 + $0xb8] sm:$0xff] %vm560_vm3, %v2503_v31 }
 0x474   : > { %2850 = vrot.lane.b32.xlu1 %v5785_v60, %s4451_s26  ;;  %2846 = vrot.lane.b32.xlu2 %v5770_v36, %s4451_s26 }
 0x476   : > { %2848 = vrot.lane.b32.xlu0 %v5777_v7, %s4451_s26  ;;  %v2653_v25 = vpop.permute.xlu2 %2652  ;;  %v2262_v7 = vmul.f32 0.2, %v2195_v2 }
 0x477   : > { %2746 = vst.msk [vmem:[#allocation3 + $0x10] sm:$0xff] %vm753_vm4, %v2653_v25 }
 0x478   : > { %v2509_v49 = vpop.permute.xlu0 %2508 }
 0x479   : > { %2578 = vst.msk [vmem:[#allocation3 + $0xd0] sm:$0xff] %vm560_vm3, %v2509_v49 }
 0x47c   : > { %2856 = vrot.lane.b32.xlu1 %v5826_v30, %s4451_s26  ;;  %2852 = vrot.lane.b32.xlu2 %v5795_v62, %s4451_s26  ;;  %v2294_v30 = vsel %vm2230_vm13, %v2195_v2, %v2262_v7  ;;  %v2197_v62 = vpop.f32.mrf.mxu2 }
 0x47d   : > { %2326 = vst.msk [vmem:[#allocation2 + $0x181] sm:$0xff] %vm225_vm0, %v2294_v30  ;;  %v2969_v30 = vld [vmem:[#allocation2 + $0x21] sm:$0xff] }
 0x47e   : > { %v2517_v60 = vpop.permute.xlu1 %2516  ;;  %2854 = vrot.lane.b32.xlu0 %v5811_v38, %s4451_s26  ;;  %v2659_v36 = vpop.permute.xlu2 %2658  ;;  %v2198_v38 = vadd.f32 %v5737_v19, %v2197_v62  ;;  %v6274_v62 = vld [vmem:[#allocation2 + $0x31] sm:$0xff] }
 0x47f   : > { %2582 = vst.msk [vmem:[#allocation3 + $0xf0] sm:$0xff] %vm560_vm3, %v2517_v60  ;;  %v2968_v60 = vld [vmem:[#allocation2 + $0x19] sm:$0xff] }
 0x480   : > { %2749 = vst.msk [vmem:[#allocation3 + $0x28] sm:$0xff] %vm753_vm4, %v2659_v36  ;;  %v2515_v0 = vpop.permute.xlu0 %2514  ;;  %v2263_v43 = vmul.f32 0.2, %v2198_v38 }
 0x481   : > { %2581 = vst.msk [vmem:[#allocation3 + $0xe8] sm:$0xff] %vm560_vm3, %v2515_v0  ;;  %vm2231_vm3 = vcmp.ge.f32.partialorder %v2198_v38, 0.0  ;;  %v6269_v0 = vld [vmem:[#allocation2 + $0x39] sm:$0xff] }
 0x484   : > { %2862 = vrot.lane.b32.xlu1 %v5876_v32, %s4451_s26  ;;  %2858 = vrot.lane.b32.xlu2 %v5844_v42, %s4451_s26  ;;  %v2295_v32 = vsel %vm2231_vm3, %v2198_v38, %v2263_v43  ;;  %v2806_v36 = vld [vmem:[#allocation2 + $0x180] sm:$0xff]  ;;  %v6281_v43 = vld [vmem:[#allocation2 + $0x49] sm:$0xff] }
 0x485   : > { %2327 = vst.msk [vmem:[#allocation2 + $0x189] sm:$0xff] %vm225_vm0, %v2295_v32 }
 0x486   : > { %v2651_v37 = vpop.permute.xlu1 %2650  ;;  %2860 = vrot.lane.b32.xlu0 %v5861_v5, %s4451_s26  ;;  %v2665_v39 = vpop.permute.xlu2 %2664 }
 0x487   : > { %2745 = vst.msk [vmem:[#allocation3 + $0x8] sm:$0xff] %vm753_vm4, %v2651_v37 }
 0x488   : > { %2752 = vst.msk [vmem:[#allocation3 + $0x40] sm:$0xff] %vm753_vm4, %v2665_v39  ;;  %v2649_v44 = vpop.permute.xlu0 %2648 }
 0x489   : > { %2744 = vst.msk [vmem:[#allocation3] sm:$0xff] %vm753_vm4, %v2649_v44  ;;  %v6287_v44 = vld [vmem:[#allocation2 + $0x51] sm:$0xff] }
 0x48c   : > { %2868 = vrot.lane.b32.xlu1 %v5931_v13, %s4451_s26  ;;  %2864 = vrot.lane.b32.xlu2 %v5895_v24, %s4451_s26 }
 0x48e   : > { %2866 = vrot.lane.b32.xlu0 %v5916_v6, %s4451_s26  ;;  %v2657_v19 = vpop.permute.xlu1 %2656  ;;  %v2671_v42 = vpop.permute.xlu2 %2670 }
 0x48f   : > { %2748 = vst.msk [vmem:[#allocation3 + $0x20] sm:$0xff] %vm753_vm4, %v2657_v19 }
 0x490   : > { %2755 = vst.msk [vmem:[#allocation3 + $0x58] sm:$0xff] %vm753_vm4, %v2671_v42  ;;  %v2655_v5 = vpop.permute.xlu0 %2654 }
 0x491   : > { %2747 = vst.msk [vmem:[#allocation3 + $0x18] sm:$0xff] %vm753_vm4, %v2655_v5 }
 0x494   : > { %2874 = vrot.lane.b32.xlu1 %v5822_v16, %s4451_s26  ;;  %2870 = vrot.lane.b32.xlu2 %v5957_v47, %s4451_s26 }
 0x496   : > { %2872 = vrot.lane.b32.xlu0 %v5803_v40, %s4451_s26  ;;  %v2663_v24 = vpop.permute.xlu1 %2662  ;;  %v2677_v6 = vpop.permute.xlu2 %2676 }
 0x497   : > { %2751 = vst.msk [vmem:[#allocation3 + $0x38] sm:$0xff] %vm753_vm4, %v2663_v24 }
 0x498   : > { %2758 = vst.msk [vmem:[#allocation3 + $0x70] sm:$0xff] %vm753_vm4, %v2677_v6  ;;  %v2661_v13 = vpop.permute.xlu0 %2660  ;;  %v6357_v6 = vld [vmem:[#allocation2 + $0x181] sm:$0xff] }
 0x499   : > { %2750 = vst.msk [vmem:[#allocation3 + $0x30] sm:$0xff] %vm753_vm4, %v2661_v13  ;;  %v6368_v13 = vld [vmem:[#allocation2 + $0x189] sm:$0xff] }
 0x49c   : > { %2880 = vrot.lane.b32.xlu1 %v5881_v50, %s4451_s26  ;;  %2876 = vrot.lane.b32.xlu2 %v5848_v15, %s4451_s26 }
 0x49e   : > { %2878 = vrot.lane.b32.xlu0 %v5857_v35, %s4451_s26  ;;  %v2669_v16 = vpop.permute.xlu1 %2668  ;;  %v2683_v40 = vpop.permute.xlu2 %2682 }
 0x49f   : > { %2754 = vst.msk [vmem:[#allocation3 + $0x50] sm:$0xff] %vm753_vm4, %v2669_v16 }
 0x4a0   : > { %2761 = vst.msk [vmem:[#allocation3 + $0x88] sm:$0xff] %vm753_vm4, %v2683_v40  ;;  %v2667_v47 = vpop.permute.xlu0 %2666 }
 0x4a1   : > { %2753 = vst.msk [vmem:[#allocation3 + $0x48] sm:$0xff] %vm753_vm4, %v2667_v47  ;;  %v7117_v47 = vld [vmem:[#allocation36_spill] sm:$0xff] }
 0x4a4   : > { %2886 = vrot.lane.b32.xlu1 %v5925_v17, %s4451_s26  ;;  %2882 = vrot.lane.b32.xlu2 %v5891_v51, %s4451_s26 }
 0x4a6   : > { %2884 = vrot.lane.b32.xlu0 %v5906_v3, %s4451_s26  ;;  %v2675_v9 = vpop.permute.xlu1 %2674  ;;  %v2689_v31 = vpop.permute.xlu2 %2688 }
 0x4a7   : > { %2757 = vst.msk [vmem:[#allocation3 + $0x68] sm:$0xff] %vm753_vm4, %v2675_v9  ;;  %v7119_v9 = vld [vmem:[#allocation35_spill] sm:$0xff] }
 0x4a8   : > { %2764 = vst.msk [vmem:[#allocation3 + $0xa0] sm:$0xff] %vm753_vm4, %v2689_v31  ;;  %v2673_v25 = vpop.permute.xlu0 %2672 }
 0x4a9   : > { %2756 = vst.msk [vmem:[#allocation3 + $0x60] sm:$0xff] %vm753_vm4, %v2673_v25 }
 0x4ac   : > { %2892 = vrot.lane.b32.xlu1 %v5987_v23, %s4451_s26  ;;  %2888 = vrot.lane.b32.xlu2 %v5943_v53, %s4451_s26 }
 0x4ae   : > { %2890 = vrot.lane.b32.xlu0 %v5968_v57, %s4451_s26  ;;  %v2681_v17 = vpop.permute.xlu1 %2680  ;;  %v2695_v49 = vpop.permute.xlu2 %2694 }
 0x4af   : > { %2760 = vst.msk [vmem:[#allocation3 + $0x80] sm:$0xff] %vm753_vm4, %v2681_v17 }
 0x4b0   : > { %2767 = vst.msk [vmem:[#allocation3 + $0xb8] sm:$0xff] %vm753_vm4, %v2695_v49  ;;  %v2679_v14 = vpop.permute.xlu0 %2678  ;;  %v7120_v49 = vld [vmem:[#allocation38_spill] sm:$0xff] }
 0x4b1   : > { %2759 = vst.msk [vmem:[#allocation3 + $0x78] sm:$0xff] %vm753_vm4, %v2679_v14  ;;  %v7121_v14 = vld [vmem:[#allocation42_spill] sm:$0xff] }
 0x4b4   : > { %2898 = vrot.lane.b32.xlu1 %v6040_v18, %s4451_s26  ;;  %2894 = vrot.lane.b32.xlu2 %v6007_v55, %s4451_s26  ;;  %v2807_v18 = vld [vmem:[#allocation2 + $0x188] sm:$0xff] }
 0x4b6   : > { %2896 = vrot.lane.b32.xlu0 %v6023_v20, %s4451_s26  ;;  %v2687_v23 = vpop.permute.xlu1 %2686  ;;  %v2701_v57 = vpop.permute.xlu2 %2700 }
 0x4b7   : > { %2763 = vst.msk [vmem:[#allocation3 + $0x98] sm:$0xff] %vm753_vm4, %v2687_v23  ;;  %v7122_v23 = vld [vmem:[#allocation37_spill] sm:$0xff] }
 0x4b8   : > { %2770 = vst.msk [vmem:[#allocation3 + $0xd0] sm:$0xff] %vm753_vm4, %v2701_v57  ;;  %v2685_v2 = vpop.permute.xlu0 %2684 }
 0x4b9   : > { %2762 = vst.msk [vmem:[#allocation3 + $0x90] sm:$0xff] %vm753_vm4, %v2685_v2 }
 0x4bc   : > { %3032 = vrot.lane.b32.xlu1 %v2968_v60, %s4452_s27  ;;  %2900 = vrot.lane.b32.xlu2 %v2806_v36, %s4451_s26  ;;  %v7123_v36 = vld [vmem:[#allocation41_spill] sm:$0xff] }
 0x4be   : > { %2902 = vrot.lane.b32.xlu0 %v2807_v18, %s4451_s26  ;;  %v2693_v55 = vpop.permute.xlu1 %2692  ;;  %v2707_v20 = vpop.permute.xlu2 %2706  ;;  %v7124_v18 = vld [vmem:[#allocation45_spill] sm:$0xff] }
 0x4bf   : > { %2766 = vst.msk [vmem:[#allocation3 + $0xb0] sm:$0xff] %vm753_vm4, %v2693_v55  ;;  %v7125_v55 = vld [vmem:[#allocation40_spill] sm:$0xff] }
 0x4c0   : > { %2773 = vst.msk [vmem:[#allocation3 + $0xe8] sm:$0xff] %vm753_vm4, %v2707_v20  ;;  %v2691_v7 = vpop.permute.xlu0 %2690 }
 0x4c1   : > { %2765 = vst.msk [vmem:[#allocation3 + $0xa8] sm:$0xff] %vm753_vm4, %v2691_v7 }
 0x4c4   : > { %3038 = vrot.lane.b32.xlu1 %v6269_v0, %s4452_s27  ;;  %3034 = vrot.lane.b32.xlu2 %v2969_v30, %s4452_s27 }
 0x4c6   : > { %3036 = vrot.lane.b32.xlu0 %v6274_v62, %s4452_s27  ;;  %v2699_v38 = vpop.permute.xlu1 %2698  ;;  %v2841_v37 = vpop.permute.xlu2 %2840 }
 0x4c7   : > { %2769 = vst.msk [vmem:[#allocation3 + $0xc8] sm:$0xff] %vm753_vm4, %v2699_v38  ;;  %v7126_v38 = vld [vmem:[#allocation44_spill] sm:$0xff] }
 0x4c8   : > { %2936 = vst.msk [vmem:[#allocation3] sm:$0xff] %vm946_vm5, %v2841_v37  ;;  %v2697_v39 = vpop.permute.xlu0 %2696  ;;  %v7127_v37 = vld [vmem:[#allocation48_spill] sm:$0xff] }
 0x4c9   : > { %2768 = vst.msk [vmem:[#allocation3 + $0xc0] sm:$0xff] %vm753_vm4, %v2697_v39  ;;  %v7128_v39 = vld [vmem:[#allocation43_spill] sm:$0xff] }
 0x4cc   : > { %3044 = vrot.lane.b32.xlu1 %v5793_v21, %s4452_s27  ;;  %3040 = vrot.lane.b32.xlu2 %v6281_v43, %s4452_s27 }
 0x4ce   : > { %3042 = vrot.lane.b32.xlu0 %v6287_v44, %s4452_s27  ;;  %v2705_v32 = vpop.permute.xlu1 %2704  ;;  %v2847_v19 = vpop.permute.xlu2 %2846 }
 0x4cf   : > { %2772 = vst.msk [vmem:[#allocation3 + $0xe0] sm:$0xff] %vm753_vm4, %v2705_v32 }
 0x4d0   : > { %2939 = vst.msk [vmem:[#allocation3 + $0x18] sm:$0xff] %vm946_vm5, %v2847_v19  ;;  %v2703_v42 = vpop.permute.xlu0 %2702 }
 0x4d1   : > { %2771 = vst.msk [vmem:[#allocation3 + $0xd8] sm:$0xff] %vm753_vm4, %v2703_v42 }
 0x4d4   : > { %3050 = vrot.lane.b32.xlu1 %v5838_v58, %s4452_s27  ;;  %3046 = vrot.lane.b32.xlu2 %v5809_v27, %s4452_s27 }
 0x4d6   : > { %3048 = vrot.lane.b32.xlu0 %v5824_v11, %s4452_s27  ;;  %v2711_v21 = vpop.permute.xlu1 %2710  ;;  %v2853_v5 = vpop.permute.xlu2 %2852 }
 0x4d7   : > { %2775 = vst.msk [vmem:[#allocation3 + $0xf8] sm:$0xff] %vm753_vm4, %v2711_v21  ;;  %v7129_v21 = vld [vmem:[#allocation47_spill] sm:$0xff] }
 0x4d8   : > { %2942 = vst.msk [vmem:[#allocation3 + $0x30] sm:$0xff] %vm946_vm5, %v2853_v5  ;;  %v2709_v24 = vpop.permute.xlu0 %2708  ;;  %v7130_v5 = vld [vmem:[#allocation51_spill] sm:$0xff] }
 0x4d9   : > { %2774 = vst.msk [vmem:[#allocation3 + $0xf0] sm:$0xff] %vm753_vm4, %v2709_v24  ;;  %v7131_v24 = vld [vmem:[#allocation46_spill] sm:$0xff] }
 0x4dc   : > { %3056 = vrot.lane.b32.xlu1 %v5893_v54, %s4452_s27  ;;  %3052 = vrot.lane.b32.xlu2 %v5859_v22, %s4452_s27 }
 0x4de   : > { %3054 = vrot.lane.b32.xlu0 %v5873_v33, %s4452_s27  ;;  %v2845_v27 = vpop.permute.xlu1 %2844  ;;  %v2859_v11 = vpop.permute.xlu2 %2858 }
 0x4df   : > { %2938 = vst.msk [vmem:[#allocation3 + $0x10] sm:$0xff] %vm946_vm5, %v2845_v27 }
 0x4e0   : > { %2945 = vst.msk [vmem:[#allocation3 + $0x48] sm:$0xff] %vm946_vm5, %v2859_v11  ;;  %v2843_v58 = vpop.permute.xlu0 %2842 }
 0x4e1   : > { %2937 = vst.msk [vmem:[#allocation3 + $0x8] sm:$0xff] %vm946_vm5, %v2843_v58 }
 0x4e4   : > { %3062 = vrot.lane.b32.xlu1 %v5948_v56, %s4452_s27  ;;  %3058 = vrot.lane.b32.xlu2 %v5909_v41, %s4452_s27 }
 0x4e6   : > { %3060 = vrot.lane.b32.xlu0 %v5929_v26, %s4452_s27  ;;  %v2851_v22 = vpop.permute.xlu1 %2850  ;;  %v2865_v33 = vpop.permute.xlu2 %2864 }
 0x4e7   : > { %2941 = vst.msk [vmem:[#allocation3 + $0x28] sm:$0xff] %vm946_vm5, %v2851_v22  ;;  %v7132_v22 = vld [vmem:[#allocation50_spill] sm:$0xff] }
 0x4e8   : > { %2948 = vst.msk [vmem:[#allocation3 + $0x60] sm:$0xff] %vm946_vm5, %v2865_v33  ;;  %v2849_v54 = vpop.permute.xlu0 %2848  ;;  %v7133_v33 = vld [vmem:[#allocation54_spill] sm:$0xff] }
 0x4e9   : > { %2940 = vst.msk [vmem:[#allocation3 + $0x20] sm:$0xff] %vm946_vm5, %v2849_v54  ;;  %v7134_v54 = vld [vmem:[#allocation49_spill] sm:$0xff] }
 0x4ec   : > { %3068 = vrot.lane.b32.xlu1 %v5972_v59, %s4452_s27  ;;  %3064 = vrot.lane.b32.xlu2 %v5927_v34, %s4452_s27 }
 0x4ee   : > { %3066 = vrot.lane.b32.xlu0 %v5955_v1, %s4452_s27  ;;  %v2857_v41 = vpop.permute.xlu1 %2856  ;;  %v2871_v26 = vpop.permute.xlu2 %2870 }
 0x4ef   : > { %2944 = vst.msk [vmem:[#allocation3 + $0x40] sm:$0xff] %vm946_vm5, %v2857_v41 }
 0x4f0   : > { %2951 = vst.msk [vmem:[#allocation3 + $0x78] sm:$0xff] %vm946_vm5, %v2871_v26  ;;  %v2855_v56 = vpop.permute.xlu0 %2854 }
 0x4f1   : > { %2943 = vst.msk [vmem:[#allocation3 + $0x38] sm:$0xff] %vm946_vm5, %v2855_v56 }
 0x4f4   : > { %3074 = vrot.lane.b32.xlu1 %v5992_v52, %s4452_s27  ;;  %3070 = vrot.lane.b32.xlu2 %v5946_v48, %s4452_s27 }
 0x4f6   : > { %3072 = vrot.lane.b32.xlu0 %v5980_v12, %s4452_s27  ;;  %v2863_v34 = vpop.permute.xlu1 %2862  ;;  %v2877_v1 = vpop.permute.xlu2 %2876 }
 0x4f7   : > { %2947 = vst.msk [vmem:[#allocation3 + $0x58] sm:$0xff] %vm946_vm5, %v2863_v34  ;;  %v7135_v34 = vld [vmem:[#allocation53_spill] sm:$0xff] }
 0x4f8   : > { %2954 = vst.msk [vmem:[#allocation3 + $0x90] sm:$0xff] %vm946_vm5, %v2877_v1  ;;  %v2861_v59 = vpop.permute.xlu0 %2860  ;;  %v7136_v1 = vld [vmem:[#allocation57_spill] sm:$0xff] }
 0x4f9   : > { %2946 = vst.msk [vmem:[#allocation3 + $0x50] sm:$0xff] %vm946_vm5, %v2861_v59  ;;  %v7137_v59 = vld [vmem:[#allocation52_spill] sm:$0xff] }
 0x4fc   : > { %3080 = vrot.lane.b32.xlu1 %v6009_v61, %s4452_s27  ;;  %3076 = vrot.lane.b32.xlu2 %v5970_v4, %s4452_s27 }
 0x4fe   : > { %3078 = vrot.lane.b32.xlu0 %v6000_v46, %s4452_s27  ;;  %v2869_v48 = vpop.permute.xlu1 %2868  ;;  %v2883_v12 = vpop.permute.xlu2 %2882 }
 0x4ff   : > { %2950 = vst.msk [vmem:[#allocation3 + $0x70] sm:$0xff] %vm946_vm5, %v2869_v48 }
 0x500   : > { %2957 = vst.msk [vmem:[#allocation3 + $0xa8] sm:$0xff] %vm946_vm5, %v2883_v12  ;;  %v2867_v52 = vpop.permute.xlu0 %2866 }
 0x501   : > { %2949 = vst.msk [vmem:[#allocation3 + $0x68] sm:$0xff] %vm946_vm5, %v2867_v52 }
 0x504   : > { %3086 = vrot.lane.b32.xlu1 %v6028_v45, %s4452_s27  ;;  %3082 = vrot.lane.b32.xlu2 %v5990_v28, %s4452_s27 }
 0x506   : > { %3084 = vrot.lane.b32.xlu0 %v6015_v10, %s4452_s27  ;;  %v2875_v4 = vpop.permute.xlu1 %2874  ;;  %v2889_v46 = vpop.permute.xlu2 %2888 }
 0x507   : > { %2953 = vst.msk [vmem:[#allocation3 + $0x88] sm:$0xff] %vm946_vm5, %v2875_v4  ;;  %v7138_v4 = vld [vmem:[#allocation55_spill] sm:$0xff] }
 0x508   : > { %2960 = vst.msk [vmem:[#allocation3 + $0xc0] sm:$0xff] %vm946_vm5, %v2889_v46  ;;  %v2873_v61 = vpop.permute.xlu0 %2872  ;;  %v7139_v46 = vld [vmem:[#allocation60_spill] sm:$0xff] }
 0x509   : > { %2952 = vst.msk [vmem:[#allocation3 + $0x80] sm:$0xff] %vm946_vm5, %v2873_v61  ;;  %v7140_v61 = vld [vmem:[#allocation63_spill] sm:$0xff] }
 0x50c   : > { %3092 = vrot.lane.b32.xlu1 %v6357_v6, %s4452_s27  ;;  %3088 = vrot.lane.b32.xlu2 %v6021_v63, %s4452_s27  ;;  %v7116_v63 = vld [vmem:[#allocation34_spill] sm:$0xff] }
 0x50e   : > { %3090 = vrot.lane.b32.xlu0 %v6035_v29, %s4452_s27  ;;  %v2881_v28 = vpop.permute.xlu1 %2880  ;;  %v2895_v10 = vpop.permute.xlu2 %2894 }
 0x50f   : > { %2956 = vst.msk [vmem:[#allocation3 + $0xa0] sm:$0xff] %vm946_vm5, %v2881_v28 }
 0x510   : > { %2963 = vst.msk [vmem:[#allocation3 + $0xd8] sm:$0xff] %vm946_vm5, %v2895_v10  ;;  %v2879_v45 = vpop.permute.xlu0 %2878 }
 0x511   : > { %2955 = vst.msk [vmem:[#allocation3 + $0x98] sm:$0xff] %vm946_vm5, %v2879_v45 }
 0x514   : > { %3226 = vrot.lane.b32.xlu1 %v6054_v8, %s4453_s28  ;;  %3094 = vrot.lane.b32.xlu2 %v6368_v13, %s4452_s27  ;;  %v7118_v8 = vld [vmem:[#allocation39_spill] sm:$0xff] }
 0x516   : > { %3224 = vrot.lane.b32.xlu0 %v7116_v63, %s4453_s28  ;;  %v2887_v29 = vpop.permute.xlu1 %2886  ;;  %v2901_v16 = vpop.permute.xlu2 %2900  ;;  %v3560_v63 = vld [vmem:[#allocation2 + $0xf1] sm:$0xff] }
 0x517   : > { %2959 = vst.msk [vmem:[#allocation3 + $0xb8] sm:$0xff] %vm946_vm5, %v2887_v29 }
 0x518   : > { %2966 = vst.msk [vmem:[#allocation3 + $0xf0] sm:$0xff] %vm946_vm5, %v2901_v16  ;;  %v2885_v40 = vpop.permute.xlu0 %2884 }
 0x519   : > { %2958 = vst.msk [vmem:[#allocation3 + $0xb0] sm:$0xff] %vm946_vm5, %v2885_v40 }
 0x51c   : > { %3232 = vrot.lane.b32.xlu1 %v7117_v47, %s4453_s28  ;;  %3228 = vrot.lane.b32.xlu2 %v7118_v8, %s4453_s28  ;;  %v3352_v47 = vld [vmem:[#allocation2 + $0x30] sm:$0xff] }
 0x51e   : > { %3230 = vrot.lane.b32.xlu0 %v7119_v9, %s4453_s28  ;;  %v2893_v31 = vpop.permute.xlu1 %2892  ;;  %v3035_v25 = vpop.permute.xlu2 %3034 }
 0x51f   : > { %2962 = vst.msk [vmem:[#allocation3 + $0xd0] sm:$0xff] %vm946_vm5, %v2893_v31  ;;  %v3736_v31 = vld [vmem:[#allocation2 + $0x32] sm:$0xff] }
 0x520   : > { %3129 = vst.msk [vmem:[#allocation3 + $0x8] sm:$0xff] %vm1139_vm6, %v3035_v25  ;;  %v2891_v17 = vpop.permute.xlu0 %2890 }
 0x521   : > { %2961 = vst.msk [vmem:[#allocation3 + $0xc8] sm:$0xff] %vm946_vm5, %v2891_v17 }
 0x524   : > { %3238 = vrot.lane.b32.xlu1 %v7120_v49, %s4453_s28  ;;  %3234 = vrot.lane.b32.xlu2 %v7121_v14, %s4453_s28  ;;  %v3353_v49 = vld [vmem:[#allocation2 + $0x38] sm:$0xff] }
 0x526   : > { %3236 = vrot.lane.b32.xlu0 %v7122_v23, %s4453_s28  ;;  %v2899_v57 = vpop.permute.xlu1 %2898  ;;  %v3041_v2 = vpop.permute.xlu2 %3040 }
 0x527   : > { %2965 = vst.msk [vmem:[#allocation3 + $0xe8] sm:$0xff] %vm946_vm5, %v2899_v57 }
 0x528   : > { %3132 = vst.msk [vmem:[#allocation3 + $0x20] sm:$0xff] %vm1139_vm6, %v3041_v2  ;;  %v2897_v60 = vpop.permute.xlu0 %2896  ;;  %v3737_v2 = vld [vmem:[#allocation2 + $0x3a] sm:$0xff] }
 0x529   : > { %2964 = vst.msk [vmem:[#allocation3 + $0xe0] sm:$0xff] %vm946_vm5, %v2897_v60 }
 0x52c   : > { %3244 = vrot.lane.b32.xlu1 %v7123_v36, %s4453_s28  ;;  %3240 = vrot.lane.b32.xlu2 %v7124_v18, %s4453_s28  ;;  %v3354_v18 = vld [vmem:[#allocation2 + $0x48] sm:$0xff] }
 0x52e   : > { %3242 = vrot.lane.b32.xlu0 %v7125_v55, %s4453_s28  ;;  %v3033_v20 = vpop.permute.xlu1 %3032  ;;  %v3047_v7 = vpop.permute.xlu2 %3046 }
 0x52f   : > { %3128 = vst.msk [vmem:[#allocation3] sm:$0xff] %vm1139_vm6, %v3033_v20 }
 0x530   : > { %3135 = vst.msk [vmem:[#allocation3 + $0x38] sm:$0xff] %vm1139_vm6, %v3047_v7  ;;  %v2903_v30 = vpop.permute.xlu0 %2902 }
 0x531   : > { %2967 = vst.msk [vmem:[#allocation3 + $0xf8] sm:$0xff] %vm946_vm5, %v2903_v30  ;;  %v3738_v30 = vld [vmem:[#allocation2 + $0x4a] sm:$0xff] }
 0x534   : > { %3250 = vrot.lane.b32.xlu1 %v7126_v38, %s4453_s28  ;;  %3246 = vrot.lane.b32.xlu2 %v7127_v37, %s4453_s28 }
 0x536   : > { %3248 = vrot.lane.b32.xlu0 %v7128_v39, %s4453_s28  ;;  %v3039_v32 = vpop.permute.xlu1 %3038  ;;  %v3053_v19 = vpop.permute.xlu2 %3052  ;;  %v3355_v39 = vld [vmem:[#allocation2 + $0x50] sm:$0xff] }
 0x537   : > { %3131 = vst.msk [vmem:[#allocation3 + $0x18] sm:$0xff] %vm1139_vm6, %v3039_v32 }
 0x538   : > { %3138 = vst.msk [vmem:[#allocation3 + $0x50] sm:$0xff] %vm1139_vm6, %v3053_v19  ;;  %v3037_v42 = vpop.permute.xlu0 %3036 }
 0x539   : > { %3130 = vst.msk [vmem:[#allocation3 + $0x10] sm:$0xff] %vm1139_vm6, %v3037_v42 }
 0x53c   : > { %3256 = vrot.lane.b32.xlu1 %v7129_v21, %s4453_s28  ;;  %3252 = vrot.lane.b32.xlu2 %v7130_v5, %s4453_s28  ;;  %v3756_v21 = vld [vmem:[#allocation2 + $0x122] sm:$0xff]  ;;  %v3739_v5 = vld [vmem:[#allocation2 + $0x52] sm:$0xff] }
 0x53e   : > { %3254 = vrot.lane.b32.xlu0 %v7131_v24, %s4453_s28  ;;  %v3045_v27 = vpop.permute.xlu1 %3044  ;;  %v3059_v11 = vpop.permute.xlu2 %3058 }
 0x53f   : > { %3134 = vst.msk [vmem:[#allocation3 + $0x30] sm:$0xff] %vm1139_vm6, %v3045_v27 }
 0x540   : > { %3141 = vst.msk [vmem:[#allocation3 + $0x68] sm:$0xff] %vm1139_vm6, %v3059_v11  ;;  %v3043_v58 = vpop.permute.xlu0 %3042  ;;  %v3373_v11 = vld [vmem:[#allocation2 + $0x128] sm:$0xff] }
 0x541   : > { %3133 = vst.msk [vmem:[#allocation3 + $0x28] sm:$0xff] %vm1139_vm6, %v3043_v58  ;;  %v3356_v58 = vld [vmem:[#allocation2 + $0x60] sm:$0xff] }
 0x544   : > { %3262 = vrot.lane.b32.xlu1 %v7132_v22, %s4453_s28  ;;  %3258 = vrot.lane.b32.xlu2 %v7133_v33, %s4453_s28 }
 0x546   : > { %3260 = vrot.lane.b32.xlu0 %v7134_v54, %s4453_s28  ;;  %v3051_v41 = vpop.permute.xlu1 %3050  ;;  %v3065_v26 = vpop.permute.xlu2 %3064 }
 0x547   : > { %3137 = vst.msk [vmem:[#allocation3 + $0x48] sm:$0xff] %vm1139_vm6, %v3051_v41 }
 0x548   : > { %3144 = vst.msk [vmem:[#allocation3 + $0x80] sm:$0xff] %vm1139_vm6, %v3065_v26  ;;  %v3049_v56 = vpop.permute.xlu0 %3048  ;;  %v3757_v26 = vld [vmem:[#allocation2 + $0x12a] sm:$0xff] }
 0x549   : > { %3136 = vst.msk [vmem:[#allocation3 + $0x40] sm:$0xff] %vm1139_vm6, %v3049_v56  ;;  %v3740_v56 = vld [vmem:[#allocation2 + $0x62] sm:$0xff] }
 0x54c   : > { %3268 = vrot.lane.b32.xlu1 %v7135_v34, %s4453_s28  ;;  %3264 = vrot.lane.b32.xlu2 %v7136_v1, %s4453_s28  ;;  %v3565_v34 = vld [vmem:[#allocation2 + $0x129] sm:$0xff] }
 0x54e   : > { %3266 = vrot.lane.b32.xlu0 %v7137_v59, %s4453_s28  ;;  %v3057_v48 = vpop.permute.xlu1 %3056  ;;  %v3071_v12 = vpop.permute.xlu2 %3070 }
 0x54f   : > { %3140 = vst.msk [vmem:[#allocation3 + $0x60] sm:$0xff] %vm1139_vm6, %v3057_v48 }
 0x550   : > { %3147 = vst.msk [vmem:[#allocation3 + $0x98] sm:$0xff] %vm1139_vm6, %v3071_v12  ;;  %v3055_v52 = vpop.permute.xlu0 %3054  ;;  %v3964_v12 = vld [vmem:[%s6905_s3 + $0x20] sm:$0xf] }
 0x551   : > { %3139 = vst.msk [vmem:[#allocation3 + $0x58] sm:$0xff] %vm1139_vm6, %v3055_v52  ;;  %v3963_v52 = vld [vmem:[%s6905_s3 + $0x18] sm:$0xff]  ;;  %4416 = vmatpush.msk.msra.mxu3 %vm2083_vm10, %v3964_v12  ;;  %4374 = vmatpush.msk.msra.mxu1 %vm2083_vm10, %v3964_v12  ;;  %v3570_v12 = vld [vmem:[#allocation2 + $0x169] sm:$0xff] }
 0x553   : > { %4417 = vmatpush.msra.mxu3 %v3963_v52  ;;  %4080 = vmatpush.msra.mxu1 %v3963_v52  ;;  %v3378_v52 = vld [vmem:[#allocation2 + $0x168] sm:$0xff] }
 0x554   : > { %3274 = vrot.lane.b32.xlu1 %v7138_v4, %s4453_s28  ;;  %3270 = vrot.lane.b32.xlu2 %v7139_v46, %s4453_s28  ;;  %v3357_v4 = vld [vmem:[#allocation2 + $0x68] sm:$0xff]  ;;  %v3962_v46 = vld [vmem:[%s6905_s3 + $0x10] sm:$0xff] }
 0x555   : > { %4418 = vmatpush.msra.mxu3 %v3962_v46  ;;  %4081 = vmatpush.msra.mxu1 %v3962_v46 }
 0x556   : > { %3272 = vrot.lane.b32.xlu0 %v7140_v61, %s4453_s28  ;;  %v3063_v28 = vpop.permute.xlu1 %3062  ;;  %v3077_v10 = vpop.permute.xlu2 %3076  ;;  %v3549_v61 = vld [vmem:[#allocation2 + $0x69] sm:$0xff] }
 0x557   : > { %3143 = vst.msk [vmem:[#allocation3 + $0x78] sm:$0xff] %vm1139_vm6, %v3063_v28 }
 0x558   : > { %3150 = vst.msk [vmem:[#allocation3 + $0xb0] sm:$0xff] %vm1139_vm6, %v3077_v10  ;;  %v3061_v45 = vpop.permute.xlu0 %3060 }
 0x559   : > { %3142 = vst.msk [vmem:[#allocation3 + $0x70] sm:$0xff] %vm1139_vm6, %v3061_v45 }
 0x55c   : > { %3832 = vrot.lane.b32.xlu1 %v7134_v54, %s4456_s6  ;;  %3448 = vrot.lane.b32.xlu2 %v5848_v15, %s4454_s29 }
 0x55e   : > { %3640 = vrot.lane.b32.xlu0 %v3560_v63, %s4455_s30  ;;  %v3069_v29 = vpop.permute.xlu1 %3068  ;;  %v3083_v16 = vpop.permute.xlu2 %3082  ;;  %v3960_v63 = vld [vmem:[%s6905_s3] sm:$0xff] }
 0x55f   : > { %3146 = vst.msk [vmem:[#allocation3 + $0x90] sm:$0xff] %vm1139_vm6, %v3069_v29  ;;  %v3758_v29 = vld [vmem:[#allocation2 + $0x13a] sm:$0xff] }
 0x560   : > { %3153 = vst.msk [vmem:[#allocation3 + $0xc8] sm:$0xff] %vm1139_vm6, %v3083_v16  ;;  %v3067_v40 = vpop.permute.xlu0 %3066  ;;  %v3741_v16 = vld [vmem:[#allocation2 + $0x6a] sm:$0xff] }
 0x561   : > { %3145 = vst.msk [vmem:[#allocation3 + $0x88] sm:$0xff] %vm1139_vm6, %v3067_v40  ;;  %v3566_v40 = vld [vmem:[#allocation2 + $0x139] sm:$0xff] }
 0x564   : > { %3450 = vrot.lane.b32.xlu1 %v5857_v35, %s4454_s29  ;;  %3416 = vrot.lane.b32.xlu2 %v3352_v47, %s4454_s29  ;;  %v3561_v35 = vld [vmem:[#allocation2 + $0xf9] sm:$0xff] }
 0x566   : > { %3608 = vrot.lane.b32.xlu0 %v6274_v62, %s4455_s30  ;;  %v3075_v15 = vpop.permute.xlu1 %3074  ;;  %v3089_v8 = vpop.permute.xlu2 %3088 }
 0x567   : > { %3149 = vst.msk [vmem:[#allocation3 + $0xa8] sm:$0xff] %vm1139_vm6, %v3075_v15 }
 0x568   : > { %3156 = vst.msk [vmem:[#allocation3 + $0xe0] sm:$0xff] %vm1139_vm6, %v3089_v8  ;;  %v3073_v9 = vpop.permute.xlu0 %3072 }
 0x569   : > { %3148 = vst.msk [vmem:[#allocation3 + $0xa0] sm:$0xff] %vm1139_vm6, %v3073_v9  ;;  %v3375_v9 = vld [vmem:[#allocation2 + $0x140] sm:$0xff] }
 0x56c   : > { %3834 = vrot.lane.b32.xlu1 %v7132_v22, %s4456_s6  ;;  %3800 = vrot.lane.b32.xlu2 %v3736_v31, %s4456_s6  ;;  %v3548_v22 = vld [vmem:[#allocation2 + $0x61] sm:$0xff]  ;;  %v3358_v31 = vld [vmem:[#allocation2 + $0x78] sm:$0xff] }
 0x56e   : > { %3642 = vrot.lane.b32.xlu0 %v3561_v35, %s4455_s30  ;;  %v3081_v25 = vpop.permute.xlu1 %3080  ;;  %v3095_v62 = vpop.permute.xlu2 %3094  ;;  %v3550_v35 = vld [vmem:[#allocation2 + $0x79] sm:$0xff] }
 0x56f   : > { %3152 = vst.msk [vmem:[#allocation3 + $0xc0] sm:$0xff] %vm1139_vm6, %v3081_v25 }
 0x570   : > { %3159 = vst.msk [vmem:[#allocation3 + $0xf8] sm:$0xff] %vm1139_vm6, %v3095_v62  ;;  %v3079_v17 = vpop.permute.xlu0 %3078 }
 0x571   : > { %3151 = vst.msk [vmem:[#allocation3 + $0xb8] sm:$0xff] %vm1139_vm6, %v3079_v17 }
 0x574   : > { %3452 = vrot.lane.b32.xlu1 %v5881_v50, %s4454_s29  ;;  %3418 = vrot.lane.b32.xlu2 %v3353_v49, %s4454_s29  ;;  %v3562_v50 = vld [vmem:[#allocation2 + $0x109] sm:$0xff] }
 0x575   : > { %v3759_v49 = vld [vmem:[#allocation2 + $0x142] sm:$0xff] }
 0x576   : > { %3610 = vrot.lane.b32.xlu0 %v6269_v0, %s4455_s30  ;;  %v3087_v14 = vpop.permute.xlu1 %3086  ;;  %v3229_v23 = vpop.permute.xlu2 %3228 }
 0x577   : > { %3155 = vst.msk [vmem:[#allocation3 + $0xd8] sm:$0xff] %vm1139_vm6, %v3087_v14  ;;  %v3742_v14 = vld [vmem:[#allocation2 + $0x7a] sm:$0xff] }
 0x578   : > { %3322 = vst.msk [vmem:[#allocation3 + $0x10] sm:$0xff] %vm1332_vm7, %v3229_v23  ;;  %v3085_v57 = vpop.permute.xlu0 %3084  ;;  %v3567_v23 = vld [vmem:[#allocation2 + $0x141] sm:$0xff] }
 0x579   : > { %3154 = vst.msk [vmem:[#allocation3 + $0xd0] sm:$0xff] %vm1139_vm6, %v3085_v57 }
 0x57c   : > { %3836 = vrot.lane.b32.xlu1 %v7136_v1, %s4456_s6  ;;  %3802 = vrot.lane.b32.xlu2 %v3737_v2, %s4456_s6 }
 0x57e   : > { %3644 = vrot.lane.b32.xlu0 %v3562_v50, %s4455_s30  ;;  %v3093_v60 = vpop.permute.xlu1 %3092  ;;  %v3235_v0 = vpop.permute.xlu2 %3234 }
 0x57f   : > { %3158 = vst.msk [vmem:[#allocation3 + $0xf0] sm:$0xff] %vm1139_vm6, %v3093_v60  ;;  %v3376_v60 = vld [vmem:[#allocation2 + $0x150] sm:$0xff] }
 0x580   : > { %3325 = vst.msk [vmem:[#allocation3 + $0x28] sm:$0xff] %vm1332_vm7, %v3235_v0  ;;  %v3091_v36 = vpop.permute.xlu0 %3090  ;;  %v3359_v0 = vld [vmem:[#allocation2 + $0x80] sm:$0xff] }
 0x581   : > { %3157 = vst.msk [vmem:[#allocation3 + $0xe8] sm:$0xff] %vm1139_vm6, %v3091_v36  ;;  %v3551_v36 = vld [vmem:[#allocation2 + $0x81] sm:$0xff] }
 0x584   : > { %3454 = vrot.lane.b32.xlu1 %v5891_v51, %s4454_s29  ;;  %3420 = vrot.lane.b32.xlu2 %v3354_v18, %s4454_s29  ;;  %v3563_v51 = vld [vmem:[#allocation2 + $0x111] sm:$0xff] }
 0x586   : > { %3612 = vrot.lane.b32.xlu0 %v6281_v43, %s4455_s30  ;;  %v3227_v55 = vpop.permute.xlu1 %3226  ;;  %v3241_v20 = vpop.permute.xlu2 %3240 }
 0x587   : > { %3321 = vst.msk [vmem:[#allocation3 + $0x8] sm:$0xff] %vm1332_vm7, %v3227_v55 }
 0x588   : > { %3328 = vst.msk [vmem:[#allocation3 + $0x40] sm:$0xff] %vm1332_vm7, %v3241_v20  ;;  %v3225_v7 = vpop.permute.xlu0 %3224 }
 0x589   : > { %3320 = vst.msk [vmem:[#allocation3] sm:$0xff] %vm1332_vm7, %v3225_v7 }
 0x58c   : > { %3838 = vrot.lane.b32.xlu1 %v7137_v59, %s4456_s6  ;;  %3804 = vrot.lane.b32.xlu2 %v3738_v30, %s4456_s6  ;;  %v3760_v30 = vld [vmem:[#allocation2 + $0x152] sm:$0xff] }
 0x58e   : > { %3646 = vrot.lane.b32.xlu0 %v3563_v51, %s4455_s30  ;;  %v3233_v38 = vpop.permute.xlu1 %3232  ;;  %v3247_v43 = vpop.permute.xlu2 %3246  ;;  %v3743_v51 = vld [vmem:[#allocation2 + $0x82] sm:$0xff] }
 0x58f   : > { %3324 = vst.msk [vmem:[#allocation3 + $0x20] sm:$0xff] %vm1332_vm7, %v3233_v38  ;;  %v3568_v38 = vld [vmem:[#allocation2 + $0x151] sm:$0xff] }
 0x590   : > { %3331 = vst.msk [vmem:[#allocation3 + $0x58] sm:$0xff] %vm1332_vm7, %v3247_v43  ;;  %v3231_v37 = vpop.permute.xlu0 %3230 }
 0x591   : > { %3323 = vst.msk [vmem:[#allocation3 + $0x18] sm:$0xff] %vm1332_vm7, %v3231_v37 }
 0x594   : > { %3456 = vrot.lane.b32.xlu1 %v5906_v3, %s4454_s29  ;;  %3422 = vrot.lane.b32.xlu2 %v3355_v39, %s4454_s29  ;;  %v3564_v3 = vld [vmem:[#allocation2 + $0x121] sm:$0xff] }
 0x596   : > { %3614 = vrot.lane.b32.xlu0 %v6287_v44, %s4455_s30  ;;  %v3239_v32 = vpop.permute.xlu1 %3238  ;;  %v3253_v19 = vpop.permute.xlu2 %3252 }
 0x597   : > { %3327 = vst.msk [vmem:[#allocation3 + $0x38] sm:$0xff] %vm1332_vm7, %v3239_v32 }
 0x598   : > { %3334 = vst.msk [vmem:[#allocation3 + $0x70] sm:$0xff] %vm1332_vm7, %v3253_v19  ;;  %v3237_v42 = vpop.permute.xlu0 %3236  ;;  %v3377_v19 = vld [vmem:[#allocation2 + $0x158] sm:$0xff] }
 0x599   : > { %3326 = vst.msk [vmem:[#allocation3 + $0x30] sm:$0xff] %vm1332_vm7, %v3237_v42  ;;  %v3360_v42 = vld [vmem:[#allocation2 + $0x90] sm:$0xff] }
 0x59c   : > { %3840 = vrot.lane.b32.xlu1 %v3756_v21, %s4456_s6  ;;  %3806 = vrot.lane.b32.xlu2 %v3739_v5, %s4456_s6  ;;  %v3552_v21 = vld [vmem:[#allocation2 + $0x91] sm:$0xff] }
 0x59e   : > { %3648 = vrot.lane.b32.xlu0 %v3564_v3, %s4455_s30  ;;  %v3245_v24 = vpop.permute.xlu1 %3244  ;;  %v3259_v44 = vpop.permute.xlu2 %3258 }
 0x59f   : > { %3330 = vst.msk [vmem:[#allocation3 + $0x50] sm:$0xff] %vm1332_vm7, %v3245_v24 }
 0x5a0   : > { %3337 = vst.msk [vmem:[#allocation3 + $0x88] sm:$0xff] %vm1332_vm7, %v3259_v44  ;;  %v3243_v27 = vpop.permute.xlu0 %3242 }
 0x5a1   : > { %3329 = vst.msk [vmem:[#allocation3 + $0x48] sm:$0xff] %vm1332_vm7, %v3243_v27  ;;  %v3761_v27 = vld [vmem:[#allocation2 + $0x15a] sm:$0xff] }
 0x5a4   : > { %3458 = vrot.lane.b32.xlu1 %v3373_v11, %s4454_s29  ;;  %3424 = vrot.lane.b32.xlu2 %v3356_v58, %s4454_s29  ;;  %v3744_v11 = vld [vmem:[#allocation2 + $0x92] sm:$0xff] }
 0x5a5   : > { %v3569_v58 = vld [vmem:[#allocation2 + $0x159] sm:$0xff] }
 0x5a6   : > { %3616 = vrot.lane.b32.xlu0 %v3548_v22, %s4455_s30  ;;  %v3251_v33 = vpop.permute.xlu1 %3250  ;;  %v3265_v54 = vpop.permute.xlu2 %3264 }
 0x5a7   : > { %3333 = vst.msk [vmem:[#allocation3 + $0x68] sm:$0xff] %vm1332_vm7, %v3251_v33 }
 0x5a8   : > { %3340 = vst.msk [vmem:[#allocation3 + $0xa0] sm:$0xff] %vm1332_vm7, %v3265_v54  ;;  %v3249_v41 = vpop.permute.xlu0 %3248 }
 0x5a9   : > { %3332 = vst.msk [vmem:[#allocation3 + $0x60] sm:$0xff] %vm1332_vm7, %v3249_v41 }
 0x5ac   : > { %3842 = vrot.lane.b32.xlu1 %v3757_v26, %s4456_s6  ;;  %3808 = vrot.lane.b32.xlu2 %v3740_v56, %s4456_s6  ;;  %v3553_v26 = vld [vmem:[#allocation2 + $0x99] sm:$0xff] }
 0x5ad   : > { %v3361_v56 = vld [vmem:[#allocation2 + $0x98] sm:$0xff] }
 0x5ae   : > { %3650 = vrot.lane.b32.xlu0 %v3565_v34, %s4455_s30  ;;  %v3257_v1 = vpop.permute.xlu1 %3256  ;;  %v3271_v59 = vpop.permute.xlu2 %3270 }
 0x5af   : > { %3336 = vst.msk [vmem:[#allocation3 + $0x80] sm:$0xff] %vm1332_vm7, %v3257_v1 }
 0x5b0   : > { %3343 = vst.msk [vmem:[#allocation3 + $0xb8] sm:$0xff] %vm1332_vm7, %v3271_v59  ;;  %v3255_v48 = vpop.permute.xlu0 %3254 }
 0x5b1   : > { %3335 = vst.msk [vmem:[#allocation3 + $0x78] sm:$0xff] %vm1332_vm7, %v3255_v48 }
 0x5b4   : > { %3460 = vrot.lane.b32.xlu1 %v5943_v53, %s4454_s29  ;;  %3426 = vrot.lane.b32.xlu2 %v3357_v4, %s4454_s29  ;;  %v3961_v53 = vld [vmem:[%s6905_s3 + $0x8] sm:$0xff]  ;;  %v3745_v4 = vld [vmem:[#allocation2 + $0x9a] sm:$0xff] }
 0x5b5   : > { %4419 = vmatpush.msra.mxu3 %v3961_v53  ;;  %4082 = vmatpush.msra.mxu1 %v3961_v53  ;;  %v3762_v53 = vld [vmem:[#allocation2 + $0x16a] sm:$0xff] }
 0x5b6   : > { %3618 = vrot.lane.b32.xlu0 %v3549_v61, %s4455_s30  ;;  %v3263_v28 = vpop.permute.xlu1 %3262  ;;  %v3449_v10 = vpop.permute.xlu2 %3448 }
 0x5b7   : > { %3339 = vst.msk [vmem:[#allocation3 + $0x98] sm:$0xff] %vm1332_vm7, %v3263_v28  ;;  %4420 = vmatpush.msra.mxu3 %v3960_v63  ;;  %4083 = vmatpush.msra.mxu1 %v3960_v63 }
 0x5b8   : > { %3528 = vst.msk [vmem:[#allocation3 + $0x80] sm:$0xff] %vm1526_vm8, %v3449_v10  ;;  %v3261_v45 = vpop.permute.xlu0 %3260 }
 0x5b9   : > { %3338 = vst.msk [vmem:[#allocation3 + $0x90] sm:$0xff] %vm1332_vm7, %v3261_v45  ;;  %v3362_v45 = vld [vmem:[#allocation2 + $0xa8] sm:$0xff] }
 0x5bc   : > { %3844 = vrot.lane.b32.xlu1 %v3758_v29, %s4456_s6  ;;  %3810 = vrot.lane.b32.xlu2 %v3741_v16, %s4456_s6 }
 0x5be   : > { %3652 = vrot.lane.b32.xlu0 %v3566_v40, %s4455_s30  ;;  %v3269_v47 = vpop.permute.xlu1 %3268  ;;  %v3417_v15 = vpop.permute.xlu2 %3416 }
 0x5bf   : > { %3342 = vst.msk [vmem:[#allocation3 + $0xb0] sm:$0xff] %vm1332_vm7, %v3269_v47  ;;  %v3746_v47 = vld [vmem:[#allocation2 + $0xaa] sm:$0xff] }
 0x5c0   : > { %3512 = vst.msk [vmem:[#allocation3] sm:$0xff] %vm1526_vm8, %v3417_v15  ;;  %v3267_v8 = vpop.permute.xlu0 %3266  ;;  %v3554_v15 = vld [vmem:[#allocation2 + $0xa9] sm:$0xff] }
 0x5c1   : > { %3341 = vst.msk [vmem:[#allocation3 + $0xa8] sm:$0xff] %vm1332_vm7, %v3267_v8  ;;  %v3379_v8 = vld [vmem:[#allocation2 + $0x170] sm:$0xff] }
 0x5c4   : > { %3462 = vrot.lane.b32.xlu1 %v3375_v9, %s4454_s29  ;;  %3428 = vrot.lane.b32.xlu2 %v3358_v31, %s4454_s29 }
 0x5c6   : > { %3620 = vrot.lane.b32.xlu0 %v3550_v35, %s4455_s30  ;;  %v3275_v25 = vpop.permute.xlu1 %3274  ;;  %v3801_v62 = vpop.permute.xlu2 %3800 }
 0x5c7   : > { %3345 = vst.msk [vmem:[#allocation3 + $0xc8] sm:$0xff] %vm1332_vm7, %v3275_v25 }
 0x5c8   : > { %v3273_v17 = vpop.permute.xlu0 %3272 }
 0x5c9   : > { %3344 = vst.msk [vmem:[#allocation3 + $0xc0] sm:$0xff] %vm1332_vm7, %v3273_v17  ;;  %v3571_v17 = vld [vmem:[#allocation2 + $0x171] sm:$0xff] }
 0x5cc   : > { %3846 = vrot.lane.b32.xlu1 %v3759_v49, %s4456_s6  ;;  %3812 = vrot.lane.b32.xlu2 %v3742_v14, %s4456_s6  ;;  %v3763_v49 = vld [vmem:[#allocation2 + $0x172] sm:$0xff] }
 0x5ce   : > { %3654 = vrot.lane.b32.xlu0 %v3567_v23, %s4455_s30  ;;  %v3833_v57 = vpop.permute.xlu1 %3832  ;;  %v3419_v2 = vpop.permute.xlu2 %3418 }
 0x5cf   : > { %3513 = vst.msk [vmem:[#allocation3 + $0x8] sm:$0xff] %vm1526_vm8, %v3419_v2 }
 0x5d0   : > { %v3641_v50 = vpop.permute.xlu0 %3640 }
 0x5d1   : > { %3720 = vst.msk [vmem:[#allocation3 + $0x80] sm:$0xff] %vm1719_vm9, %v3641_v50  ;;  %v3380_v50 = vld [vmem:[#allocation2 + $0x180] sm:$0xff] }
 0x5d2   : > { %3912 = vst.msk [vmem:[#allocation3 + $0x80] sm:$0xff] %vm1912_vm11, %v3833_v57 }
 0x5d4   : > { %3464 = vrot.lane.b32.xlu1 %v3376_v60, %s4454_s29  ;;  %3430 = vrot.lane.b32.xlu2 %v3359_v0, %s4454_s29  ;;  %v3555_v60 = vld [vmem:[#allocation2 + $0xb1] sm:$0xff] }
 0x5d6   : > { %3622 = vrot.lane.b32.xlu0 %v3551_v36, %s4455_s30  ;;  %v3451_v18 = vpop.permute.xlu1 %3450  ;;  %v3803_v55 = vpop.permute.xlu2 %3802 }
 0x5d7   : > { %3529 = vst.msk [vmem:[#allocation3 + $0x88] sm:$0xff] %vm1526_vm8, %v3451_v18 }
 0x5d8   : > { %v3609_v20 = vpop.permute.xlu0 %3608 }
 0x5d9   : > { %3704 = vst.msk [vmem:[#allocation3] sm:$0xff] %vm1719_vm9, %v3609_v20  ;;  %v3944_v7 = vld [vmem:[#allocation3 + $0x80] sm:$0xff]  ;;  %v3764_v20 = vld [vmem:[#allocation2 + $0x182] sm:$0xff] }
 0x5da   : > { %3896 = vst.msk [vmem:[#allocation3] sm:$0xff] %vm1912_vm11, %v3801_v62  ;;  %4391 = vmatmul.msk.f32.vlgmr.msra.gmra.mxu3 %vm1986_vm12, %v3944_v7  ;;  %v3363_v62 = vld [vmem:[#allocation2 + $0xb0] sm:$0xff] }
 0x5db   : > { %v3747_v7 = vld [vmem:[#allocation2 + $0xb2] sm:$0xff] }
 0x5dc   : > { %3848 = vrot.lane.b32.xlu1 %v3760_v30, %s4456_s6  ;;  %3814 = vrot.lane.b32.xlu2 %v3743_v51, %s4456_s6 }
 0x5de   : > { %3656 = vrot.lane.b32.xlu0 %v3568_v38, %s4455_s30  ;;  %v3835_v43 = vpop.permute.xlu1 %3834  ;;  %v3421_v37 = vpop.permute.xlu2 %3420 }
 0x5df   : > { %3514 = vst.msk [vmem:[#allocation3 + $0x10] sm:$0xff] %vm1526_vm8, %v3421_v37  ;;  %v3556_v37 = vld [vmem:[#allocation2 + $0xc1] sm:$0xff] }
 0x5e0   : > { %v3643_v39 = vpop.permute.xlu0 %3642 }
 0x5e1   : > { %3721 = vst.msk [vmem:[#allocation3 + $0x88] sm:$0xff] %vm1719_vm9, %v3643_v39  ;;  %v3928_v32 = vld [vmem:[#allocation3] sm:$0xff]  ;;  %v3364_v39 = vld [vmem:[#allocation2 + $0xc0] sm:$0xff] }
 0x5e2   : > { %3913 = vst.msk [vmem:[#allocation3 + $0x88] sm:$0xff] %vm1912_vm11, %v3835_v43  ;;  %4375 = vmatmul.msk.f32.vlgmr.msra.gmra.mxu1 %vm1986_vm12, %v3928_v32 }
 0x5e4   : > { %3466 = vrot.lane.b32.xlu1 %v3377_v19, %s4454_s29  ;;  %3432 = vrot.lane.b32.xlu2 %v3360_v42, %s4454_s29 }
 0x5e6   : > { %3624 = vrot.lane.b32.xlu0 %v3552_v21, %s4455_s30  ;;  %v3453_v5 = vpop.permute.xlu1 %3452  ;;  %v3805_v3 = vpop.permute.xlu2 %3804  ;;  %v3381_v21 = vld [vmem:[#allocation2 + $0x188] sm:$0xff] }
 0x5e7   : > { %3530 = vst.msk [vmem:[#allocation3 + $0x90] sm:$0xff] %vm1526_vm8, %v3453_v5  ;;  %v3748_v5 = vld [vmem:[#allocation2 + $0xc2] sm:$0xff] }
 0x5e8   : > { %v3611_v24 = vpop.permute.xlu0 %3610 }
 0x5e9   : > { %3705 = vst.msk [vmem:[#allocation3 + $0x8] sm:$0xff] %vm1719_vm9, %v3611_v24  ;;  %v3945_v44 = vld [vmem:[#allocation3 + $0x88] sm:$0xff] }
 0x5ea   : > { %3897 = vst.msk [vmem:[#allocation3 + $0x8] sm:$0xff] %vm1912_vm11, %v3803_v55  ;;  %4392 = vmatmul.msk.f32.gmra.mxu3 %vm1986_vm12, %v3945_v44 }
 0x5ec   : > { %3850 = vrot.lane.b32.xlu1 %v3761_v27, %s4456_s6  ;;  %3816 = vrot.lane.b32.xlu2 %v3744_v11, %s4456_s6  ;;  %v3765_v11 = vld [vmem:[#allocation2 + $0x18a] sm:$0xff] }
 0x5ee   : > { %3658 = vrot.lane.b32.xlu0 %v3569_v58, %s4455_s30  ;;  %v3837_v22 = vpop.permute.xlu1 %3836  ;;  %v3423_v33 = vpop.permute.xlu2 %3422 }
 0x5ef   : > { %3515 = vst.msk [vmem:[#allocation3 + $0x18] sm:$0xff] %vm1526_vm8, %v3423_v33 }
 0x5f0   : > { %v3645_v54 = vpop.permute.xlu0 %3644 }
 0x5f1   : > { %3722 = vst.msk [vmem:[#allocation3 + $0x90] sm:$0xff] %vm1719_vm9, %v3645_v54  ;;  %v3929_v41 = vld [vmem:[#allocation3 + $0x8] sm:$0xff] }
 0x5f2   : > { %3914 = vst.msk [vmem:[#allocation3 + $0x90] sm:$0xff] %vm1912_vm11, %v3837_v22  ;;  %4376 = vmatmul.msk.f32.gmra.mxu1 %vm1986_vm12, %v3929_v41  ;;  %v3749_v41 = vld [vmem:[#allocation2 + $0xca] sm:$0xff] }
 0x5f4   : > { %3626 = vrot.lane.b32.xlu1 %v3553_v26, %s4455_s30  ;;  %3434 = vrot.lane.b32.xlu2 %v3361_v56, %s4454_s29  ;;  %v3557_v26 = vld [vmem:[#allocation2 + $0xc9] sm:$0xff]  ;;  %v3382_v56 = vld [vmem:[#allocation2 + $0x198] sm:$0xff] }
 0x5f6   : > { %3276 = vrot.lane.b32.xlu0 %v3760_v30, %s4453_s28  ;;  %v3455_v34 = vpop.permute.xlu1 %3454  ;;  %v3807_v1 = vpop.permute.xlu2 %3806 }
 0x5f7   : > { %3531 = vst.msk [vmem:[#allocation3 + $0x98] sm:$0xff] %vm1526_vm8, %v3455_v34 }
 0x5f8   : > { %v3613_v59 = vpop.permute.xlu0 %3612 }
 0x5f9   : > { %3706 = vst.msk [vmem:[#allocation3 + $0x10] sm:$0xff] %vm1719_vm9, %v3613_v59  ;;  %v3946_v48 = vld [vmem:[#allocation3 + $0x90] sm:$0xff] }
 0x5fa   : > { %3898 = vst.msk [vmem:[#allocation3 + $0x10] sm:$0xff] %vm1912_vm11, %v3805_v3  ;;  %4393 = vmatmul.msk.f32.gmra.mxu3 %vm1986_vm12, %v3946_v48 }
 0x5fc   : > { %3660 = vrot.lane.b32.xlu1 %v3570_v12, %s4455_s30  ;;  %3468 = vrot.lane.b32.xlu2 %v3378_v52, %s4454_s29  ;;  %v3574_v12 = vld [vmem:[#allocation2 + $0x199] sm:$0xff] }
 0x5fd   : > { %v3366_v52 = vld [vmem:[#allocation2 + $0xd8] sm:$0xff] }
 0x5fe   : > { %3818 = vrot.lane.b32.xlu0 %v3745_v4, %s4456_s6  ;;  %v3839_v46 = vpop.permute.xlu1 %3838  ;;  %v3425_v61 = vpop.permute.xlu2 %3424  ;;  %v3766_v4 = vld [vmem:[#allocation2 + $0x19a] sm:$0xff] }
 0x5ff   : > { %3516 = vst.msk [vmem:[#allocation3 + $0x20] sm:$0xff] %vm1526_vm8, %v3425_v61 }
 0x600   : > { %v3647_v28 = vpop.permute.xlu0 %3646 }
 0x601   : > { %3723 = vst.msk [vmem:[#allocation3 + $0x98] sm:$0xff] %vm1719_vm9, %v3647_v28  ;;  %v3930_v10 = vld [vmem:[#allocation3 + $0x10] sm:$0xff] }
 0x602   : > { %3915 = vst.msk [vmem:[#allocation3 + $0x98] sm:$0xff] %vm1912_vm11, %v3839_v46  ;;  %4377 = vmatmul.msk.f32.gmra.mxu1 %vm1986_vm12, %v3930_v10 }
 0x604   : > { %3278 = vrot.lane.b32.xlu1 %v3761_v27, %s4453_s28  ;;  %3852 = vrot.lane.b32.xlu2 %v3762_v53, %s4456_s6 }
 0x606   : > { %3436 = vrot.lane.b32.xlu0 %v3362_v45, %s4454_s29  ;;  %v3457_v63 = vpop.permute.xlu1 %3456  ;;  %v3809_v29 = vpop.permute.xlu2 %3808  ;;  %v3558_v45 = vld [vmem:[#allocation2 + $0xd9] sm:$0xff] }
 0x607   : > { %3532 = vst.msk [vmem:[#allocation3 + $0xa0] sm:$0xff] %vm1526_vm8, %v3457_v63 }
 0x608   : > { %v3615_v16 = vpop.permute.xlu0 %3614 }
 0x609   : > { %3707 = vst.msk [vmem:[#allocation3 + $0x18] sm:$0xff] %vm1719_vm9, %v3615_v16  ;;  %v3947_v40 = vld [vmem:[#allocation3 + $0x98] sm:$0xff] }
 0x60a   : > { %3899 = vst.msk [vmem:[#allocation3 + $0x18] sm:$0xff] %vm1912_vm11, %v3807_v1  ;;  %4394 = vmatmul.msk.f32.gmra.mxu3 %vm1986_vm12, %v3947_v40 }
 0x60c   : > { %3820 = vrot.lane.b32.xlu1 %v3746_v47, %s4456_s6  ;;  %3628 = vrot.lane.b32.xlu2 %v3554_v15, %s4455_s30  ;;  %v3767_v47 = vld [vmem:[#allocation2 + $0x1a2] sm:$0xff]  ;;  %v6695_v15 = vld [vmem:[%s6906_s4] ss:$0 sm:$0xff] }
 0x60e   : > { %3470 = vrot.lane.b32.xlu0 %v3379_v8, %s4454_s29  ;;  %v3841_v9 = vpop.permute.xlu1 %3840  ;;  %v3427_v31 = vpop.permute.xlu2 %3426  ;;  %v3750_v8 = vld [vmem:[#allocation2 + $0xda] sm:$0xff] }
 0x60f   : > { %3517 = vst.msk [vmem:[#allocation3 + $0x28] sm:$0xff] %vm1526_vm8, %v3427_v31 }
 0x610   : > { %v3649_v35 = vpop.permute.xlu0 %3648 }
 0x611   : > { %3724 = vst.msk [vmem:[#allocation3 + $0xa0] sm:$0xff] %vm1719_vm9, %v3649_v35  ;;  %v3931_v25 = vld [vmem:[#allocation3 + $0x18] sm:$0xff] }
 0x612   : > { %3916 = vst.msk [vmem:[#allocation3 + $0xa0] sm:$0xff] %vm1912_vm11, %v3841_v9  ;;  %4378 = vmatmul.msk.f32.gmra.mxu1 %vm1986_vm12, %v3931_v25  ;;  %v3575_v9 = vld [vmem:[#allocation2 + $0x1a1] sm:$0xff] }
 0x614   : > { %3438 = vrot.lane.b32.xlu1 %v3363_v62, %s4454_s29  ;;  %3662 = vrot.lane.b32.xlu2 %v3571_v17, %s4455_s30 }
 0x616   : > { %3854 = vrot.lane.b32.xlu0 %v3763_v49, %s4456_s6  ;;  %v3459_v14 = vpop.permute.xlu1 %3458  ;;  %v3811_v23 = vpop.permute.xlu2 %3810 }
 0x617   : > { %3533 = vst.msk [vmem:[#allocation3 + $0xa8] sm:$0xff] %vm1526_vm8, %v3459_v14 }
 0x618   : > { %v3617_v57 = vpop.permute.xlu0 %3616 }
 0x619   : > { %3708 = vst.msk [vmem:[#allocation3 + $0x20] sm:$0xff] %vm1719_vm9, %v3617_v57  ;;  %v3948_v2 = vld [vmem:[#allocation3 + $0xa0] sm:$0xff] }
 0x61a   : > { %3900 = vst.msk [vmem:[#allocation3 + $0x20] sm:$0xff] %vm1912_vm11, %v3809_v29  ;;  %4395 = vmatmul.msk.f32.gmra.mxu3 %vm1986_vm12, %v3948_v2  ;;  %v7141_v2 = vld [vmem:[#allocation17_spill] sm:$0xff] }
 0x61c   : > { %3472 = vrot.lane.b32.xlu1 %v3380_v50, %s4454_s29  ;;  %3280 = vrot.lane.b32.xlu2 %v3762_v53, %s4453_s28  ;;  %v3383_v53 = vld [vmem:[#allocation2 + $0x1a0] sm:$0xff] }
 0x61e   : > { %3630 = vrot.lane.b32.xlu0 %v3555_v60, %s4455_s30  ;;  %v3843_v0 = vpop.permute.xlu1 %3842  ;;  %v3429_v36 = vpop.permute.xlu2 %3428 }
 0x61f   : > { %3518 = vst.msk [vmem:[#allocation3 + $0x30] sm:$0xff] %vm1526_vm8, %v3429_v36  ;;  %v3367_v36 = vld [vmem:[#allocation2 + $0xe0] sm:$0xff] }
 0x620   : > { %v3651_v18 = vpop.permute.xlu0 %3650 }
 0x621   : > { %3725 = vst.msk [vmem:[#allocation3 + $0xa8] sm:$0xff] %vm1719_vm9, %v3651_v18  ;;  %v3932_v55 = vld [vmem:[#allocation3 + $0x20] sm:$0xff] }
 0x622   : > { %3917 = vst.msk [vmem:[#allocation3 + $0xa8] sm:$0xff] %vm1912_vm11, %v3843_v0  ;;  %4379 = vmatmul.msk.f32.gmra.mxu1 %vm1986_vm12, %v3932_v55  ;;  %v3751_v0 = vld [vmem:[#allocation2 + $0xe2] sm:$0xff]  ;;  %v7142_v18 = vld [vmem:[#allocation4_spill] sm:$0xff] }
 0x624   : > { %3856 = vrot.lane.b32.xlu1 %v3764_v20, %s4456_s6  ;;  %3822 = vrot.lane.b32.xlu2 %v3747_v7, %s4456_s6 }
 0x626   : > { %3664 = vrot.lane.b32.xlu0 %v6357_v6, %s4455_s30  ;;  %v3461_v30 = vpop.permute.xlu1 %3460  ;;  %v3813_v51 = vpop.permute.xlu2 %3812 }
 0x627   : > { %3534 = vst.msk [vmem:[#allocation3 + $0xb0] sm:$0xff] %vm1526_vm8, %v3461_v30 }
 0x628   : > { %v3619_v38 = vpop.permute.xlu0 %3618 }
 0x629   : > { %3709 = vst.msk [vmem:[#allocation3 + $0x28] sm:$0xff] %vm1719_vm9, %v3619_v38  ;;  %v3949_v43 = vld [vmem:[#allocation3 + $0xa8] sm:$0xff] }
 0x62a   : > { %3901 = vst.msk [vmem:[#allocation3 + $0x28] sm:$0xff] %vm1912_vm11, %v3811_v23  ;;  %4396 = vmatmul.msk.f32.gmra.mxu3 %vm1986_vm12, %v3949_v43 }
 0x62c   : > { %3632 = vrot.lane.b32.xlu1 %v3556_v37, %s4455_s30  ;;  %3440 = vrot.lane.b32.xlu2 %v3364_v39, %s4454_s29 }
 0x62e   : > { %3282 = vrot.lane.b32.xlu0 %v3763_v49, %s4453_s28  ;;  %v3845_v6 = vpop.permute.xlu1 %3844  ;;  %v3431_v32 = vpop.permute.xlu2 %3430 }
 0x62f   : > { %3519 = vst.msk [vmem:[#allocation3 + $0x38] sm:$0xff] %vm1526_vm8, %v3431_v32 }
 0x630   : > { %v3653_v19 = vpop.permute.xlu0 %3652 }
 0x631   : > { %3726 = vst.msk [vmem:[#allocation3 + $0xb0] sm:$0xff] %vm1719_vm9, %v3653_v19  ;;  %v3933_v42 = vld [vmem:[#allocation3 + $0x28] sm:$0xff] }
 0x632   : > { %3918 = vst.msk [vmem:[#allocation3 + $0xb0] sm:$0xff] %vm1912_vm11, %v3845_v6  ;;  %4380 = vmatmul.msk.f32.gmra.mxu1 %vm1986_vm12, %v3933_v42 }
 0x634   : > { %3666 = vrot.lane.b32.xlu1 %v6368_v13, %s4455_s30  ;;  %3474 = vrot.lane.b32.xlu2 %v3381_v21, %s4454_s29  ;;  %v3365_v13 = vld [vmem:[#allocation2 + $0xc8] sm:$0xff] }
 0x636   : > { %3824 = vrot.lane.b32.xlu0 %v3748_v5, %s4456_s6  ;;  %v3463_v3 = vpop.permute.xlu1 %3462  ;;  %v3815_v24 = vpop.permute.xlu2 %3814  ;;  %v7143_v5 = vld [vmem:[#allocation21_spill] sm:$0xff] }
 0x637   : > { %3535 = vst.msk [vmem:[#allocation3 + $0xb8] sm:$0xff] %vm1526_vm8, %v3463_v3 }
 0x638   : > { %v3621_v44 = vpop.permute.xlu0 %3620 }
 0x639   : > { %3710 = vst.msk [vmem:[#allocation3 + $0x30] sm:$0xff] %vm1719_vm9, %v3621_v44  ;;  %v3950_v27 = vld [vmem:[#allocation3 + $0xb0] sm:$0xff] }
 0x63a   : > { %3902 = vst.msk [vmem:[#allocation3 + $0x30] sm:$0xff] %vm1912_vm11, %v3813_v51  ;;  %4397 = vmatmul.msk.f32.gmra.mxu3 %vm1986_vm12, %v3950_v27  ;;  %v7144_v44 = vld [vmem:[#allocation6_spill] sm:$0xff] }
 0x63c   : > { %3284 = vrot.lane.b32.xlu1 %v3764_v20, %s4453_s28  ;;  %3858 = vrot.lane.b32.xlu2 %v3765_v11, %s4456_s6  ;;  %v3559_v20 = vld [vmem:[#allocation2 + $0xe1] sm:$0xff] }
 0x63e   : > { %3442 = vrot.lane.b32.xlu0 %v3365_v13, %s4454_s29  ;;  %v3847_v58 = vpop.permute.xlu1 %3846  ;;  %v3433_v22 = vpop.permute.xlu2 %3432 }
 0x63f   : > { %3520 = vst.msk [vmem:[#allocation3 + $0x40] sm:$0xff] %vm1526_vm8, %v3433_v22 }
 0x640   : > { %v3655_v33 = vpop.permute.xlu0 %3654 }
 0x641   : > { %3727 = vst.msk [vmem:[#allocation3 + $0xb8] sm:$0xff] %vm1719_vm9, %v3655_v33  ;;  %v3934_v54 = vld [vmem:[#allocation3 + $0x30] sm:$0xff] }
 0x642   : > { %3919 = vst.msk [vmem:[#allocation3 + $0xb8] sm:$0xff] %vm1912_vm11, %v3847_v58  ;;  %4381 = vmatmul.msk.f32.gmra.mxu1 %vm1986_vm12, %v3934_v54 }
 0x644   : > { %3826 = vrot.lane.b32.xlu1 %v3749_v41, %s4456_s6  ;;  %3634 = vrot.lane.b32.xlu2 %v3557_v26, %s4455_s30 }
 0x646   : > { %3476 = vrot.lane.b32.xlu0 %v3382_v56, %s4454_s29  ;;  %v3465_v34 = vpop.permute.xlu1 %3464  ;;  %v3817_v1 = vpop.permute.xlu2 %3816 }
 0x647   : > { %3536 = vst.msk [vmem:[#allocation3 + $0xc0] sm:$0xff] %vm1526_vm8, %v3465_v34 }
 0x648   : > { %v3623_v59 = vpop.permute.xlu0 %3622 }
 0x649   : > { %3711 = vst.msk [vmem:[#allocation3 + $0x38] sm:$0xff] %vm1719_vm9, %v3623_v59  ;;  %v3951_v48 = vld [vmem:[#allocation3 + $0xb8] sm:$0xff] }
 0x64a   : > { %3903 = vst.msk [vmem:[#allocation3 + $0x38] sm:$0xff] %vm1912_vm11, %v3815_v24  ;;  %4398 = vmatmul.msk.f32.gmra.mxu3 %vm1986_vm12, %v3951_v48 }
 0x64c   : > { %3444 = vrot.lane.b32.xlu1 %v3366_v52, %s4454_s29  ;;  %3668 = vrot.lane.b32.xlu2 %v3574_v12, %s4455_s30  ;;  %v7145_v12 = vld [vmem:[#allocation25_spill] sm:$0xff] }
 0x64e   : > { %3860 = vrot.lane.b32.xlu0 %v3766_v4, %s4456_s6  ;;  %v3849_v46 = vpop.permute.xlu1 %3848  ;;  %v3435_v61 = vpop.permute.xlu2 %3434 }
 0x64f   : > { %3521 = vst.msk [vmem:[#allocation3 + $0x48] sm:$0xff] %vm1526_vm8, %v3435_v61 }
 0x650   : > { %v3657_v28 = vpop.permute.xlu0 %3656 }
 0x651   : > { %3728 = vst.msk [vmem:[#allocation3 + $0xc0] sm:$0xff] %vm1719_vm9, %v3657_v28  ;;  %v3935_v10 = vld [vmem:[#allocation3 + $0x38] sm:$0xff] }
 0x652   : > { %3920 = vst.msk [vmem:[#allocation3 + $0xc0] sm:$0xff] %vm1912_vm11, %v3849_v46  ;;  %4382 = vmatmul.msk.f32.gmra.mxu1 %vm1986_vm12, %v3935_v10  ;;  %v7146_v46 = vld [vmem:[#allocation7_spill] sm:$0xff] }
 0x654   : > { %3478 = vrot.lane.b32.xlu1 %v3383_v53, %s4454_s29  ;;  %3286 = vrot.lane.b32.xlu2 %v3765_v11, %s4453_s28 }
 0x656   : > { %3636 = vrot.lane.b32.xlu0 %v3558_v45, %s4455_s30  ;;  %v3467_v63 = vpop.permute.xlu1 %3466  ;;  %v3469_v29 = vpop.permute.xlu2 %3468 }
 0x657   : > { %3537 = vst.msk [vmem:[#allocation3 + $0xc8] sm:$0xff] %vm1526_vm8, %v3467_v63 }
 0x658   : > { %v3625_v16 = vpop.permute.xlu0 %3624 }
 0x659   : > { %3712 = vst.msk [vmem:[#allocation3 + $0x40] sm:$0xff] %vm1719_vm9, %v3625_v16  ;;  %v3952_v40 = vld [vmem:[#allocation3 + $0xc0] sm:$0xff] }
 0x65a   : > { %3904 = vst.msk [vmem:[#allocation3 + $0x40] sm:$0xff] %vm1912_vm11, %v3817_v1  ;;  %4399 = vmatmul.msk.f32.gmra.mxu3 %vm1986_vm12, %v3952_v40 }
 0x65c   : > { %3862 = vrot.lane.b32.xlu1 %v3767_v47, %s4456_s6  ;;  %3828 = vrot.lane.b32.xlu2 %v3750_v8, %s4456_s6 }
 0x65d   : > { %v4133_v31 = vpop.f32.mrf.mxu3 }
 0x65e   : > { %v4134_v35 = vadd.f32 %v6695_v15, %v4133_v31  ;;  %3670 = vrot.lane.b32.xlu0 %v3575_v9, %s4455_s30  ;;  %v3851_v25 = vpop.permute.xlu1 %3850  ;;  %v3853_v62 = vpop.permute.xlu2 %3852 }
 0x65f   : > { %v4085_v17 = vpop.f32.mrf.mxu1 }
 0x660   : > { %v4197_v49 = vmul.f32 0.1, %v4134_v35  ;;  %v4086_v14 = vadd.f32 %v6695_v15, %v4085_v17  ;;  %v3659_v23 = vpop.permute.xlu0 %3658 }
 0x661   : > { %3729 = vst.msk [vmem:[#allocation3 + $0xc8] sm:$0xff] %vm1719_vm9, %v3659_v23  ;;  %v3936_v57 = vld [vmem:[#allocation3 + $0x40] sm:$0xff] }
 0x662   : > { %v4229_v50 = vadd.f32 %v4197_v49, %v7141_v2  ;;  %v4181_v60 = vmul.f32 0.1, %v4086_v14  ;;  %3921 = vst.msk [vmem:[#allocation3 + $0xc8] sm:$0xff] %vm1912_vm11, %v3851_v25  ;;  %4383 = vmatmul.msk.f32.gmra.mxu1 %vm1986_vm12, %v3936_v57  ;;  %v7147_v25 = vld [vmem:[#allocation20_spill] sm:$0xff]  ;;  %v7148_v49 = vld [vmem:[#allocation10_spill] sm:$0xff] }
 0x664   : > { %4261 = vst.msk [vmem:[%s6707_s14 + $0x80] sm:$0xff] %vm225_vm0, %v4229_v50  ;;  %v4213_v55 = vadd.f32 %v4181_v60, %v7142_v18  ;;  %3830 = vrot.lane.b32.xlu1 %v3751_v0, %s4456_s6  ;;  %3446 = vrot.lane.b32.xlu2 %v3367_v36, %s4454_s29 }
 0x666   : > { %4245 = vst.msk [vmem:[%s6707_s14] sm:$0xff] %vm225_vm0, %v4213_v55  ;;  %3638 = vrot.lane.b32.xlu0 %v3559_v20, %s4455_s30  ;;  %v3627_v7 = vpop.permute.xlu1 %3626  ;;  %v3629_v30 = vpop.permute.xlu2 %3628 }
 0x667   : > { %3713 = vst.msk [vmem:[#allocation3 + $0x48] sm:$0xff] %vm1719_vm9, %v3627_v7 }
 0x668   : > { %v3277_v51 = vpop.permute.xlu0 %3276 }
 0x669   : > { %3346 = vst.msk [vmem:[#allocation3 + $0xd0] sm:$0xff] %vm1332_vm7, %v3277_v51  ;;  %v3953_v38 = vld [vmem:[#allocation3 + $0xc8] sm:$0xff] }
 0x66a   : > { %3538 = vst.msk [vmem:[#allocation3 + $0xd0] sm:$0xff] %vm1526_vm8, %v3469_v29  ;;  %4400 = vmatmul.msk.f32.gmra.mxu3 %vm1986_vm12, %v3953_v38  ;;  %v7149_v38 = vld [vmem:[#allocation24_spill] sm:$0xff] }
 0x66d   : > { %v4136_v43 = vpop.f32.mrf.mxu3 }
 0x66e   : > { %v4137_v37 = vadd.f32 %v6695_v15, %v4136_v43  ;;  %v3661_v39 = vpop.permute.xlu1 %3660  ;;  %v3663_v6 = vpop.permute.xlu2 %3662 }
 0x66f   : > { %3730 = vst.msk [vmem:[#allocation3 + $0xd0] sm:$0xff] %vm1719_vm9, %v3661_v39  ;;  %v4088_v32 = vpop.f32.mrf.mxu1  ;;  %v7150_v39 = vld [vmem:[#allocation5_spill] sm:$0xff] }
 0x670   : > { %v4198_v19 = vmul.f32 0.1, %v4137_v37  ;;  %3922 = vst.msk [vmem:[#allocation3 + $0xd0] sm:$0xff] %vm1912_vm11, %v3853_v62  ;;  %v4089_v42 = vadd.f32 %v6695_v15, %v4088_v32  ;;  %v3819_v21 = vpop.permute.xlu0 %3818 }
 0x671   : > { %3905 = vst.msk [vmem:[#allocation3 + $0x48] sm:$0xff] %vm1912_vm11, %v3819_v21 }
 0x672   : > { %v4230_v3 = vadd.f32 %v4198_v19, %v7143_v5  ;;  %v4182_v24 = vmul.f32 0.1, %v4089_v42 }
 0x674   : > { %4262 = vst.msk [vmem:[%s6707_s14 + $0x88] sm:$0xff] %vm225_vm0, %v4230_v3  ;;  %v4214_v27 = vadd.f32 %v4182_v24, %v7144_v44 }
 0x676   : > { %4246 = vst.msk [vmem:[%s6707_s14 + $0x8] sm:$0xff] %vm225_vm0, %v4214_v27  ;;  %v3279_v11 = vpop.permute.xlu1 %3278  ;;  %v3281_v13 = vpop.permute.xlu2 %3280 }
 0x677   : > { %3347 = vst.msk [vmem:[#allocation3 + $0xd8] sm:$0xff] %vm1332_vm7, %v3279_v11  ;;  %v3954_v58 = vld [vmem:[#allocation3 + $0xd0] sm:$0xff] }
 0x678   : > { %3348 = vst.msk [vmem:[#allocation3 + $0xe0] sm:$0xff] %vm1332_vm7, %v3281_v13  ;;  %v3437_v22 = vpop.permute.xlu0 %3436  ;;  %4401 = vmatmul.msk.f32.gmra.mxu3 %vm1986_vm12, %v3954_v58  ;;  %v3937_v33 = vld [vmem:[#allocation3 + $0x48] sm:$0xff] }
 0x679   : > { %3522 = vst.msk [vmem:[#allocation3 + $0x50] sm:$0xff] %vm1526_vm8, %v3437_v22  ;;  %4384 = vmatmul.msk.f32.gmra.mxu1 %vm1986_vm12, %v3937_v33  ;;  %v7151_v33 = vld [vmem:[#allocation28_spill] sm:$0xff] }
 0x67a   : > { %3714 = vst.msk [vmem:[#allocation3 + $0x50] sm:$0xff] %vm1719_vm9, %v3629_v30 }
 0x67d   : > { %v4139_v54 = vpop.f32.mrf.mxu3 }
 0x67e   : > { %v4140_v41 = vadd.f32 %v6695_v15, %v4139_v54  ;;  %v3821_v26 = vpop.permute.xlu1 %3820  ;;  %v3823_v56 = vpop.permute.xlu2 %3822 }
 0x67f   : > { %3906 = vst.msk [vmem:[#allocation3 + $0x50] sm:$0xff] %vm1912_vm11, %v3821_v26  ;;  %v4091_v34 = vpop.f32.mrf.mxu1  ;;  %v7152_v26 = vld [vmem:[#allocation9_spill] sm:$0xff] }
 0x680   : > { %v4199_v1 = vmul.f32 0.1, %v4140_v41  ;;  %v4092_v59 = vadd.f32 %v6695_v15, %v4091_v34  ;;  %v3471_v48 = vpop.permute.xlu0 %3470 }
 0x681   : > { %3539 = vst.msk [vmem:[#allocation3 + $0xd8] sm:$0xff] %vm1526_vm8, %v3471_v48 }
 0x682   : > { %v4231_v52 = vadd.f32 %v4199_v1, %v7145_v12  ;;  %v4183_v4 = vmul.f32 0.1, %v4092_v59  ;;  %3731 = vst.msk [vmem:[#allocation3 + $0xd8] sm:$0xff] %vm1719_vm9, %v3663_v6 }
 0x684   : > { %4263 = vst.msk [vmem:[%s6707_s14 + $0x90] sm:$0xff] %vm225_vm0, %v4231_v52  ;;  %v4215_v61 = vadd.f32 %v4183_v4, %v7146_v46 }
 0x686   : > { %4247 = vst.msk [vmem:[%s6707_s14 + $0x10] sm:$0xff] %vm225_vm0, %v4215_v61  ;;  %v3439_v28 = vpop.permute.xlu1 %3438  ;;  %v3441_v10 = vpop.permute.xlu2 %3440  ;;  %v3938_v53 = vld [vmem:[#allocation3 + $0x50] sm:$0xff] }
 0x687   : > { %3523 = vst.msk [vmem:[#allocation3 + $0x58] sm:$0xff] %vm1526_vm8, %v3439_v28  ;;  %4385 = vmatmul.msk.f32.gmra.mxu1 %vm1986_vm12, %v3938_v53 }
 0x688   : > { %3524 = vst.msk [vmem:[#allocation3 + $0x60] sm:$0xff] %vm1526_vm8, %v3441_v10  ;;  %v3855_v45 = vpop.permute.xlu0 %3854 }
 0x689   : > { %3923 = vst.msk [vmem:[#allocation3 + $0xd8] sm:$0xff] %vm1912_vm11, %v3855_v45  ;;  %v7153_v45 = vld [vmem:[#allocation23_spill] sm:$0xff] }
 0x68d   : > { %v4142_v63 = vpop.f32.mrf.mxu3 }
 0x68e   : > { %v4143_v29 = vadd.f32 %v6695_v15, %v4142_v63  ;;  %v3473_v16 = vpop.permute.xlu1 %3472  ;;  %v3475_v40 = vpop.permute.xlu2 %3474 }
 0x68f   : > { %3540 = vst.msk [vmem:[#allocation3 + $0xe0] sm:$0xff] %vm1526_vm8, %v3473_v16  ;;  %v4094_v47 = vpop.f32.mrf.mxu1  ;;  %v7154_v16 = vld [vmem:[#allocation13_spill] sm:$0xff] }
 0x690   : > { %v4200_v8 = vmul.f32 0.1, %v4143_v29  ;;  %v4095_v9 = vadd.f32 %v6695_v15, %v4094_v47  ;;  %v3631_v31 = vpop.permute.xlu0 %3630  ;;  %v3955_v35 = vld [vmem:[#allocation3 + $0xd8] sm:$0xff] }
 0x691   : > { %3715 = vst.msk [vmem:[#allocation3 + $0x58] sm:$0xff] %vm1719_vm9, %v3631_v31  ;;  %4402 = vmatmul.msk.f32.gmra.mxu3 %vm1986_vm12, %v3955_v35 }
 0x692   : > { %v4232_v62 = vadd.f32 %v4200_v8, %v7147_v25  ;;  %v4184_v17 = vmul.f32 0.1, %v4095_v9  ;;  %3907 = vst.msk [vmem:[#allocation3 + $0x58] sm:$0xff] %vm1912_vm11, %v3823_v56 }
 0x694   : > { %4264 = vst.msk [vmem:[%s6707_s14 + $0x98] sm:$0xff] %vm225_vm0, %v4232_v62  ;;  %v4216_v14 = vadd.f32 %v4184_v17, %v7148_v49 }
 0x696   : > { %4248 = vst.msk [vmem:[%s6707_s14 + $0x18] sm:$0xff] %vm225_vm0, %v4216_v14  ;;  %v3857_v23 = vpop.permute.xlu1 %3856  ;;  %v3859_v57 = vpop.permute.xlu2 %3858 }
 0x698   : > { %v3665_v2 = vpop.permute.xlu0 %3664 }
 0x699   : > { %3732 = vst.msk [vmem:[#allocation3 + $0xe0] sm:$0xff] %vm1719_vm9, %v3665_v2  ;;  %v3939_v50 = vld [vmem:[#allocation3 + $0x58] sm:$0xff] }
 0x69a   : > { %3924 = vst.msk [vmem:[#allocation3 + $0xe0] sm:$0xff] %vm1912_vm11, %v3857_v23  ;;  %4386 = vmatmul.msk.f32.gmra.mxu1 %vm1986_vm12, %v3939_v50 }
 0x69d   : > { %v4145_v60 = vpop.f32.mrf.mxu3 }
 0x69e   : > { %v4146_v0 = vadd.f32 %v6695_v15, %v4145_v60  ;;  %v3633_v36 = vpop.permute.xlu1 %3632  ;;  %v3635_v18 = vpop.permute.xlu2 %3634  ;;  %v7156_v60 = vld [vmem:[#allocation8_spill] sm:$0xff] }
 0x69f   : > { %3716 = vst.msk [vmem:[#allocation3 + $0x60] sm:$0xff] %vm1719_vm9, %v3633_v36  ;;  %v4097_v55 = vpop.f32.mrf.mxu1 }
 0x6a0   : > { %v4201_v20 = vmul.f32 0.1, %v4146_v0  ;;  %v4098_v7 = vadd.f32 %v6695_v15, %v4097_v55  ;;  %v3283_v30 = vpop.permute.xlu0 %3282 }
 0x6a1   : > { %3349 = vst.msk [vmem:[#allocation3 + $0xe8] sm:$0xff] %vm1332_vm7, %v3283_v30  ;;  %v3956_v51 = vld [vmem:[#allocation3 + $0xe0] sm:$0xff] }
 0x6a2   : > { %v4233_v43 = vadd.f32 %v4201_v20, %v7149_v38  ;;  %v4185_v37 = vmul.f32 0.1, %v4098_v7  ;;  %3541 = vst.msk [vmem:[#allocation3 + $0xe8] sm:$0xff] %vm1526_vm8, %v3475_v40  ;;  %4403 = vmatmul.msk.f32.gmra.mxu3 %vm1986_vm12, %v3956_v51 }
 0x6a4   : > { %4265 = vst.msk [vmem:[%s6707_s14 + $0xa0] sm:$0xff] %vm225_vm0, %v4233_v43  ;;  %v4217_v6 = vadd.f32 %v4185_v37, %v7150_v39  ;;  %v7157_v37 = vld [vmem:[#allocation31_spill] sm:$0xff] }
 0x6a6   : > { %4249 = vst.msk [vmem:[%s6707_s14 + $0x20] sm:$0xff] %vm225_vm0, %v4217_v6  ;;  %v3667_v32 = vpop.permute.xlu1 %3666  ;;  %v3669_v19 = vpop.permute.xlu2 %3668 }
 0x6a7   : > { %3733 = vst.msk [vmem:[#allocation3 + $0xe8] sm:$0xff] %vm1719_vm9, %v3667_v32  ;;  %v7158_v32 = vld [vmem:[#allocation12_spill] sm:$0xff] }
 0x6a8   : > { %3925 = vst.msk [vmem:[#allocation3 + $0xe8] sm:$0xff] %vm1912_vm11, %v3859_v57  ;;  %v3825_v42 = vpop.permute.xlu0 %3824  ;;  %v7155_v57 = vld [vmem:[#allocation27_spill] sm:$0xff] }
 0x6a9   : > { %3908 = vst.msk [vmem:[#allocation3 + $0x60] sm:$0xff] %vm1912_vm11, %v3825_v42 }
 0x6ad   : > { %v4148_v21 = vpop.f32.mrf.mxu3 }
 0x6ae   : > { %v4149_v5 = vadd.f32 %v6695_v15, %v4148_v21  ;;  %v3285_v3 = vpop.permute.xlu1 %3284  ;;  %v3287_v24 = vpop.permute.xlu2 %3286 }
 0x6af   : > { %3350 = vst.msk [vmem:[#allocation3 + $0xf0] sm:$0xff] %vm1332_vm7, %v3285_v3  ;;  %v4100_v44 = vpop.f32.mrf.mxu1  ;;  %v3957_v27 = vld [vmem:[#allocation3 + $0xe8] sm:$0xff]  ;;  %v7159_v3 = vld [vmem:[#allocation26_spill] sm:$0xff] }
 0x6b0   : > { %v4202_v11 = vmul.f32 0.1, %v4149_v5  ;;  %3351 = vst.msk [vmem:[#allocation3 + $0xf8] sm:$0xff] %vm1332_vm7, %v3287_v24  ;;  %v4101_v13 = vadd.f32 %v6695_v15, %v4100_v44  ;;  %v3443_v58 = vpop.permute.xlu0 %3442  ;;  %4404 = vmatmul.msk.f32.gmra.mxu3 %vm1986_vm12, %v3957_v27  ;;  %v3940_v22 = vld [vmem:[#allocation3 + $0x60] sm:$0xff] }
 0x6b1   : > { %3525 = vst.msk [vmem:[#allocation3 + $0x68] sm:$0xff] %vm1526_vm8, %v3443_v58  ;;  %4387 = vmatmul.msk.f32.gmra.mxu1 %vm1986_vm12, %v3940_v22 }
 0x6b2   : > { %v4234_v54 = vadd.f32 %v4202_v11, %v7151_v33  ;;  %v4186_v41 = vmul.f32 0.1, %v4101_v13  ;;  %3717 = vst.msk [vmem:[#allocation3 + $0x68] sm:$0xff] %vm1719_vm9, %v3635_v18  ;;  %v7160_v13 = vld [vmem:[#allocation16_spill] sm:$0xff] }
 0x6b4   : > { %4266 = vst.msk [vmem:[%s6707_s14 + $0xa8] sm:$0xff] %vm225_vm0, %v4234_v54  ;;  %v4218_v56 = vadd.f32 %v4186_v41, %v7152_v26  ;;  %v7161_v41 = vld [vmem:[#allocation30_spill] sm:$0xff] }
 0x6b6   : > { %4250 = vst.msk [vmem:[%s6707_s14 + $0x28] sm:$0xff] %vm225_vm0, %v4218_v56  ;;  %v3827_v34 = vpop.permute.xlu1 %3826  ;;  %v3829_v1 = vpop.permute.xlu2 %3828 }
 0x6b7   : > { %3909 = vst.msk [vmem:[#allocation3 + $0x68] sm:$0xff] %vm1912_vm11, %v3827_v34 }
 0x6b8   : > { %v3477_v59 = vpop.permute.xlu0 %3476 }
 0x6b9   : > { %3542 = vst.msk [vmem:[#allocation3 + $0xf0] sm:$0xff] %vm1526_vm8, %v3477_v59  ;;  %v7162_v59 = vld [vmem:[#allocation11_spill] sm:$0xff] }
 0x6ba   : > { %3734 = vst.msk [vmem:[#allocation3 + $0xf0] sm:$0xff] %vm1719_vm9, %v3669_v19 }
 0x6bd   : > { %v4151_v48 = vpop.f32.mrf.mxu3 }
 0x6be   : > { %v4152_v12 = vadd.f32 %v6695_v15, %v4151_v48  ;;  %v3445_v52 = vpop.permute.xlu1 %3444  ;;  %v3447_v4 = vpop.permute.xlu2 %3446  ;;  %v3941_v46 = vld [vmem:[#allocation3 + $0x68] sm:$0xff] }
 0x6bf   : > { %3526 = vst.msk [vmem:[#allocation3 + $0x70] sm:$0xff] %vm1526_vm8, %v3445_v52  ;;  %v4103_v61 = vpop.f32.mrf.mxu1  ;;  %4388 = vmatmul.msk.f32.gmra.mxu1 %vm1986_vm12, %v3941_v46 }
 0x6c0   : > { %v4203_v28 = vmul.f32 0.1, %v4152_v12  ;;  %3527 = vst.msk [vmem:[#allocation3 + $0x78] sm:$0xff] %vm1526_vm8, %v3447_v4  ;;  %v4104_v10 = vadd.f32 %v6695_v15, %v4103_v61  ;;  %v3861_v53 = vpop.permute.xlu0 %3860 }
 0x6c1   : > { %3926 = vst.msk [vmem:[#allocation3 + $0xf0] sm:$0xff] %vm1912_vm11, %v3861_v53 }
 0x6c2   : > { %v4235_v63 = vadd.f32 %v4203_v28, %v7153_v45  ;;  %v4187_v29 = vmul.f32 0.1, %v4104_v10  ;;  %v7163_v28 = vld [vmem:[#allocation33_spill] sm:$0xff]  ;;  %v7164_v45 = vld [vmem:[#allocation15_spill] sm:$0xff] }
 0x6c4   : > { %4267 = vst.msk [vmem:[%s6707_s14 + $0xb0] sm:$0xff] %vm225_vm0, %v4235_v63  ;;  %v4219_v40 = vadd.f32 %v4187_v29, %v7154_v16 }
 0x6c6   : > { %4251 = vst.msk [vmem:[%s6707_s14 + $0x30] sm:$0xff] %vm225_vm0, %v4219_v40  ;;  %v3479_v47 = vpop.permute.xlu1 %3478 }
 0x6c7   : > { %3543 = vst.msk [vmem:[#allocation3 + $0xf8] sm:$0xff] %vm1526_vm8, %v3479_v47  ;;  %v7165_v47 = vld [vmem:[#allocation29_spill] sm:$0xff] }
 0x6c8   : > { %v3637_v8 = vpop.permute.xlu0 %3636  ;;  %v3958_v9 = vld [vmem:[#allocation3 + $0xf0] sm:$0xff] }
 0x6c9   : > { %3718 = vst.msk [vmem:[#allocation3 + $0x70] sm:$0xff] %vm1719_vm9, %v3637_v8  ;;  %4405 = vmatmul.msk.f32.gmra.mxu3 %vm1986_vm12, %v3958_v9 }
 0x6ca   : > { %3910 = vst.msk [vmem:[#allocation3 + $0x70] sm:$0xff] %vm1912_vm11, %v3829_v1 }
 0x6cd   : > { %v4154_v31 = vpop.f32.mrf.mxu3 }
 0x6ce   : > { %v4155_v35 = vadd.f32 %v6695_v15, %v4154_v31  ;;  %v3863_v25 = vpop.permute.xlu1 %3862 }
 0x6cf   : > { %v4106_v62 = vpop.f32.mrf.mxu1 }
 0x6d0   : > { %v4204_v17 = vmul.f32 0.1, %v4155_v35  ;;  %v4107_v49 = vadd.f32 %v6695_v15, %v4106_v62  ;;  %v3671_v14 = vpop.permute.xlu0 %3670 }
 0x6d1   : > { %3735 = vst.msk [vmem:[#allocation3 + $0xf8] sm:$0xff] %vm1719_vm9, %v3671_v14  ;;  %v3942_v23 = vld [vmem:[#allocation3 + $0x70] sm:$0xff] }
 0x6d2   : > { %v4236_v2 = vadd.f32 %v4204_v17, %v7155_v57  ;;  %v4188_v50 = vmul.f32 0.1, %v4107_v49  ;;  %3927 = vst.msk [vmem:[#allocation3 + $0xf8] sm:$0xff] %vm1912_vm11, %v3863_v25  ;;  %4389 = vmatmul.msk.f32.gmra.mxu1 %vm1986_vm12, %v3942_v23  ;;  %v7166_v25 = vld [vmem:[#allocation19_spill] sm:$0xff]  ;;  %v7167_v23 = vld [vmem:[#allocation32_spill] sm:$0xff] }
 0x6d4   : > { %4268 = vst.msk [vmem:[%s6707_s14 + $0xb8] sm:$0xff] %vm225_vm0, %v4236_v2  ;;  %v4220_v0 = vadd.f32 %v4188_v50, %v7156_v60 }
 0x6d6   : > { %4252 = vst.msk [vmem:[%s6707_s14 + $0x38] sm:$0xff] %vm225_vm0, %v4220_v0  ;;  %v3831_v18 = vpop.permute.xlu1 %3830  ;;  %v7168_v0 = vld [vmem:[#allocation14_spill] sm:$0xff] }
 0x6d8   : > { %v3639_v36 = vpop.permute.xlu0 %3638 }
 0x6d9   : > { %3719 = vst.msk [vmem:[#allocation3 + $0x78] sm:$0xff] %vm1719_vm9, %v3639_v36  ;;  %v3959_v55 = vld [vmem:[#allocation3 + $0xf8] sm:$0xff] }
 0x6da   : > { %3911 = vst.msk [vmem:[#allocation3 + $0x78] sm:$0xff] %vm1912_vm11, %v3831_v18  ;;  %4406 = vmatmul.msk.f32.gmra.mxu3 %vm1986_vm12, %v3959_v55 }
 0x6dd   : > { %v4157_v20 = vpop.f32.mrf.mxu3 }
 0x6de   : > { %v4158_v7 = vadd.f32 %v6695_v15, %v4157_v20 }
 0x6df   : > { %v4109_v30 = vpop.f32.mrf.mxu1 }
 0x6e0   : > { %v4205_v51 = vmul.f32 0.1, %v4158_v7  ;;  %v4110_v38 = vadd.f32 %v6695_v15, %v4109_v30 }
 0x6e1   : > { %v3943_v43 = vld [vmem:[#allocation3 + $0x78] sm:$0xff] }
 0x6e2   : > { %v4237_v39 = vadd.f32 %v4205_v51, %v7157_v37  ;;  %v4189_v6 = vmul.f32 0.1, %v4110_v38  ;;  %4390 = vmatmul.msk.f32.gmra.mxu1 %vm1986_vm12, %v3943_v43  ;;  %v7169_v51 = vld [vmem:[#allocation64_spill] sm:$0xff]  ;;  %v7170_v37 = vld [vmem:[#allocation18_spill] sm:$0xff] }
 0x6e4   : > { %4269 = vst.msk [vmem:[%s6707_s14 + $0xc0] sm:$0xff] %vm225_vm0, %v4237_v39  ;;  %v4221_v19 = vadd.f32 %v4189_v6, %v7158_v32 }
 0x6e6   : > { %4253 = vst.msk [vmem:[%s6707_s14 + $0x40] sm:$0xff] %vm225_vm0, %v4221_v19 }
 0x6ed   : > { %v4160_v42 = vpop.f32.mrf.mxu3 }
 0x6ee   : > { %v4161_v21 = vadd.f32 %v6695_v15, %v4160_v42 }
 0x6f0   : > { %v4206_v5 = vmul.f32 0.1, %v4161_v21 }
 0x6f2   : > { %v4238_v24 = vadd.f32 %v4206_v5, %v7159_v3  ;;  %v7171_v5 = vld [vmem:[#allocation65_spill] sm:$0xff] }
 0x6f4   : > { %4270 = vst.msk [vmem:[%s6707_s14 + $0xc8] sm:$0xff] %vm225_vm0, %v4238_v24 }
 0x6f6   : > { %v4112_v44 = vpop.f32.mrf.mxu1 }
 0x6f7   : > { %v4113_v27 = vadd.f32 %v6695_v15, %v4112_v44  ;;  %v7172_v44 = vld [vmem:[#allocation22_spill] sm:$0xff] }
 0x6f9   : > { %v4190_v11 = vmul.f32 0.1, %v4113_v27 }
 0x6fb   : > { %v4222_v58 = vadd.f32 %v4190_v11, %v7160_v13  ;;  %v4163_v22 = vpop.f32.mrf.mxu3 }
 0x6fc   : > { %v4164_v33 = vadd.f32 %v6695_v15, %v4163_v22 }
 0x6fd   : > { %4254 = vst.msk [vmem:[%s6707_s14 + $0x48] sm:$0xff] %vm225_vm0, %v4222_v58 }
 0x6fe   : > { %v4207_v54 = vmul.f32 0.1, %v4164_v33 }
 0x700   : > { %v4239_v26 = vadd.f32 %v4207_v54, %v7161_v41 }
 0x702   : > { %4271 = vst.msk [vmem:[%s6707_s14 + $0xd0] sm:$0xff] %vm225_vm0, %v4239_v26 }
 0x704   : > { %v4115_v56 = vpop.f32.mrf.mxu1 }
 0x705   : > { %v4116_v34 = vadd.f32 %v6695_v15, %v4115_v56 }
 0x707   : > { %v4191_v1 = vmul.f32 0.1, %v4116_v34 }
 0x709   : > { %v4223_v48 = vadd.f32 %v4191_v1, %v7162_v59 }
 0x70b   : > { %4255 = vst.msk [vmem:[%s6707_s14 + $0x50] sm:$0xff] %vm225_vm0, %v4223_v48 }
 0x714   : > { %v4166_v12 = vpop.f32.mrf.mxu3 }
 0x715   : > { %v4167_v52 = vadd.f32 %v6695_v15, %v4166_v12 }
 0x717   : > { %v4208_v4 = vmul.f32 0.1, %v4167_v52  ;;  %v4118_v46 = vpop.f32.mrf.mxu1 }
 0x718   : > { %v4119_v61 = vadd.f32 %v6695_v15, %v4118_v46 }
 0x719   : > { %v4240_v10 = vadd.f32 %v4208_v4, %v7163_v28 }
 0x71a   : > { %v4192_v53 = vmul.f32 0.1, %v4119_v61 }
 0x71b   : > { %4272 = vst.msk [vmem:[%s6707_s14 + $0xd8] sm:$0xff] %vm225_vm0, %v4240_v10 }
 0x71c   : > { %v4224_v63 = vadd.f32 %v4192_v53, %v7164_v45 }
 0x71e   : > { %4256 = vst.msk [vmem:[%s6707_s14 + $0x58] sm:$0xff] %vm225_vm0, %v4224_v63 }
 0x725   : > { %v4169_v29 = vpop.f32.mrf.mxu3 }
 0x726   : > { %v4170_v16 = vadd.f32 %v6695_v15, %v4169_v29 }
 0x728   : > { %v4209_v40 = vmul.f32 0.1, %v4170_v16 }
 0x72a   : > { %v4241_v8 = vadd.f32 %v4209_v40, %v7165_v47 }
 0x72c   : > { %4273 = vst.msk [vmem:[%s6707_s14 + $0xe0] sm:$0xff] %vm225_vm0, %v4241_v8 }
 0x72e   : > { %v4121_v9 = vpop.f32.mrf.mxu1 }
 0x72f   : > { %v4122_v31 = vadd.f32 %v6695_v15, %v4121_v9 }
 0x731   : > { %v4193_v35 = vmul.f32 0.1, %v4122_v31 }
 0x733   : > { %v4225_v62 = vadd.f32 %v4193_v35, %v7166_v25  ;;  %v4172_v17 = vpop.f32.mrf.mxu3 }
 0x734   : > { %v4173_v49 = vadd.f32 %v6695_v15, %v4172_v17 }
 0x735   : > { %4257 = vst.msk [vmem:[%s6707_s14 + $0x60] sm:$0xff] %vm225_vm0, %v4225_v62 }
 0x736   : > { %v4210_v14 = vmul.f32 0.1, %v4173_v49 }
 0x738   : > { %v4242_v57 = vadd.f32 %v4210_v14, %v7167_v23 }
 0x73a   : > { %4274 = vst.msk [vmem:[%s6707_s14 + $0xe8] sm:$0xff] %vm225_vm0, %v4242_v57 }
 0x73c   : > { %v4124_v2 = vpop.f32.mrf.mxu1 }
 0x73d   : > { %v4125_v50 = vadd.f32 %v6695_v15, %v4124_v2 }
 0x73f   : > { %v4194_v60 = vmul.f32 0.1, %v4125_v50 }
 0x741   : > { %v4226_v36 = vadd.f32 %v4194_v60, %v7168_v0 }
 0x743   : > { %4258 = vst.msk [vmem:[%s6707_s14 + $0x68] sm:$0xff] %vm225_vm0, %v4226_v36 }
 0x74c   : > { %v4175_v18 = vpop.f32.mrf.mxu3 }
 0x74d   : > { %v4176_v55 = vadd.f32 %v6695_v15, %v4175_v18 }
 0x74f   : > { %v4211_v20 = vmul.f32 0.1, %v4176_v55  ;;  %v4127_v7 = vpop.f32.mrf.mxu1 }
 0x750   : > { %v4128_v30 = vadd.f32 %v6695_v15, %v4127_v7 }
 0x751   : > { %v4243_v38 = vadd.f32 %v4211_v20, %v7169_v51 }
 0x752   : > { %v4195_v43 = vmul.f32 0.1, %v4128_v30 }
 0x753   : > { %4275 = vst.msk [vmem:[%s6707_s14 + $0xf0] sm:$0xff] %vm225_vm0, %v4243_v38 }
 0x754   : > { %v4227_v39 = vadd.f32 %v4195_v43, %v7170_v37 }
 0x756   : > { %4259 = vst.msk [vmem:[%s6707_s14 + $0x70] sm:$0xff] %vm225_vm0, %v4227_v39 }
 0x75d   : > { %v4178_v6 = vpop.f32.mrf.mxu3 }
 0x75e   : > { %v4179_v32 = vadd.f32 %v6695_v15, %v4178_v6 }
 0x75f   : > { %v4130_v19 = vpop.f32.mrf.mxu1 }
 0x760   : > { %v4212_v42 = vmul.f32 0.1, %v4179_v32  ;;  %v4131_v21 = vadd.f32 %v6695_v15, %v4130_v19 }
 0x762   : > { %v4244_v3 = vadd.f32 %v4212_v42, %v7171_v5  ;;  %v4196_v24 = vmul.f32 0.1, %v4131_v21 }
 0x764   : > { %4276 = vst.msk [vmem:[%s6707_s14 + $0xf8] sm:$0xff] %vm225_vm0, %v4244_v3  ;;  %v4228_v27 = vadd.f32 %v4196_v24, %v7172_v44 }
 0x766   : > { %4260 = vst.msk [vmem:[%s6707_s14 + $0x78] sm:$0xff] %vm225_vm0, %v4228_v27 }
 0x767 PF: > { %s15_s18 = sadd.s32 1, %s4446_s18  }
 0x768   : > { %p12_p4 = scmp.ge.s32.totalorder %s15_s18, 4  }
 0x76a   :  { %14 = sbr.rel (!%p12_p4) target bundleno = 1 (0x1), region = 73 }

</bundles_post_ra>
